<compile_context>
chip_gen: v5e
topology: v5e:2x2
jax: 0.10.0
libtpu: 0.0.40
codegen_flags: <defaults>
</compile_context>

<pallas_src>
import jax
import jax.numpy as jnp
from jax.experimental import pallas as pl
from jax.experimental.pallas import tpu as pltpu


def _round_up(a, b):
    return ((a + b - 1) // b) * b


def _physical_vmem_bytes():
    try:
        info = pltpu.get_tpu_info()
        cap = getattr(info, "vmem_capacity_bytes", None)
        if cap:
            return int(cap)
    except Exception:
        pass
    return 64 << 20  # conservative default (v7x per-TC VMEM)


def _dual_fcnn_kernel(x_ref, w0_ref, b0_ref, wt_ref, bt_ref, wf_ref, bf_ref,
                      wlt_ref, wlf_ref, bl_ref, o_ref):
    # x_ref: (TM, D) bf16                o_ref: (TM, D) f32
    # w0_ref: (D, 2D) bf16  b0_ref: (1, 2D) bf16   (fused layer-0 weights)
    # wt_ref/wf_ref: (3, D, D) bf16      bt_ref/bf_ref: (3, D) bf16
    # wlt_ref/wlf_ref: (D, D) bf16       bl_ref: (1, D) f32
    D = o_ref.shape[-1]
    x = x_ref[...]  # bf16

    # Layer 0, fused across both branches: one (TM, D) @ (D, 2D) matmul.
    h0 = jnp.dot(x, w0_ref[...], preferred_element_type=jnp.float32)
    h0 = jnp.maximum(h0.astype(jnp.bfloat16) + b0_ref[0, :], 0.0)
    t = h0[:, :D]
    f = h0[:, D:]

    # Layers 1..3 per branch: bf16 matmul (f32 MXU accumulate) + bf16 epilogue.
    for i in range(3):
        t = jnp.maximum(
            jnp.dot(t, wt_ref[i], preferred_element_type=jnp.float32
                    ).astype(jnp.bfloat16) + bt_ref[i, :], 0.0)
        f = jnp.maximum(
            jnp.dot(f, wf_ref[i], preferred_element_type=jnp.float32
                    ).astype(jnp.bfloat16) + bf_ref[i, :], 0.0)

    # Final Linear(2D -> D) on concat([t, f]) as two matmuls + shared bias
    # (mathematically identical to the concat matmul); f32 epilogue/output.
    out = (jnp.dot(t, wlt_ref[...], preferred_element_type=jnp.float32)
           + jnp.dot(f, wlf_ref[...], preferred_element_type=jnp.float32)
           + bl_ref[0, :])
    o_ref[...] = out.astype(o_ref.dtype)


def multichannel_dual_time_fcnn(x, params, *, tm=512):
    """x: (B, C, D) float32. Returns (B, C, D) float32."""
    B, C, D = x.shape
    M = B * C

    # Stream activations in bf16 (halves HBM input traffic, MXU-native LHS).
    x2 = x.reshape(M, D).astype(jnp.bfloat16)

    # Row tile: multiple of 16 (bf16 sublane packing).  Target >= 2 grid steps
    # so the "parallel" M axis can shard across both v7x TensorCores.
    TM = max(16, min(tm, _round_up(pl.cdiv(M, 2), 16)))
    M_pad = _round_up(M, TM)
    if M_pad != M:
        x2 = jnp.pad(x2, ((0, M_pad - M), (0, 0)))
    grid = (M_pad // TM,)

    # Advisory cost estimate: 10 (M, D) @ (D, D)-equivalent matmuls.
    weight_bytes = 10 * D * D * 2           # all weights bf16
    bias_bytes = 8 * D * 2 + D * 4          # bf16 hidden biases + f32 final bias
    io_bytes = M_pad * D * (2 + 4)          # bf16 in, f32 out
    flops = 2 * 10 * M_pad * D * D

    tile_bytes = 2 * TM * D * (2 + 4)       # double-buffered x (bf16) + out (f32)
    phys_vmem = _physical_vmem_bytes()

    def _vmem_limit(weight_bufs):
        need = weight_bufs * (weight_bytes + bias_bytes) + tile_bytes + (8 << 20)
        return int(min(max(need, 32 << 20), int(0.875 * phys_vmem)))

    args = (x2, params["w0"], params["b0"], params["wt"], params["bt"],
            params["wf"], params["bf"], params["wlt"], params["wlf"],
            params["bl"])

    def _build(single_buffer_weights):
        def const_spec(shape):
            nd = len(shape)
            kwargs = {}
            if single_buffer_weights and hasattr(pl, "Buffered"):
                # Constant index_map -> never re-fetched; 2nd buffer is waste.
                kwargs["pipeline_mode"] = pl.Buffered(1)
            return pl.BlockSpec(shape, lambda *_: (0,) * nd, **kwargs)

        return pl.pallas_call(
            _dual_fcnn_kernel,
            out_shape=jax.ShapeDtypeStruct((M_pad, D), jnp.float32),
            grid_spec=pltpu.PrefetchScalarGridSpec(
                num_scalar_prefetch=0,
                grid=grid,
                in_specs=[
                    pl.BlockSpec((TM, D), lambda i: (i, 0)),  # x row tile
                    const_spec((D, 2 * D)),                   # w0 (fused layer 0)
                    const_spec((1, 2 * D)),                   # b0
                    const_spec((3, D, D)),                    # wt layers 1..3
                    const_spec((3, D)),                       # bt
                    const_spec((3, D, D)),                    # wf layers 1..3
                    const_spec((3, D)),                       # bf
                    const_spec((D, D)),                       # wlt (final, t half)
                    const_spec((D, D)),                       # wlf (final, f half)
                    const_spec((1, D)),                       # bl
                ],
                out_specs=pl.BlockSpec((TM, D), lambda i: (i, 0)),
            ),
            compiler_params=pltpu.CompilerParams(
                dimension_semantics=("parallel",),    # megacore-shardable on v7x
                vmem_limit_bytes=_vmem_limit(1 if single_buffer_weights else 2)),
            cost_estimate=pl.CostEstimate(
                flops=flops,
                transcendentals=0,
                bytes_accessed=weight_bytes + bias_bytes + io_bytes),
        )

    try:
        out = _build(True)(*args)
    except Exception:
        # Fallback: default double-buffered resident weights (always valid).
        out = _build(False)(*args)

    return out[:M].reshape(B, C, D)


def init_params(key, D, weight_dtype=jnp.bfloat16):
    """PyTorch-style uniform(-1/sqrt(fan_in), +) init; weights pre-transposed
    to (in, out) so every layer is x @ W.  Layer-0 weights of both branches are
    packed into one (D, 2D) matrix; hidden biases bf16, final bias f32."""
    keys = jax.random.split(key, 6)

    def u(k, shape, bound):
        return jax.random.uniform(k, shape, jnp.float32, -bound, bound)

    lim = 1.0 / jnp.sqrt(float(D))
    wt_all = u(keys[0], (4, D, D), lim)
    bt_all = u(keys[1], (4, D), lim)
    wf_all = u(keys[2], (4, D, D), lim)
    bf_all = u(keys[3], (4, D), lim)

    lim2 = 1.0 / jnp.sqrt(float(2 * D))
    wl = u(keys[4], (2 * D, D), lim2)        # (in=2D, out=D)
    bl = u(keys[5], (1, D), lim2)

    w0 = jnp.concatenate([wt_all[0], wf_all[0]], axis=1).astype(weight_dtype)
    b0 = jnp.concatenate([bt_all[0], bf_all[0]], axis=0)[None, :].astype(weight_dtype)

    return {
        "w0": w0, "b0": b0,
        "wt": wt_all[1:].astype(weight_dtype), "bt": bt_all[1:].astype(weight_dtype),
        "wf": wf_all[1:].astype(weight_dtype), "bf": bf_all[1:].astype(weight_dtype),
        "wlt": wl[:D, :].astype(weight_dtype),   # acts on the t half of concat
        "wlf": wl[D:, :].astype(weight_dtype),   # acts on the f half of concat
        "bl": bl,
    }


def reference_forward(x, params):
    """Pure-JAX reference mirroring the kernel's bf16-stream / f32-accumulate math."""
    B, C, D = x.shape
    x2 = x.reshape(-1, D).astype(jnp.bfloat16)
    h0 = jnp.dot(x2, params["w0"], preferred_element_type=jnp.float32)
    h0 = jnp.maximum(h0.astype(jnp.bfloat16) + params["b0"][0], 0.0)
    t, f = h0[:, :D], h0[:, D:]
    for i in range(3):
        t = jnp.maximum(
            jnp.dot(t, params["wt"][i], preferred_element_type=jnp.float32
                    ).astype(jnp.bfloat16) + params["bt"][i], 0.0)
        f = jnp.maximum(
            jnp.dot(f, params["wf"][i], preferred_element_type=jnp.float32
                    ).astype(jnp.bfloat16) + params["bf"][i], 0.0)
    out = (jnp.dot(t, params["wlt"], preferred_element_type=jnp.float32)
           + jnp.dot(f, params["wlf"], preferred_element_type=jnp.float32)
           + params["bl"][0])
    return out.reshape(B, C, D).astype(jnp.float32)


if __name__ == "__main__":
    # Small shapes consistent with the module: Linear layers act on the last
    # dim (data_num); channels on the middle axis.
    B, C, D = 2, 4, 256
    key = jax.random.PRNGKey(0)
    kx, kp = jax.random.split(key)
    x = jax.random.normal(kx, (B, C, D), dtype=jnp.float32)
    params = init_params(kp, D)

    out = multichannel_dual_time_fcnn(x, params)
    out = jax.block_until_ready(out)

    ref = reference_forward(x, params)
    assert out.shape == (B, C, D)
    max_err = float(jnp.max(jnp.abs(out - ref)))
    assert jnp.allclose(out, ref, atol=3e-2, rtol=3e-2), (
        f"mismatch vs reference (max abs err {max_err})")

    print("KERNEL_OK")
</pallas_src>

<mosaic_0001>
module attributes {stable_mosaic.version = 11 : i64} {
  func.func @_dual_fcnn_kernel(%arg0: i32, %arg1: memref<16x256xbf16, #tpu.memory_space<vmem>>, %arg2: memref<256x512xbf16, #tpu.memory_space<vmem>>, %arg3: memref<1x512xbf16, #tpu.memory_space<vmem>>, %arg4: memref<3x256x256xbf16, #tpu.memory_space<vmem>>, %arg5: memref<3x256xbf16, #tpu.memory_space<vmem>>, %arg6: memref<3x256x256xbf16, #tpu.memory_space<vmem>>, %arg7: memref<3x256xbf16, #tpu.memory_space<vmem>>, %arg8: memref<256x256xbf16, #tpu.memory_space<vmem>>, %arg9: memref<256x256xbf16, #tpu.memory_space<vmem>>, %arg10: memref<1x256xf32, #tpu.memory_space<vmem>>, %arg11: memref<16x256xf32, #tpu.memory_space<vmem>>) attributes {dimension_semantics = [#tpu.dimension_semantics<parallel>], iteration_bounds = array<i64: 1>, scalar_prefetch = 0 : i64, scratch_operands = 0 : i64, tpu.core_type = #tpu.core_type<tc>, window_params = [{transform_indices = @transform_0, window_bounds = array<i64: 16, 256>}, {pipeline_mode = #tpu.pipeline_mode<synchronous>, transform_indices = @transform_1, window_bounds = array<i64: 256, 512>}, {pipeline_mode = #tpu.pipeline_mode<synchronous>, transform_indices = @transform_2, window_bounds = array<i64: 1, 512>}, {pipeline_mode = #tpu.pipeline_mode<synchronous>, transform_indices = @transform_3, window_bounds = array<i64: 3, 256, 256>}, {pipeline_mode = #tpu.pipeline_mode<synchronous>, transform_indices = @transform_4, window_bounds = array<i64: 3, 256>}, {pipeline_mode = #tpu.pipeline_mode<synchronous>, transform_indices = @transform_5, window_bounds = array<i64: 3, 256, 256>}, {pipeline_mode = #tpu.pipeline_mode<synchronous>, transform_indices = @transform_6, window_bounds = array<i64: 3, 256>}, {pipeline_mode = #tpu.pipeline_mode<synchronous>, transform_indices = @transform_7, window_bounds = array<i64: 256, 256>}, {pipeline_mode = #tpu.pipeline_mode<synchronous>, transform_indices = @transform_8, window_bounds = array<i64: 256, 256>}, {pipeline_mode = #tpu.pipeline_mode<synchronous>, transform_indices = @transform_9, window_bounds = array<i64: 1, 256>}, {transform_indices = @transform_10, window_bounds = array<i64: 16, 256>}]} {
    %c0 = arith.constant 0 : index
    %c0_0 = arith.constant 0 : index
    %0 = vector.load %arg1[%c0, %c0_0] : memref<16x256xbf16, #tpu.memory_space<vmem>>, vector<16x256xbf16>
    %c0_1 = arith.constant 0 : index
    %c0_2 = arith.constant 0 : index
    %1 = vector.load %arg2[%c0_1, %c0_2] : memref<256x512xbf16, #tpu.memory_space<vmem>>, vector<256x512xbf16>
    %cst = arith.constant dense<0.000000e+00> : vector<16x512xf32>
    %2 = tpu.matmul %0, %1, %cst {dimension_numbers = #tpu.dot_dimension_numbers<[1], [0], [0], [1], [0, 0, 1, 1], [], []>} : vector<16x256xbf16>, vector<256x512xbf16>, vector<16x512xf32> -> vector<16x512xf32>
    %3 = arith.truncf %2 : vector<16x512xf32> to vector<16x512xbf16>
    %c0_3 = arith.constant 0 : index
    %c0_4 = arith.constant 0 : index
    %4 = vector.load %arg3[%c0_3, %c0_4] : memref<1x512xbf16, #tpu.memory_space<vmem>>, vector<1x512xbf16>
    %5 = vector.shape_cast %4 : vector<1x512xbf16> to vector<512xbf16>
    %6 = vector.shape_cast %5 : vector<512xbf16> to vector<1x512xbf16>
    %7 = vector.broadcast %6 : vector<1x512xbf16> to vector<16x512xbf16>
    %8 = arith.addf %3, %7 : vector<16x512xbf16>
    %cst_5 = arith.constant 0.000000e+00 : bf16
    %9 = vector.broadcast %cst_5 : bf16 to vector<16x512xbf16>
    %10 = arith.maximumf %8, %9 : vector<16x512xbf16>
    %11 = vector.extract_strided_slice %10 {offsets = [0, 0], sizes = [16, 256], strides = [1, 1]} : vector<16x512xbf16> to vector<16x256xbf16>
    %12 = vector.extract_strided_slice %10 {offsets = [0, 256], sizes = [16, 256], strides = [1, 1]} : vector<16x512xbf16> to vector<16x256xbf16>
    %c0_6 = arith.constant 0 : index
    %c0_7 = arith.constant 0 : index
    %c0_8 = arith.constant 0 : index
    %13 = vector.load %arg4[%c0_6, %c0_7, %c0_8] : memref<3x256x256xbf16, #tpu.memory_space<vmem>>, vector<1x256x256xbf16>
    %14 = vector.shape_cast %13 : vector<1x256x256xbf16> to vector<256x256xbf16>
    %cst_9 = arith.constant dense<0.000000e+00> : vector<16x256xf32>
    %15 = tpu.matmul %11, %14, %cst_9 {dimension_numbers = #tpu.dot_dimension_numbers<[1], [0], [0], [1], [0, 0, 1, 1], [], []>} : vector<16x256xbf16>, vector<256x256xbf16>, vector<16x256xf32> -> vector<16x256xf32>
    %16 = arith.truncf %15 : vector<16x256xf32> to vector<16x256xbf16>
    %c0_10 = arith.constant 0 : index
    %c0_11 = arith.constant 0 : index
    %17 = vector.load %arg5[%c0_10, %c0_11] : memref<3x256xbf16, #tpu.memory_space<vmem>>, vector<1x256xbf16>
    %18 = vector.shape_cast %17 : vector<1x256xbf16> to vector<256xbf16>
    %19 = vector.shape_cast %18 : vector<256xbf16> to vector<1x256xbf16>
    %20 = vector.broadcast %19 : vector<1x256xbf16> to vector<16x256xbf16>
    %21 = arith.addf %16, %20 : vector<16x256xbf16>
    %cst_12 = arith.constant 0.000000e+00 : bf16
    %22 = vector.broadcast %cst_12 : bf16 to vector<16x256xbf16>
    %23 = arith.maximumf %21, %22 : vector<16x256xbf16>
    %c0_13 = arith.constant 0 : index
    %c0_14 = arith.constant 0 : index
    %c0_15 = arith.constant 0 : index
    %24 = vector.load %arg6[%c0_13, %c0_14, %c0_15] : memref<3x256x256xbf16, #tpu.memory_space<vmem>>, vector<1x256x256xbf16>
    %25 = vector.shape_cast %24 : vector<1x256x256xbf16> to vector<256x256xbf16>
    %cst_16 = arith.constant dense<0.000000e+00> : vector<16x256xf32>
    %26 = tpu.matmul %12, %25, %cst_16 {dimension_numbers = #tpu.dot_dimension_numbers<[1], [0], [0], [1], [0, 0, 1, 1], [], []>} : vector<16x256xbf16>, vector<256x256xbf16>, vector<16x256xf32> -> vector<16x256xf32>
    %27 = arith.truncf %26 : vector<16x256xf32> to vector<16x256xbf16>
    %c0_17 = arith.constant 0 : index
    %c0_18 = arith.constant 0 : index
    %28 = vector.load %arg7[%c0_17, %c0_18] : memref<3x256xbf16, #tpu.memory_space<vmem>>, vector<1x256xbf16>
    %29 = vector.shape_cast %28 : vector<1x256xbf16> to vector<256xbf16>
    %30 = vector.shape_cast %29 : vector<256xbf16> to vector<1x256xbf16>
    %31 = vector.broadcast %30 : vector<1x256xbf16> to vector<16x256xbf16>
    %32 = arith.addf %27, %31 : vector<16x256xbf16>
    %cst_19 = arith.constant 0.000000e+00 : bf16
    %33 = vector.broadcast %cst_19 : bf16 to vector<16x256xbf16>
    %34 = arith.maximumf %32, %33 : vector<16x256xbf16>
    %c1 = arith.constant 1 : index
    %c0_20 = arith.constant 0 : index
    %c0_21 = arith.constant 0 : index
    %35 = vector.load %arg4[%c1, %c0_20, %c0_21] : memref<3x256x256xbf16, #tpu.memory_space<vmem>>, vector<1x256x256xbf16>
    %36 = vector.shape_cast %35 : vector<1x256x256xbf16> to vector<256x256xbf16>
    %cst_22 = arith.constant dense<0.000000e+00> : vector<16x256xf32>
    %37 = tpu.matmul %23, %36, %cst_22 {dimension_numbers = #tpu.dot_dimension_numbers<[1], [0], [0], [1], [0, 0, 1, 1], [], []>} : vector<16x256xbf16>, vector<256x256xbf16>, vector<16x256xf32> -> vector<16x256xf32>
    %38 = arith.truncf %37 : vector<16x256xf32> to vector<16x256xbf16>
    %c1_23 = arith.constant 1 : index
    %c0_24 = arith.constant 0 : index
    %39 = vector.load %arg5[%c1_23, %c0_24] : memref<3x256xbf16, #tpu.memory_space<vmem>>, vector<1x256xbf16>
    %40 = vector.shape_cast %39 : vector<1x256xbf16> to vector<256xbf16>
    %41 = vector.shape_cast %40 : vector<256xbf16> to vector<1x256xbf16>
    %42 = vector.broadcast %41 : vector<1x256xbf16> to vector<16x256xbf16>
    %43 = arith.addf %38, %42 : vector<16x256xbf16>
    %cst_25 = arith.constant 0.000000e+00 : bf16
    %44 = vector.broadcast %cst_25 : bf16 to vector<16x256xbf16>
    %45 = arith.maximumf %43, %44 : vector<16x256xbf16>
    %c1_26 = arith.constant 1 : index
    %c0_27 = arith.constant 0 : index
    %c0_28 = arith.constant 0 : index
    %46 = vector.load %arg6[%c1_26, %c0_27, %c0_28] : memref<3x256x256xbf16, #tpu.memory_space<vmem>>, vector<1x256x256xbf16>
    %47 = vector.shape_cast %46 : vector<1x256x256xbf16> to vector<256x256xbf16>
    %cst_29 = arith.constant dense<0.000000e+00> : vector<16x256xf32>
    %48 = tpu.matmul %34, %47, %cst_29 {dimension_numbers = #tpu.dot_dimension_numbers<[1], [0], [0], [1], [0, 0, 1, 1], [], []>} : vector<16x256xbf16>, vector<256x256xbf16>, vector<16x256xf32> -> vector<16x256xf32>
    %49 = arith.truncf %48 : vector<16x256xf32> to vector<16x256xbf16>
    %c1_30 = arith.constant 1 : index
    %c0_31 = arith.constant 0 : index
    %50 = vector.load %arg7[%c1_30, %c0_31] : memref<3x256xbf16, #tpu.memory_space<vmem>>, vector<1x256xbf16>
    %51 = vector.shape_cast %50 : vector<1x256xbf16> to vector<256xbf16>
    %52 = vector.shape_cast %51 : vector<256xbf16> to vector<1x256xbf16>
    %53 = vector.broadcast %52 : vector<1x256xbf16> to vector<16x256xbf16>
    %54 = arith.addf %49, %53 : vector<16x256xbf16>
    %cst_32 = arith.constant 0.000000e+00 : bf16
    %55 = vector.broadcast %cst_32 : bf16 to vector<16x256xbf16>
    %56 = arith.maximumf %54, %55 : vector<16x256xbf16>
    %c2 = arith.constant 2 : index
    %c0_33 = arith.constant 0 : index
    %c0_34 = arith.constant 0 : index
    %57 = vector.load %arg4[%c2, %c0_33, %c0_34] : memref<3x256x256xbf16, #tpu.memory_space<vmem>>, vector<1x256x256xbf16>
    %58 = vector.shape_cast %57 : vector<1x256x256xbf16> to vector<256x256xbf16>
    %cst_35 = arith.constant dense<0.000000e+00> : vector<16x256xf32>
    %59 = tpu.matmul %45, %58, %cst_35 {dimension_numbers = #tpu.dot_dimension_numbers<[1], [0], [0], [1], [0, 0, 1, 1], [], []>} : vector<16x256xbf16>, vector<256x256xbf16>, vector<16x256xf32> -> vector<16x256xf32>
    %60 = arith.truncf %59 : vector<16x256xf32> to vector<16x256xbf16>
    %c2_36 = arith.constant 2 : index
    %c0_37 = arith.constant 0 : index
    %61 = vector.load %arg5[%c2_36, %c0_37] : memref<3x256xbf16, #tpu.memory_space<vmem>>, vector<1x256xbf16>
    %62 = vector.shape_cast %61 : vector<1x256xbf16> to vector<256xbf16>
    %63 = vector.shape_cast %62 : vector<256xbf16> to vector<1x256xbf16>
    %64 = vector.broadcast %63 : vector<1x256xbf16> to vector<16x256xbf16>
    %65 = arith.addf %60, %64 : vector<16x256xbf16>
    %cst_38 = arith.constant 0.000000e+00 : bf16
    %66 = vector.broadcast %cst_38 : bf16 to vector<16x256xbf16>
    %67 = arith.maximumf %65, %66 : vector<16x256xbf16>
    %c2_39 = arith.constant 2 : index
    %c0_40 = arith.constant 0 : index
    %c0_41 = arith.constant 0 : index
    %68 = vector.load %arg6[%c2_39, %c0_40, %c0_41] : memref<3x256x256xbf16, #tpu.memory_space<vmem>>, vector<1x256x256xbf16>
    %69 = vector.shape_cast %68 : vector<1x256x256xbf16> to vector<256x256xbf16>
    %cst_42 = arith.constant dense<0.000000e+00> : vector<16x256xf32>
    %70 = tpu.matmul %56, %69, %cst_42 {dimension_numbers = #tpu.dot_dimension_numbers<[1], [0], [0], [1], [0, 0, 1, 1], [], []>} : vector<16x256xbf16>, vector<256x256xbf16>, vector<16x256xf32> -> vector<16x256xf32>
    %71 = arith.truncf %70 : vector<16x256xf32> to vector<16x256xbf16>
    %c2_43 = arith.constant 2 : index
    %c0_44 = arith.constant 0 : index
    %72 = vector.load %arg7[%c2_43, %c0_44] : memref<3x256xbf16, #tpu.memory_space<vmem>>, vector<1x256xbf16>
    %73 = vector.shape_cast %72 : vector<1x256xbf16> to vector<256xbf16>
    %74 = vector.shape_cast %73 : vector<256xbf16> to vector<1x256xbf16>
    %75 = vector.broadcast %74 : vector<1x256xbf16> to vector<16x256xbf16>
    %76 = arith.addf %71, %75 : vector<16x256xbf16>
    %cst_45 = arith.constant 0.000000e+00 : bf16
    %77 = vector.broadcast %cst_45 : bf16 to vector<16x256xbf16>
    %78 = arith.maximumf %76, %77 : vector<16x256xbf16>
    %c0_46 = arith.constant 0 : index
    %c0_47 = arith.constant 0 : index
    %79 = vector.load %arg8[%c0_46, %c0_47] : memref<256x256xbf16, #tpu.memory_space<vmem>>, vector<256x256xbf16>
    %cst_48 = arith.constant dense<0.000000e+00> : vector<16x256xf32>
    %80 = tpu.matmul %67, %79, %cst_48 {dimension_numbers = #tpu.dot_dimension_numbers<[1], [0], [0], [1], [0, 0, 1, 1], [], []>} : vector<16x256xbf16>, vector<256x256xbf16>, vector<16x256xf32> -> vector<16x256xf32>
    %c0_49 = arith.constant 0 : index
    %c0_50 = arith.constant 0 : index
    %81 = vector.load %arg9[%c0_49, %c0_50] : memref<256x256xbf16, #tpu.memory_space<vmem>>, vector<256x256xbf16>
    %cst_51 = arith.constant dense<0.000000e+00> : vector<16x256xf32>
    %82 = tpu.matmul %78, %81, %cst_51 {dimension_numbers = #tpu.dot_dimension_numbers<[1], [0], [0], [1], [0, 0, 1, 1], [], []>} : vector<16x256xbf16>, vector<256x256xbf16>, vector<16x256xf32> -> vector<16x256xf32>
    %83 = arith.addf %80, %82 : vector<16x256xf32>
    %c0_52 = arith.constant 0 : index
    %c0_53 = arith.constant 0 : index
    %84 = vector.load %arg10[%c0_52, %c0_53] : memref<1x256xf32, #tpu.memory_space<vmem>>, vector<1x256xf32>
    %85 = vector.shape_cast %84 : vector<1x256xf32> to vector<256xf32>
    %86 = vector.shape_cast %85 : vector<256xf32> to vector<1x256xf32>
    %87 = vector.broadcast %86 : vector<1x256xf32> to vector<16x256xf32>
    %88 = arith.addf %83, %87 : vector<16x256xf32>
    %c0_54 = arith.constant 0 : index
    %c0_55 = arith.constant 0 : index
    %89 = vector.load %arg11[%c0_54, %c0_55] : memref<16x256xf32, #tpu.memory_space<vmem>>, vector<16x256xf32>
    tpu.vector_store %arg11[%c0_54, %c0_55], %88 {strides = array<i32>} : memref<16x256xf32, #tpu.memory_space<vmem>>, vector<16x256xf32>,
    return
  }
  func.func @transform_0(%arg0: i32) -> (i32, i32) {
    %c0_i32 = arith.constant 0 : i32
    %c0_i32_0 = arith.constant 0 : i32
    return %arg0, %c0_i32 : i32, i32
  }
  func.func @transform_1(%arg0: i32) -> (i32, i32) {
    %c0_i32 = arith.constant 0 : i32
    %c0_i32_0 = arith.constant 0 : i32
    %c0_i32_1 = arith.constant 0 : i32
    return %c0_i32, %c0_i32_0 : i32, i32
  }
  func.func @transform_2(%arg0: i32) -> (i32, i32) {
    %c0_i32 = arith.constant 0 : i32
    %c0_i32_0 = arith.constant 0 : i32
    %c0_i32_1 = arith.constant 0 : i32
    return %c0_i32, %c0_i32_0 : i32, i32
  }
  func.func @transform_3(%arg0: i32) -> (i32, i32, i32) {
    %c0_i32 = arith.constant 0 : i32
    %c0_i32_0 = arith.constant 0 : i32
    %c0_i32_1 = arith.constant 0 : i32
    %c0_i32_2 = arith.constant 0 : i32
    return %c0_i32, %c0_i32_0, %c0_i32_1 : i32, i32, i32
  }
  func.func @transform_4(%arg0: i32) -> (i32, i32) {
    %c0_i32 = arith.constant 0 : i32
    %c0_i32_0 = arith.constant 0 : i32
    %c0_i32_1 = arith.constant 0 : i32
    return %c0_i32, %c0_i32_0 : i32, i32
  }
  func.func @transform_5(%arg0: i32) -> (i32, i32, i32) {
    %c0_i32 = arith.constant 0 : i32
    %c0_i32_0 = arith.constant 0 : i32
    %c0_i32_1 = arith.constant 0 : i32
    %c0_i32_2 = arith.constant 0 : i32
    return %c0_i32, %c0_i32_0, %c0_i32_1 : i32, i32, i32
  }
  func.func @transform_6(%arg0: i32) -> (i32, i32) {
    %c0_i32 = arith.constant 0 : i32
    %c0_i32_0 = arith.constant 0 : i32
    %c0_i32_1 = arith.constant 0 : i32
    return %c0_i32, %c0_i32_0 : i32, i32
  }
  func.func @transform_7(%arg0: i32) -> (i32, i32) {
    %c0_i32 = arith.constant 0 : i32
    %c0_i32_0 = arith.constant 0 : i32
    %c0_i32_1 = arith.constant 0 : i32
    return %c0_i32, %c0_i32_0 : i32, i32
  }
  func.func @transform_8(%arg0: i32) -> (i32, i32) {
    %c0_i32 = arith.constant 0 : i32
    %c0_i32_0 = arith.constant 0 : i32
    %c0_i32_1 = arith.constant 0 : i32
    return %c0_i32, %c0_i32_0 : i32, i32
  }
  func.func @transform_9(%arg0: i32) -> (i32, i32) {
    %c0_i32 = arith.constant 0 : i32
    %c0_i32_0 = arith.constant 0 : i32
    %c0_i32_1 = arith.constant 0 : i32
    return %c0_i32, %c0_i32_0 : i32, i32
  }
  func.func @transform_10(%arg0: i32) -> (i32, i32) {
    %c0_i32 = arith.constant 0 : i32
    %c0_i32_0 = arith.constant 0 : i32
    return %arg0, %c0_i32 : i32, i32
  }
}

module attributes {stable_mosaic.version = 11 : i64} {
  func.func @_dual_fcnn_kernel(%arg0: i32, %arg1: memref<16x256xbf16, #tpu.memory_space<vmem>>, %arg2: memref<256x512xbf16, #tpu.memory_space<vmem>>, %arg3: memref<1x512xbf16, #tpu.memory_space<vmem>>, %arg4: memref<3x256x256xbf16, #tpu.memory_space<vmem>>, %arg5: memref<3x256xbf16, #tpu.memory_space<vmem>>, %arg6: memref<3x256x256xbf16, #tpu.memory_space<vmem>>, %arg7: memref<3x256xbf16, #tpu.memory_space<vmem>>, %arg8: memref<256x256xbf16, #tpu.memory_space<vmem>>, %arg9: memref<256x256xbf16, #tpu.memory_space<vmem>>, %arg10: memref<1x256xf32, #tpu.memory_space<vmem>>, %arg11: memref<16x256xf32, #tpu.memory_space<vmem>>) attributes {dimension_semantics = [#tpu.dimension_semantics<parallel>], iteration_bounds = array<i64: 1>, scalar_prefetch = 0 : i64, scratch_operands = 0 : i64, tpu.core_type = #tpu.core_type<tc>, window_params = [{transform_indices = @transform_0, window_bounds = array<i64: 16, 256>}, {pipeline_mode = #tpu.pipeline_mode<synchronous>, transform_indices = @transform_1, window_bounds = array<i64: 256, 512>}, {pipeline_mode = #tpu.pipeline_mode<synchronous>, transform_indices = @transform_2, window_bounds = array<i64: 1, 512>}, {pipeline_mode = #tpu.pipeline_mode<synchronous>, transform_indices = @transform_3, window_bounds = array<i64: 3, 256, 256>}, {pipeline_mode = #tpu.pipeline_mode<synchronous>, transform_indices = @transform_4, window_bounds = array<i64: 3, 256>}, {pipeline_mode = #tpu.pipeline_mode<synchronous>, transform_indices = @transform_5, window_bounds = array<i64: 3, 256, 256>}, {pipeline_mode = #tpu.pipeline_mode<synchronous>, transform_indices = @transform_6, window_bounds = array<i64: 3, 256>}, {pipeline_mode = #tpu.pipeline_mode<synchronous>, transform_indices = @transform_7, window_bounds = array<i64: 256, 256>}, {pipeline_mode = #tpu.pipeline_mode<synchronous>, transform_indices = @transform_8, window_bounds = array<i64: 256, 256>}, {pipeline_mode = #tpu.pipeline_mode<synchronous>, transform_indices = @transform_9, window_bounds = array<i64: 1, 256>}, {transform_indices = @transform_10, window_bounds = array<i64: 16, 256>}]} {
    %c0 = arith.constant 0 : index
    %c0_0 = arith.constant 0 : index
    %0 = vector.load %arg1[%c0, %c0_0] : memref<16x256xbf16, #tpu.memory_space<vmem>>, vector<16x256xbf16>
    %c0_1 = arith.constant 0 : index
    %c0_2 = arith.constant 0 : index
    %1 = vector.load %arg2[%c0_1, %c0_2] : memref<256x512xbf16, #tpu.memory_space<vmem>>, vector<256x512xbf16>
    %cst = arith.constant dense<0.000000e+00> : vector<16x512xf32>
    %2 = tpu.matmul %0, %1, %cst {dimension_numbers = #tpu.dot_dimension_numbers<[1], [0], [0], [1], [0, 0, 1, 1], [], []>} : vector<16x256xbf16>, vector<256x512xbf16>, vector<16x512xf32> -> vector<16x512xf32>
    %3 = arith.truncf %2 : vector<16x512xf32> to vector<16x512xbf16>
    %c0_3 = arith.constant 0 : index
    %c0_4 = arith.constant 0 : index
    %4 = vector.load %arg3[%c0_3, %c0_4] : memref<1x512xbf16, #tpu.memory_space<vmem>>, vector<1x512xbf16>
    %5 = vector.shape_cast %4 : vector<1x512xbf16> to vector<512xbf16>
    %6 = vector.shape_cast %5 : vector<512xbf16> to vector<1x512xbf16>
    %7 = vector.broadcast %6 : vector<1x512xbf16> to vector<16x512xbf16>
    %8 = arith.addf %3, %7 : vector<16x512xbf16>
    %cst_5 = arith.constant 0.000000e+00 : bf16
    %9 = vector.broadcast %cst_5 : bf16 to vector<16x512xbf16>
    %10 = arith.maximumf %8, %9 : vector<16x512xbf16>
    %11 = vector.extract_strided_slice %10 {offsets = [0, 0], sizes = [16, 256], strides = [1, 1]} : vector<16x512xbf16> to vector<16x256xbf16>
    %12 = vector.extract_strided_slice %10 {offsets = [0, 256], sizes = [16, 256], strides = [1, 1]} : vector<16x512xbf16> to vector<16x256xbf16>
    %c0_6 = arith.constant 0 : index
    %c0_7 = arith.constant 0 : index
    %c0_8 = arith.constant 0 : index
    %13 = vector.load %arg4[%c0_6, %c0_7, %c0_8] : memref<3x256x256xbf16, #tpu.memory_space<vmem>>, vector<1x256x256xbf16>
    %14 = vector.shape_cast %13 : vector<1x256x256xbf16> to vector<256x256xbf16>
    %cst_9 = arith.constant dense<0.000000e+00> : vector<16x256xf32>
    %15 = tpu.matmul %11, %14, %cst_9 {dimension_numbers = #tpu.dot_dimension_numbers<[1], [0], [0], [1], [0, 0, 1, 1], [], []>} : vector<16x256xbf16>, vector<256x256xbf16>, vector<16x256xf32> -> vector<16x256xf32>
    %16 = arith.truncf %15 : vector<16x256xf32> to vector<16x256xbf16>
    %c0_10 = arith.constant 0 : index
    %c0_11 = arith.constant 0 : index
    %17 = vector.load %arg5[%c0_10, %c0_11] : memref<3x256xbf16, #tpu.memory_space<vmem>>, vector<1x256xbf16>
    %18 = vector.shape_cast %17 : vector<1x256xbf16> to vector<256xbf16>
    %19 = vector.shape_cast %18 : vector<256xbf16> to vector<1x256xbf16>
    %20 = vector.broadcast %19 : vector<1x256xbf16> to vector<16x256xbf16>
    %21 = arith.addf %16, %20 : vector<16x256xbf16>
    %cst_12 = arith.constant 0.000000e+00 : bf16
    %22 = vector.broadcast %cst_12 : bf16 to vector<16x256xbf16>
    %23 = arith.maximumf %21, %22 : vector<16x256xbf16>
    %c0_13 = arith.constant 0 : index
    %c0_14 = arith.constant 0 : index
    %c0_15 = arith.constant 0 : index
    %24 = vector.load %arg6[%c0_13, %c0_14, %c0_15] : memref<3x256x256xbf16, #tpu.memory_space<vmem>>, vector<1x256x256xbf16>
    %25 = vector.shape_cast %24 : vector<1x256x256xbf16> to vector<256x256xbf16>
    %cst_16 = arith.constant dense<0.000000e+00> : vector<16x256xf32>
    %26 = tpu.matmul %12, %25, %cst_16 {dimension_numbers = #tpu.dot_dimension_numbers<[1], [0], [0], [1], [0, 0, 1, 1], [], []>} : vector<16x256xbf16>, vector<256x256xbf16>, vector<16x256xf32> -> vector<16x256xf32>
    %27 = arith.truncf %26 : vector<16x256xf32> to vector<16x256xbf16>
    %c0_17 = arith.constant 0 : index
    %c0_18 = arith.constant 0 : index
    %28 = vector.load %arg7[%c0_17, %c0_18] : memref<3x256xbf16, #tpu.memory_space<vmem>>, vector<1x256xbf16>
    %29 = vector.shape_cast %28 : vector<1x256xbf16> to vector<256xbf16>
    %30 = vector.shape_cast %29 : vector<256xbf16> to vector<1x256xbf16>
    %31 = vector.broadcast %30 : vector<1x256xbf16> to vector<16x256xbf16>
    %32 = arith.addf %27, %31 : vector<16x256xbf16>
    %cst_19 = arith.constant 0.000000e+00 : bf16
    %33 = vector.broadcast %cst_19 : bf16 to vector<16x256xbf16>
    %34 = arith.maximumf %32, %33 : vector<16x256xbf16>
    %c1 = arith.constant 1 : index
    %c0_20 = arith.constant 0 : index
    %c0_21 = arith.constant 0 : index
    %35 = vector.load %arg4[%c1, %c0_20, %c0_21] : memref<3x256x256xbf16, #tpu.memory_space<vmem>>, vector<1x256x256xbf16>
    %36 = vector.shape_cast %35 : vector<1x256x256xbf16> to vector<256x256xbf16>
    %cst_22 = arith.constant dense<0.000000e+00> : vector<16x256xf32>
    %37 = tpu.matmul %23, %36, %cst_22 {dimension_numbers = #tpu.dot_dimension_numbers<[1], [0], [0], [1], [0, 0, 1, 1], [], []>} : vector<16x256xbf16>, vector<256x256xbf16>, vector<16x256xf32> -> vector<16x256xf32>
    %38 = arith.truncf %37 : vector<16x256xf32> to vector<16x256xbf16>
    %c1_23 = arith.constant 1 : index
    %c0_24 = arith.constant 0 : index
    %39 = vector.load %arg5[%c1_23, %c0_24] : memref<3x256xbf16, #tpu.memory_space<vmem>>, vector<1x256xbf16>
    %40 = vector.shape_cast %39 : vector<1x256xbf16> to vector<256xbf16>
    %41 = vector.shape_cast %40 : vector<256xbf16> to vector<1x256xbf16>
    %42 = vector.broadcast %41 : vector<1x256xbf16> to vector<16x256xbf16>
    %43 = arith.addf %38, %42 : vector<16x256xbf16>
    %cst_25 = arith.constant 0.000000e+00 : bf16
    %44 = vector.broadcast %cst_25 : bf16 to vector<16x256xbf16>
    %45 = arith.maximumf %43, %44 : vector<16x256xbf16>
    %c1_26 = arith.constant 1 : index
    %c0_27 = arith.constant 0 : index
    %c0_28 = arith.constant 0 : index
    %46 = vector.load %arg6[%c1_26, %c0_27, %c0_28] : memref<3x256x256xbf16, #tpu.memory_space<vmem>>, vector<1x256x256xbf16>
    %47 = vector.shape_cast %46 : vector<1x256x256xbf16> to vector<256x256xbf16>
    %cst_29 = arith.constant dense<0.000000e+00> : vector<16x256xf32>
    %48 = tpu.matmul %34, %47, %cst_29 {dimension_numbers = #tpu.dot_dimension_numbers<[1], [0], [0], [1], [0, 0, 1, 1], [], []>} : vector<16x256xbf16>, vector<256x256xbf16>, vector<16x256xf32> -> vector<16x256xf32>
    %49 = arith.truncf %48 : vector<16x256xf32> to vector<16x256xbf16>
    %c1_30 = arith.constant 1 : index
    %c0_31 = arith.constant 0 : index
    %50 = vector.load %arg7[%c1_30, %c0_31] : memref<3x256xbf16, #tpu.memory_space<vmem>>, vector<1x256xbf16>
    %51 = vector.shape_cast %50 : vector<1x256xbf16> to vector<256xbf16>
    %52 = vector.shape_cast %51 : vector<256xbf16> to vector<1x256xbf16>
    %53 = vector.broadcast %52 : vector<1x256xbf16> to vector<16x256xbf16>
    %54 = arith.addf %49, %53 : vector<16x256xbf16>
    %cst_32 = arith.constant 0.000000e+00 : bf16
    %55 = vector.broadcast %cst_32 : bf16 to vector<16x256xbf16>
    %56 = arith.maximumf %54, %55 : vector<16x256xbf16>
    %c2 = arith.constant 2 : index
    %c0_33 = arith.constant 0 : index
    %c0_34 = arith.constant 0 : index
    %57 = vector.load %arg4[%c2, %c0_33, %c0_34] : memref<3x256x256xbf16, #tpu.memory_space<vmem>>, vector<1x256x256xbf16>
    %58 = vector.shape_cast %57 : vector<1x256x256xbf16> to vector<256x256xbf16>
    %cst_35 = arith.constant dense<0.000000e+00> : vector<16x256xf32>
    %59 = tpu.matmul %45, %58, %cst_35 {dimension_numbers = #tpu.dot_dimension_numbers<[1], [0], [0], [1], [0, 0, 1, 1], [], []>} : vector<16x256xbf16>, vector<256x256xbf16>, vector<16x256xf32> -> vector<16x256xf32>
    %60 = arith.truncf %59 : vector<16x256xf32> to vector<16x256xbf16>
    %c2_36 = arith.constant 2 : index
    %c0_37 = arith.constant 0 : index
    %61 = vector.load %arg5[%c2_36, %c0_37] : memref<3x256xbf16, #tpu.memory_space<vmem>>, vector<1x256xbf16>
    %62 = vector.shape_cast %61 : vector<1x256xbf16> to vector<256xbf16>
    %63 = vector.shape_cast %62 : vector<256xbf16> to vector<1x256xbf16>
    %64 = vector.broadcast %63 : vector<1x256xbf16> to vector<16x256xbf16>
    %65 = arith.addf %60, %64 : vector<16x256xbf16>
    %cst_38 = arith.constant 0.000000e+00 : bf16
    %66 = vector.broadcast %cst_38 : bf16 to vector<16x256xbf16>
    %67 = arith.maximumf %65, %66 : vector<16x256xbf16>
    %c2_39 = arith.constant 2 : index
    %c0_40 = arith.constant 0 : index
    %c0_41 = arith.constant 0 : index
    %68 = vector.load %arg6[%c2_39, %c0_40, %c0_41] : memref<3x256x256xbf16, #tpu.memory_space<vmem>>, vector<1x256x256xbf16>
    %69 = vector.shape_cast %68 : vector<1x256x256xbf16> to vector<256x256xbf16>
    %cst_42 = arith.constant dense<0.000000e+00> : vector<16x256xf32>
    %70 = tpu.matmul %56, %69, %cst_42 {dimension_numbers = #tpu.dot_dimension_numbers<[1], [0], [0], [1], [0, 0, 1, 1], [], []>} : vector<16x256xbf16>, vector<256x256xbf16>, vector<16x256xf32> -> vector<16x256xf32>
    %71 = arith.truncf %70 : vector<16x256xf32> to vector<16x256xbf16>
    %c2_43 = arith.constant 2 : index
    %c0_44 = arith.constant 0 : index
    %72 = vector.load %arg7[%c2_43, %c0_44] : memref<3x256xbf16, #tpu.memory_space<vmem>>, vector<1x256xbf16>
    %73 = vector.shape_cast %72 : vector<1x256xbf16> to vector<256xbf16>
    %74 = vector.shape_cast %73 : vector<256xbf16> to vector<1x256xbf16>
    %75 = vector.broadcast %74 : vector<1x256xbf16> to vector<16x256xbf16>
    %76 = arith.addf %71, %75 : vector<16x256xbf16>
    %cst_45 = arith.constant 0.000000e+00 : bf16
    %77 = vector.broadcast %cst_45 : bf16 to vector<16x256xbf16>
    %78 = arith.maximumf %76, %77 : vector<16x256xbf16>
    %c0_46 = arith.constant 0 : index
    %c0_47 = arith.constant 0 : index
    %79 = vector.load %arg8[%c0_46, %c0_47] : memref<256x256xbf16, #tpu.memory_space<vmem>>, vector<256x256xbf16>
    %cst_48 = arith.constant dense<0.000000e+00> : vector<16x256xf32>
    %80 = tpu.matmul %67, %79, %cst_48 {dimension_numbers = #tpu.dot_dimension_numbers<[1], [0], [0], [1], [0, 0, 1, 1], [], []>} : vector<16x256xbf16>, vector<256x256xbf16>, vector<16x256xf32> -> vector<16x256xf32>
    %c0_49 = arith.constant 0 : index
    %c0_50 = arith.constant 0 : index
    %81 = vector.load %arg9[%c0_49, %c0_50] : memref<256x256xbf16, #tpu.memory_space<vmem>>, vector<256x256xbf16>
    %cst_51 = arith.constant dense<0.000000e+00> : vector<16x256xf32>
    %82 = tpu.matmul %78, %81, %cst_51 {dimension_numbers = #tpu.dot_dimension_numbers<[1], [0], [0], [1], [0, 0, 1, 1], [], []>} : vector<16x256xbf16>, vector<256x256xbf16>, vector<16x256xf32> -> vector<16x256xf32>
    %83 = arith.addf %80, %82 : vector<16x256xf32>
    %c0_52 = arith.constant 0 : index
    %c0_53 = arith.constant 0 : index
    %84 = vector.load %arg10[%c0_52, %c0_53] : memref<1x256xf32, #tpu.memory_space<vmem>>, vector<1x256xf32>
    %85 = vector.shape_cast %84 : vector<1x256xf32> to vector<256xf32>
    %86 = vector.shape_cast %85 : vector<256xf32> to vector<1x256xf32>
    %87 = vector.broadcast %86 : vector<1x256xf32> to vector<16x256xf32>
    %88 = arith.addf %83, %87 : vector<16x256xf32>
    %c0_54 = arith.constant 0 : index
    %c0_55 = arith.constant 0 : index
    %89 = vector.load %arg11[%c0_54, %c0_55] : memref<16x256xf32, #tpu.memory_space<vmem>>, vector<16x256xf32>
    tpu.vector_store %arg11[%c0_54, %c0_55], %88 {strides = array<i32>} : memref<16x256xf32, #tpu.memory_space<vmem>>, vector<16x256xf32>,
    return
  }
  func.func @transform_0(%arg0: i32) -> (i32, i32) {
    %c0_i32 = arith.constant 0 : i32
    %c0_i32_0 = arith.constant 0 : i32
    return %arg0, %c0_i32 : i32, i32
  }
  func.func @transform_1(%arg0: i32) -> (i32, i32) {
    %c0_i32 = arith.constant 0 : i32
    %c0_i32_0 = arith.constant 0 : i32
    %c0_i32_1 = arith.constant 0 : i32
    return %c0_i32, %c0_i32_0 : i32, i32
  }
  func.func @transform_2(%arg0: i32) -> (i32, i32) {
    %c0_i32 = arith.constant 0 : i32
    %c0_i32_0 = arith.constant 0 : i32
    %c0_i32_1 = arith.constant 0 : i32
    return %c0_i32, %c0_i32_0 : i32, i32
  }
  func.func @transform_3(%arg0: i32) -> (i32, i32, i32) {
    %c0_i32 = arith.constant 0 : i32
    %c0_i32_0 = arith.constant 0 : i32
    %c0_i32_1 = arith.constant 0 : i32
    %c0_i32_2 = arith.constant 0 : i32
    return %c0_i32, %c0_i32_0, %c0_i32_1 : i32, i32, i32
  }
  func.func @transform_4(%arg0: i32) -> (i32, i32) {
    %c0_i32 = arith.constant 0 : i32
    %c0_i32_0 = arith.constant 0 : i32
    %c0_i32_1 = arith.constant 0 : i32
    return %c0_i32, %c0_i32_0 : i32, i32
  }
  func.func @transform_5(%arg0: i32) -> (i32, i32, i32) {
    %c0_i32 = arith.constant 0 : i32
    %c0_i32_0 = arith.constant 0 : i32
    %c0_i32_1 = arith.constant 0 : i32
    %c0_i32_2 = arith.constant 0 : i32
    return %c0_i32, %c0_i32_0, %c0_i32_1 : i32, i32, i32
  }
  func.func @transform_6(%arg0: i32) -> (i32, i32) {
    %c0_i32 = arith.constant 0 : i32
    %c0_i32_0 = arith.constant 0 : i32
    %c0_i32_1 = arith.constant 0 : i32
    return %c0_i32, %c0_i32_0 : i32, i32
  }
  func.func @transform_7(%arg0: i32) -> (i32, i32) {
    %c0_i32 = arith.constant 0 : i32
    %c0_i32_0 = arith.constant 0 : i32
    %c0_i32_1 = arith.constant 0 : i32
    return %c0_i32, %c0_i32_0 : i32, i32
  }
  func.func @transform_8(%arg0: i32) -> (i32, i32) {
    %c0_i32 = arith.constant 0 : i32
    %c0_i32_0 = arith.constant 0 : i32
    %c0_i32_1 = arith.constant 0 : i32
    return %c0_i32, %c0_i32_0 : i32, i32
  }
  func.func @transform_9(%arg0: i32) -> (i32, i32) {
    %c0_i32 = arith.constant 0 : i32
    %c0_i32_0 = arith.constant 0 : i32
    %c0_i32_1 = arith.constant 0 : i32
    return %c0_i32, %c0_i32_0 : i32, i32
  }
  func.func @transform_10(%arg0: i32) -> (i32, i32) {
    %c0_i32 = arith.constant 0 : i32
    %c0_i32_0 = arith.constant 0 : i32
    return %arg0, %c0_i32 : i32, i32
  }
}

</mosaic_0001>

<bundles_post_ra>
// kernel: tpu_custom_call.1
= control target key start
LH: loop header
LB: loop body
LE: loop exit
PB: predicated region body
PF: predicated region fallthrough
CT: control target
= control target key end

     0   :  { %15 = vsyncpa [#allocation3], 0  ;;  %s5050_s0 = inlined_call_operand.hbm [shape: bf16[16,256], index: 0, kind: input, shape index: {}]   ;;  %s5051_s1 = inlined_call_operand.hbm [shape: bf16[256,512], index: 1, kind: input, shape index: {}]   ;;  %s5052_s2 = inlined_call_operand.hbm [shape: bf16[1,512], index: 2, kind: input, shape index: {}]   ;;  %s5053_s3 = inlined_call_operand.hbm [shape: bf16[3,256,256], index: 3, kind: input, shape index: {}]   ;;  %s5054_s4 = inlined_call_operand.hbm [shape: bf16[3,256], index: 4, kind: input, shape index: {}]   ;;  %s5055_s5 = inlined_call_operand.hbm [shape: bf16[3,256,256], index: 5, kind: input, shape index: {}]   ;;  %s5056_s6 = inlined_call_operand.vmem [shape: bf16[3,256], index: 6, kind: input, shape index: {}]   ;;  %s5057_s7 = inlined_call_operand.hbm [shape: bf16[256,256], index: 7, kind: input, shape index: {}]   ;;  %s5058_s8 = inlined_call_operand.hbm [shape: bf16[256,256], index: 8, kind: input, shape index: {}]   ;;  %s5059_s9 = inlined_call_operand.vmem [shape: f32[1,256], index: 9, kind: input, shape index: {}]   ;;  %s5060_s10 = inlined_call_operand.hbm [shape: f32[16,256], index: 10, kind: output, shape index: {}]  }
   0x1   :  { %16 = vsyncpa [#allocation6], 0 }
   0x2   :  { %17 = vsyncpa [#allocation9], 0 }
   0x3   :  { %18 = vsyncpa [#allocation12], 0 }
   0x4   :  { %19 = vsyncpa [#allocation15], 0  ;;  %s38_s15 = sshll.u32 %s5051_s1, 4  ;;  %s39_s15 = int_to_ptr.hbm [resolvable:$true] %s38_s15 }
   0x5   :  { %20 = vsyncpa [#allocation4], 0  ;;  %s4842_s16 = smov [#allocation5]   ;;  %s4843_s18 = smov 256  }
   0x6   :  { %s40_s17 = sshll.u32 %s4842_s16, 4  ;;  %s4844_s19 = smov 16   ;;  %s41_s17 = int_to_ptr.vmem [resolvable:$true] %s40_s17 }
   0x7   :  { %46 = dma.hbm_to_vmem [thread:$0]  %s39_s15, 8192, %s41_s17, [#allocation6], %s4843_s18, %s4843_s18, %s4844_s19  }
   0x8   :  { %s62_s22 = sshll.u32 %s5053_s3, 4  ;;  %s4845_s23 = smov [#allocation8]   ;;  %s63_s22 = int_to_ptr.hbm [resolvable:$true] %s62_s22 }
   0x9   :  { %s64_s24 = sshll.u32 %s4845_s23, 4  ;;  %s86_s26 = sshll.u32 %s5055_s5, 4  ;;  %s65_s24 = int_to_ptr.vmem [resolvable:$true] %s64_s24  ;;  %s87_s26 = int_to_ptr.hbm [resolvable:$true] %s86_s26 }
   0xa   :  { %s4846_s27 = smov 128   ;;  %s4847_s28 = smov 8  }
   0xb   :  { %70 = dma.hbm_to_vmem [thread:$0]  %s63_s22, 12288, %s65_s24, [#allocation9], %s4846_s27, %s4846_s27, %s4847_s28  }
   0xc   :  { %s25_s11 = sshll.u32 %s5050_s0, 4  ;;  %s4848_s3 = smov [#allocation11]   ;;  %s26_s11 = int_to_ptr.hbm [resolvable:$true] %s25_s11 }
   0xd   :  { %s88_s12 = sshll.u32 %s4848_s3, 4  ;;  %s4849_s5 = smov [#allocation2]   ;;  %s89_s12 = int_to_ptr.vmem [resolvable:$true] %s88_s12 }
   0xe   :  { %94 = dma.hbm_to_vmem [thread:$0]  %s87_s26, 12288, %s89_s12, [#allocation12], %s4846_s27, %s4846_s27, %s4847_s28  }
   0xf   :  { %s27_s13 = sshll.u32 %s4849_s5, 4  ;;  %s52_s16 = sshll.u32 %s5052_s2, 4  ;;  %s28_s13 = int_to_ptr.vmem [resolvable:$true] %s27_s13  ;;  %s53_s16 = int_to_ptr.hbm [resolvable:$true] %s52_s16 }
  0x10   :  { %33 = dma.hbm_to_vmem [thread:$0]  %s26_s11, 256, %s28_s13, [#allocation3], %s4846_s27, %s4846_s27, %s4847_s28  }
  0x11   :  { %s76_s20 = sshll.u32 %s5054_s4, 4  ;;  %s4850_s21 = smov [#allocation7]   ;;  %s77_s20 = int_to_ptr.hbm [resolvable:$true] %s76_s20 }
  0x12   :  { %s54_s22 = sshll.u32 %s4850_s21, 4  ;;  %s4851_s23 = smov [#allocation10]   ;;  %s55_s22 = int_to_ptr.vmem [resolvable:$true] %s54_s22 }
  0x13   :  { %57 = dma.hbm_to_vmem [thread:$0]  %s53_s16, 64, %s55_s22, [#allocation6]  }
  0x14   :  { %s78_s24 = sshll.u32 %s4851_s23, 4  ;;  %s101_s2 = sshll.u32 %s5057_s7, 4  ;;  %s79_s24 = int_to_ptr.vmem [resolvable:$true] %s78_s24  ;;  %s102_s2 = int_to_ptr.hbm [resolvable:$true] %s101_s2 }
  0x15   :  { %81 = dma.hbm_to_vmem [thread:$0]  %s77_s20, 64, %s79_s24, [#allocation9]  }
  0x16   :  { %s114_s30 = sshll.u32 %s5058_s8, 4  ;;  %s4852_s11 = smov [#allocation13]   ;;  %s115_s30 = int_to_ptr.hbm [resolvable:$true] %s114_s30 }
  0x17   :  { %s103_s4 = sshll.u32 %s4852_s11, 4  ;;  %s4853_s3 = smov [#allocation14]   ;;  %s104_s4 = int_to_ptr.vmem [resolvable:$true] %s103_s4 }
  0x18   :  { %109 = dma.hbm_to_vmem [thread:$0]  %s102_s2, 4096, %s104_s4, [#allocation12], %s4846_s27, %s4846_s27, %s4847_s28  }
  0x19   :  { %s116_s12 = sshll.u32 %s4853_s3, 4  ;;  %s117_s12 = int_to_ptr.vmem [resolvable:$true] %s116_s12 }
  0x1a   :  { %122 = dma.hbm_to_vmem [thread:$0]  %s115_s30, 4096, %s117_s12, [#allocation15], %s4846_s27, %s4846_s27, %s4847_s28  }
  0x1b   :  { %4830 = dma.done.wait [#allocation3], 256  }
  0x1c   :  { %4831 = vsyncadd [#allocation3], 4294967040 }
  0x1d   :  { %4832 = dma.done.wait [#allocation6], 8256  }
  0x1e   :  { %4833 = vsyncadd [#allocation6], 4294959040 }
  0x1f   :  { %4834 = dma.done.wait [#allocation9], 12352  }
  0x20   :  { %4835 = vsyncadd [#allocation9], 4294954944 }
  0x21   :  { %4836 = dma.done.wait [#allocation12], 16384  }
  0x22   :  { %4837 = vsyncadd [#allocation12], 4294950912 }
  0x23   :  { %4838 = dma.done.wait [#allocation15], 4096  }
  0x24   :  { %4839 = vsyncadd [#allocation15], 4294963200  ;;  %v3113_v0 = vld [vmem:[#allocation5 + $0xe0] sm:$0xf]  ;;  %v4311_v1 = vld [vmem:[#allocation5 + $0xec] sm:$0xf0] }
  0x25   :  { %v3241_v2 = vld [vmem:[#allocation5 + $0x1e0] sm:$0xf]  ;;  %v3114_v3 = vor.u32 %v4311_v1, %v3113_v0  ;;  %v4343_v4 = vld [vmem:[#allocation5 + $0x1ec] sm:$0xf0]  ;;  %v4309_v5 = vld [vmem:[#allocation5 + $0xe4] sm:$0xf] }
  0x26   :  { %v3115_v6 = vld [vmem:[#allocation5 + $0xf0] sm:$0xf0]  ;;  %v3242_v7 = vor.u32 %v4343_v4, %v3241_v2  ;;  %v4341_v9 = vld [vmem:[#allocation5 + $0x1e4] sm:$0xf]  ;;  %v3097_v11 = vld [vmem:[#allocation5 + $0xc0] sm:$0xf] }
  0x27   :  { %v3118_v8 = vor.u32 %v4309_v5, %v3115_v6  ;;  %v3243_v10 = vld [vmem:[#allocation5 + $0x1f0] sm:$0xf0]  ;;  %553 = vmatpush.bf16.msra.mxu0 %v3114_v3  ;;  %v4307_v13 = vld [vmem:[#allocation5 + $0xcc] sm:$0xf0]  ;;  %v3225_v14 = vld [vmem:[#allocation5 + $0x1c0] sm:$0xf] }
  0x28   :  { %v3246_v12 = vor.u32 %v4341_v9, %v3243_v10  ;;  %v4339_v15 = vld [vmem:[#allocation5 + $0x1cc] sm:$0xf0]  ;;  %567 = vmatpush.bf16.msra.mxu1 %v3242_v7  ;;  %v3098_v16 = vor.u32 %v4307_v13, %v3097_v11  ;;  %v4305_v18 = vld [vmem:[#allocation5 + $0xc4] sm:$0xf]  ;;  %v3099_v19 = vld [vmem:[#allocation5 + $0xd0] sm:$0xf0] }
  0x29   :  { %581 = vmatpush.bf16.msra.mxu2 %v3118_v8  ;;  %v3226_v17 = vor.u32 %v4339_v15, %v3225_v14  ;;  %v4337_v20 = vld [vmem:[#allocation5 + $0x1c4] sm:$0xf]  ;;  %v3102_v21 = vor.u32 %v4305_v18, %v3099_v19  ;;  %v3227_v22 = vld [vmem:[#allocation5 + $0x1d0] sm:$0xf0]  ;;  %v3081_v23 = vld [vmem:[#allocation5 + $0xa0] sm:$0xf] }
  0x2a   :  { %595 = vmatpush.bf16.msra.mxu3 %v3246_v12  ;;  %v4303_v24 = vld [vmem:[#allocation5 + $0xac] sm:$0xf0]  ;;  %v3230_v25 = vor.u32 %v4337_v20, %v3227_v22  ;;  %v3209_v26 = vld [vmem:[#allocation5 + $0x1a0] sm:$0xf]  ;;  %v4301_v28 = vld [vmem:[#allocation5 + $0xa4] sm:$0xf] }
  0x2b   :  { %v4335_v27 = vld [vmem:[#allocation5 + $0x1ac] sm:$0xf0]  ;;  %554 = vmatpush.bf16.msra.mxu0 %v3098_v16  ;;  %v3082_v29 = vor.u32 %v4303_v24, %v3081_v23  ;;  %v3083_v30 = vld [vmem:[#allocation5 + $0xb0] sm:$0xf0]  ;;  %v4333_v31 = vld [vmem:[#allocation5 + $0x1a4] sm:$0xf] }
  0x2c   :  { %v3211_v32 = vld [vmem:[#allocation5 + $0x1b0] sm:$0xf0]  ;;  %568 = vmatpush.bf16.msra.mxu1 %v3226_v17  ;;  %v3210_v33 = vor.u32 %v4335_v27, %v3209_v26  ;;  %v3086_v34 = vor.u32 %v4301_v28, %v3083_v30  ;;  %v3065_v35 = vld [vmem:[#allocation5 + $0x80] sm:$0xf]  ;;  %v4299_v36 = vld [vmem:[#allocation5 + $0x8c] sm:$0xf0] }
  0x2d   :  { %582 = vmatpush.bf16.msra.mxu2 %v3102_v21  ;;  %v3193_v37 = vld [vmem:[#allocation5 + $0x180] sm:$0xf]  ;;  %v3214_v38 = vor.u32 %v4333_v31, %v3211_v32  ;;  %v4331_v39 = vld [vmem:[#allocation5 + $0x18c] sm:$0xf0]  ;;  %v4297_v40 = vld [vmem:[#allocation5 + $0x84] sm:$0xf]  ;;  %v3066_v44 = vor.u32 %v4299_v36, %v3065_v35 }
  0x2e   :  { %596 = vmatpush.bf16.msra.mxu3 %v3230_v25  ;;  %v3067_v41 = vld [vmem:[#allocation5 + $0x90] sm:$0xf0]  ;;  %v4329_v42 = vld [vmem:[#allocation5 + $0x184] sm:$0xf]  ;;  %v3194_v45 = vor.u32 %v4331_v39, %v3193_v37  ;;  %v3049_v47 = vld [vmem:[#allocation5 + $0x60] sm:$0xf] }
  0x2f   :  { %v3195_v43 = vld [vmem:[#allocation5 + $0x190] sm:$0xf0]  ;;  %555 = vmatpush.bf16.msra.mxu0 %v3082_v29  ;;  %v3070_v46 = vor.u32 %v4297_v40, %v3067_v41  ;;  %v4295_v48 = vld [vmem:[#allocation5 + $0x6c] sm:$0xf0]  ;;  %v3177_v49 = vld [vmem:[#allocation5 + $0x160] sm:$0xf] }
  0x30   :  { %569 = vmatpush.bf16.msra.mxu1 %v3210_v33  ;;  %v3198_v50 = vor.u32 %v4329_v42, %v3195_v43  ;;  %v4327_v51 = vld [vmem:[#allocation5 + $0x16c] sm:$0xf0]  ;;  %v4293_v52 = vld [vmem:[#allocation5 + $0x64] sm:$0xf]  ;;  %v3051_v53 = vld [vmem:[#allocation5 + $0x70] sm:$0xf0]  ;;  %v3050_v56 = vor.u32 %v4295_v48, %v3049_v47 }
  0x31   :  { %583 = vmatpush.bf16.msra.mxu2 %v3086_v34  ;;  %v4325_v54 = vld [vmem:[#allocation5 + $0x164] sm:$0xf]  ;;  %v3179_v55 = vld [vmem:[#allocation5 + $0x170] sm:$0xf0]  ;;  %v3178_v57 = vor.u32 %v4327_v51, %v3177_v49  ;;  %v3054_v58 = vor.u32 %v4293_v52, %v3051_v53  ;;  %v3033_v59 = vld [vmem:[#allocation5 + $0x40] sm:$0xf] }
  0x32   :  { %597 = vmatpush.bf16.msra.mxu3 %v3214_v38  ;;  %v4291_v60 = vld [vmem:[#allocation5 + $0x4c] sm:$0xf0]  ;;  %v3161_v61 = vld [vmem:[#allocation5 + $0x140] sm:$0xf]  ;;  %v3182_v62 = vor.u32 %v4325_v54, %v3179_v55  ;;  %v4289_v0 = vld [vmem:[#allocation5 + $0x44] sm:$0xf] }
  0x33   :  { %556 = vmatpush.bf16.msra.mxu0 %v3066_v44  ;;  %v4323_v63 = vld [vmem:[#allocation5 + $0x14c] sm:$0xf0]  ;;  %v3035_v1 = vld [vmem:[#allocation5 + $0x50] sm:$0xf0]  ;;  %v4321_v2 = vld [vmem:[#allocation5 + $0x144] sm:$0xf]  ;;  %v3034_v4 = vor.u32 %v4291_v60, %v3033_v59 }
  0x34   :  { %570 = vmatpush.bf16.msra.mxu1 %v3194_v45  ;;  %v3163_v3 = vld [vmem:[#allocation5 + $0x150] sm:$0xf0]  ;;  %v3162_v5 = vor.u32 %v4323_v63, %v3161_v61  ;;  %v3038_v6 = vor.u32 %v4289_v0, %v3035_v1  ;;  %v3017_v7 = vld [vmem:[#allocation5 + $0x20] sm:$0xf]  ;;  %v4287_v8 = vld [vmem:[#allocation5 + $0x2c] sm:$0xf0] }
  0x35   :  { %584 = vmatpush.bf16.msra.mxu2 %v3070_v46  ;;  %v3145_v9 = vld [vmem:[#allocation5 + $0x120] sm:$0xf]  ;;  %v3166_v10 = vor.u32 %v4321_v2, %v3163_v3  ;;  %v4319_v11 = vld [vmem:[#allocation5 + $0x12c] sm:$0xf0]  ;;  %v4285_v12 = vld [vmem:[#allocation5 + $0x24] sm:$0xf]  ;;  %v3018_v16 = vor.u32 %v4287_v8, %v3017_v7 }
  0x36   :  { %598 = vmatpush.bf16.msra.mxu3 %v3198_v50  ;;  %v3019_v13 = vld [vmem:[#allocation5 + $0x30] sm:$0xf0]  ;;  %v4317_v14 = vld [vmem:[#allocation5 + $0x124] sm:$0xf]  ;;  %v3001_v17 = vld [vmem:[#allocation5] sm:$0xf]  ;;  %v3146_v20 = vor.u32 %v4319_v11, %v3145_v9 }
  0x37   :  { %557 = vmatpush.bf16.msra.mxu0 %v3050_v56  ;;  %v3147_v15 = vld [vmem:[#allocation5 + $0x130] sm:$0xf0]  ;;  %v4283_v18 = vld [vmem:[#allocation5 + $0xc] sm:$0xf0]  ;;  %v3129_v19 = vld [vmem:[#allocation5 + $0x100] sm:$0xf]  ;;  %v3022_v21 = vor.u32 %v4285_v12, %v3019_v13 }
  0x38   :  { %571 = vmatpush.bf16.msra.mxu1 %v3178_v57  ;;  %v4315_v22 = vld [vmem:[#allocation5 + $0x10c] sm:$0xf0]  ;;  %v4281_v23 = vld [vmem:[#allocation5 + $0x4] sm:$0xf]  ;;  %v3003_v24 = vld [vmem:[#allocation5 + $0x10] sm:$0xf0]  ;;  %v3150_v25 = vor.u32 %v4317_v14, %v3147_v15  ;;  %v3002_v32 = vor.u32 %v4283_v18, %v3001_v17 }
  0x39   :  { %585 = vmatpush.bf16.msra.mxu2 %v3054_v58  ;;  %v4313_v26 = vld [vmem:[#allocation5 + $0x104] sm:$0xf]  ;;  %v3131_v27 = vld [vmem:[#allocation5 + $0x110] sm:$0xf0]  ;;  %v3121_v28 = vld [vmem:[#allocation5 + $0xe8] sm:$0xf]  ;;  %v3130_v36 = vor.u32 %v4315_v22, %v3129_v19  ;;  %v3006_v37 = vor.u32 %v4281_v23, %v3003_v24 }
  0x3a   :  { %599 = vmatpush.bf16.msra.mxu3 %v3182_v62  ;;  %v4312_v29 = vld [vmem:[#allocation5 + $0xf4] sm:$0xf0]  ;;  %v3249_v30 = vld [vmem:[#allocation5 + $0x1e8] sm:$0xf]  ;;  %v4310_v33 = vld [vmem:[#allocation5 + $0xec] sm:$0xf]  ;;  %v3134_v41 = vor.u32 %v4313_v26, %v3131_v27 }
  0x3b   :  { %558 = vmatpush.bf16.msra.mxu0 %v3034_v4  ;;  %v4344_v31 = vld [vmem:[#allocation5 + $0x1f4] sm:$0xf0]  ;;  %v3123_v34 = vld [vmem:[#allocation5 + $0xf8] sm:$0xf0]  ;;  %v4342_v35 = vld [vmem:[#allocation5 + $0x1ec] sm:$0xf]  ;;  %v3122_v42 = vor.u32 %v4312_v29, %v3121_v28 }
  0x3c   :  { %572 = vmatpush.bf16.msra.mxu1 %v3162_v5  ;;  %v3251_v38 = vld [vmem:[#allocation5 + $0x1f8] sm:$0xf0]  ;;  %v2993_v39 = vld [vmem:[#allocation2] sm:$0xf]  ;;  %v4280_v40 = vld [vmem:[#allocation2 + $0x4] sm:$0xf0]  ;;  %v3250_v45 = vor.u32 %v4344_v31, %v3249_v30  ;;  %v3126_v46 = vor.u32 %v4310_v33, %v3123_v34 }
  0x3d   :  { %586 = vmatpush.bf16.msra.mxu2 %v3038_v6  ;;  %v4279_v43 = vld [vmem:[#allocation2 + $0x4] sm:$0xf]  ;;  %v2995_v44 = vld [vmem:[#allocation2 + $0x8] sm:$0xf0]  ;;  %v3105_v47 = vld [vmem:[#allocation5 + $0xc8] sm:$0xf]  ;;  %v3254_v50 = vor.u32 %v4342_v35, %v3251_v38  ;;  %v4952_v51 = vor.u32 %v4280_v40, %v2993_v39 }
  0x3e   :  { %600 = vmatpush.bf16.msra.mxu3 %v3166_v10  ;;  %v4308_v48 = vld [vmem:[#allocation5 + $0xd4] sm:$0xf0]  ;;  %v3233_v49 = vld [vmem:[#allocation5 + $0x1c8] sm:$0xf]  ;;  %v4306_v53 = vld [vmem:[#allocation5 + $0xcc] sm:$0xf]  ;;  %v4954_v55 = vor.u32 %v4279_v43, %v2995_v44 }
  0x3f   :  { %559 = vmatpush.bf16.msra.mxu0 %v3018_v16  ;;  %v4340_v52 = vld [vmem:[#allocation5 + $0x1d4] sm:$0xf0]  ;;  %v3107_v54 = vld [vmem:[#allocation5 + $0xd8] sm:$0xf0]  ;;  %v4338_v56 = vld [vmem:[#allocation5 + $0x1cc] sm:$0xf]  ;;  %v3106_v58 = vor.u32 %v4308_v48, %v3105_v47 }
  0x40   :  { %573 = vmatpush.bf16.msra.mxu1 %v3146_v20  ;;  %v3235_v57 = vld [vmem:[#allocation5 + $0x1d8] sm:$0xf0]  ;;  %v3234_v59 = vor.u32 %v4340_v52, %v3233_v49  ;;  %v3110_v60 = vor.u32 %v4306_v53, %v3107_v54  ;;  %v3089_v61 = vld [vmem:[#allocation5 + $0xa8] sm:$0xf]  ;;  %v4304_v62 = vld [vmem:[#allocation5 + $0xb4] sm:$0xf0] }
  0x41   :  { %587 = vmatpush.bf16.msra.mxu2 %v3022_v21  ;;  %v3217_v63 = vld [vmem:[#allocation5 + $0x1a8] sm:$0xf]  ;;  %v3238_v0 = vor.u32 %v4338_v56, %v3235_v57  ;;  %v4336_v1 = vld [vmem:[#allocation5 + $0x1b4] sm:$0xf0]  ;;  %v4302_v2 = vld [vmem:[#allocation5 + $0xac] sm:$0xf]  ;;  %v3090_v6 = vor.u32 %v4304_v62, %v3089_v61 }
  0x42   :  { %601 = vmatpush.bf16.msra.mxu3 %v3150_v25  ;;  %v3091_v3 = vld [vmem:[#allocation5 + $0xb8] sm:$0xf0]  ;;  %v4334_v4 = vld [vmem:[#allocation5 + $0x1ac] sm:$0xf]  ;;  %v3218_v7 = vor.u32 %v4336_v1, %v3217_v63  ;;  %v3073_v9 = vld [vmem:[#allocation5 + $0x88] sm:$0xf] }
  0x43   :  { %560 = vmatpush.bf16.msra.mxu0 %v3002_v32  ;;  %v3219_v5 = vld [vmem:[#allocation5 + $0x1b8] sm:$0xf0]  ;;  %v3094_v8 = vor.u32 %v4302_v2, %v3091_v3  ;;  %v4300_v10 = vld [vmem:[#allocation5 + $0x94] sm:$0xf0]  ;;  %v3201_v11 = vld [vmem:[#allocation5 + $0x188] sm:$0xf] }
  0x44   :  { %574 = vmatpush.bf16.msra.mxu1 %v3130_v36  ;;  %v3222_v12 = vor.u32 %v4334_v4, %v3219_v5  ;;  %v4332_v13 = vld [vmem:[#allocation5 + $0x194] sm:$0xf0]  ;;  %v4298_v14 = vld [vmem:[#allocation5 + $0x8c] sm:$0xf]  ;;  %v3075_v15 = vld [vmem:[#allocation5 + $0x98] sm:$0xf0]  ;;  %v3074_v18 = vor.u32 %v4300_v10, %v3073_v9 }
  0x45   :  { %588 = vmatpush.bf16.msra.mxu2 %v3006_v37  ;;  %v4330_v16 = vld [vmem:[#allocation5 + $0x18c] sm:$0xf]  ;;  %v3203_v17 = vld [vmem:[#allocation5 + $0x198] sm:$0xf0]  ;;  %v3202_v19 = vor.u32 %v4332_v13, %v3201_v11  ;;  %v3078_v20 = vor.u32 %v4298_v14, %v3075_v15  ;;  %v3057_v21 = vld [vmem:[#allocation5 + $0x68] sm:$0xf] }
  0x46   :  { %602 = vmatpush.bf16.msra.mxu3 %v3134_v41  ;;  %561 = vmatmul.bf16.vlgmr.msra.gmra.mxu0 %v4952_v51  ;;  %v4296_v22 = vld [vmem:[#allocation5 + $0x74] sm:$0xf0]  ;;  %v3185_v23 = vld [vmem:[#allocation5 + $0x168] sm:$0xf]  ;;  %v3206_v24 = vor.u32 %v4330_v16, %v3203_v17  ;;  %v4294_v26 = vld [vmem:[#allocation5 + $0x6c] sm:$0xf] }
  0x47   :  { %609 = vmatpush.bf16.msrb.mxu0 %v3122_v42  ;;  %575 = vmatmul.bf16.vlgmr.msra.gmra.mxu1 %v4954_v55  ;;  %v4328_v25 = vld [vmem:[#allocation5 + $0x174] sm:$0xf0]  ;;  %v3059_v27 = vld [vmem:[#allocation5 + $0x78] sm:$0xf0]  ;;  %v4326_v28 = vld [vmem:[#allocation5 + $0x16c] sm:$0xf]  ;;  %v3058_v30 = vor.u32 %v4296_v22, %v3057_v21 }
  0x48   :  { %623 = vmatpush.bf16.msrb.mxu1 %v3250_v45  ;;  %589 = vmatmul.bf16.vlgmr.msra.gmra.mxu2 %v4952_v51  ;;  %v3187_v29 = vld [vmem:[#allocation5 + $0x178] sm:$0xf0]  ;;  %v3186_v31 = vor.u32 %v4328_v25, %v3185_v23  ;;  %v3062_v32 = vor.u32 %v4294_v26, %v3059_v27  ;;  %v3041_v33 = vld [vmem:[#allocation5 + $0x48] sm:$0xf]  ;;  %v4292_v34 = vld [vmem:[#allocation5 + $0x54] sm:$0xf0] }
  0x49   :  { %637 = vmatpush.bf16.msrb.mxu2 %v3126_v46  ;;  %603 = vmatmul.bf16.vlgmr.msra.gmra.mxu3 %v4954_v55  ;;  %v3169_v35 = vld [vmem:[#allocation5 + $0x148] sm:$0xf]  ;;  %v3190_v36 = vor.u32 %v4326_v28, %v3187_v29  ;;  %v4324_v37 = vld [vmem:[#allocation5 + $0x154] sm:$0xf0]  ;;  %v4290_v38 = vld [vmem:[#allocation5 + $0x4c] sm:$0xf]  ;;  %v3042_v42 = vor.u32 %v4292_v34, %v3041_v33 }
  0x4a   :  { %651 = vmatpush.bf16.msrb.mxu3 %v3254_v50  ;;  %v3043_v39 = vld [vmem:[#allocation5 + $0x58] sm:$0xf0]  ;;  %v4322_v40 = vld [vmem:[#allocation5 + $0x14c] sm:$0xf]  ;;  %v3170_v43 = vor.u32 %v4324_v37, %v3169_v35  ;;  %v3025_v45 = vld [vmem:[#allocation5 + $0x28] sm:$0xf] }
  0x4b   :  { %610 = vmatpush.bf16.msrb.mxu0 %v3106_v58  ;;  %v3171_v41 = vld [vmem:[#allocation5 + $0x158] sm:$0xf0]  ;;  %v3046_v44 = vor.u32 %v4290_v38, %v3043_v39  ;;  %v4288_v46 = vld [vmem:[#allocation5 + $0x34] sm:$0xf0]  ;;  %v3153_v47 = vld [vmem:[#allocation5 + $0x128] sm:$0xf] }
  0x4c   :  { %624 = vmatpush.bf16.msrb.mxu1 %v3234_v59  ;;  %v3174_v48 = vor.u32 %v4322_v40, %v3171_v41  ;;  %v4320_v49 = vld [vmem:[#allocation5 + $0x134] sm:$0xf0]  ;;  %v4286_v50 = vld [vmem:[#allocation5 + $0x2c] sm:$0xf]  ;;  %v3027_v52 = vld [vmem:[#allocation5 + $0x38] sm:$0xf0]  ;;  %v3026_v56 = vor.u32 %v4288_v46, %v3025_v45 }
  0x4d   :  { %638 = vmatpush.bf16.msrb.mxu2 %v3110_v60  ;;  %v4318_v53 = vld [vmem:[#allocation5 + $0x12c] sm:$0xf]  ;;  %v3155_v54 = vld [vmem:[#allocation5 + $0x138] sm:$0xf0]  ;;  %v3009_v57 = vld [vmem:[#allocation5 + $0x8] sm:$0xf]  ;;  %v3154_v58 = vor.u32 %v4320_v49, %v3153_v47  ;;  %v3030_v59 = vor.u32 %v4286_v50, %v3027_v52 }
  0x4e   :  { %652 = vmatpush.bf16.msrb.mxu3 %v3238_v0  ;;  %v4284_v60 = vld [vmem:[#allocation5 + $0x14] sm:$0xf0]  ;;  %v3137_v61 = vld [vmem:[#allocation5 + $0x108] sm:$0xf]  ;;  %v3158_v63 = vor.u32 %v4318_v53, %v3155_v54  ;;  %v4282_v0 = vld [vmem:[#allocation5 + $0xc] sm:$0xf] }
  0x4f   :  { %611 = vmatpush.bf16.msrb.mxu0 %v3090_v6  ;;  %v4316_v62 = vld [vmem:[#allocation5 + $0x114] sm:$0xf0]  ;;  %v3011_v1 = vld [vmem:[#allocation5 + $0x18] sm:$0xf0]  ;;  %v4314_v2 = vld [vmem:[#allocation5 + $0x10c] sm:$0xf]  ;;  %v3010_v6 = vor.u32 %v4284_v60, %v3009_v57 }
  0x50   :  { %625 = vmatpush.bf16.msrb.mxu1 %v3218_v7  ;;  %v3139_v3 = vld [vmem:[#allocation5 + $0x118] sm:$0xf0]  ;;  %v3313_v4 = vld [vmem:[#allocation8 + $0x70] sm:$0xf]  ;;  %v3138_v9 = vor.u32 %v4316_v62, %v3137_v61  ;;  %v3014_v10 = vor.u32 %v4282_v0, %v3011_v1  ;;  %v4359_v13 = vld [vmem:[#allocation8 + $0x74] sm:$0xf] }
  0x51   :  { %639 = vmatpush.bf16.msrb.mxu2 %v3094_v8  ;;  %v4360_v5 = vld [vmem:[#allocation8 + $0x74] sm:$0xf0]  ;;  %v3377_v7 = vld [vmem:[#allocation8 + $0xf0] sm:$0xf]  ;;  %v3142_v11 = vor.u32 %v4314_v2, %v3139_v3  ;;  %v3315_v14 = vld [vmem:[#allocation8 + $0x78] sm:$0xf0] }
  0x52   :  { %653 = vmatpush.bf16.msrb.mxu3 %v3222_v12  ;;  %v4376_v8 = vld [vmem:[#allocation8 + $0xf4] sm:$0xf0]  ;;  %v3314_v12 = vor.u32 %v4360_v5, %v3313_v4  ;;  %v4375_v15 = vld [vmem:[#allocation8 + $0xf4] sm:$0xf]  ;;  %v3379_v17 = vld [vmem:[#allocation8 + $0xf8] sm:$0xf0]  ;;  %v3318_v22 = vor.u32 %v4359_v13, %v3315_v14 }
  0x53   :  { %612 = vmatpush.bf16.msrb.mxu0 %v3074_v18  ;;  %v3378_v16 = vor.u32 %v4376_v8, %v3377_v7  ;;  %v3305_v18 = vld [vmem:[#allocation8 + $0x60] sm:$0xf]  ;;  %v4374_v21 = vld [vmem:[#allocation8 + $0xe4] sm:$0xf0]  ;;  %v3382_v23 = vor.u32 %v4375_v15, %v3379_v17  ;;  %v4357_v25 = vld [vmem:[#allocation8 + $0x64] sm:$0xf] }
  0x54   :  { %626 = vmatpush.bf16.msrb.mxu1 %v3202_v19  ;;  %v4358_v19 = vld [vmem:[#allocation8 + $0x64] sm:$0xf0]  ;;  %v3307_v26 = vld [vmem:[#allocation8 + $0x68] sm:$0xf0]  ;;  %v4373_v28 = vld [vmem:[#allocation8 + $0xe4] sm:$0xf] }
  0x55   :  { %640 = vmatpush.bf16.msrb.mxu2 %v3078_v20  ;;  %v3369_v20 = vld [vmem:[#allocation8 + $0xe0] sm:$0xf]  ;;  %v3371_v29 = vld [vmem:[#allocation8 + $0xe8] sm:$0xf0]  ;;  %v4356_v33 = vld [vmem:[#allocation8 + $0x54] sm:$0xf0] }
  0x56   :  { %654 = vmatpush.bf16.msrb.mxu3 %v3206_v24  ;;  %v3306_v24 = vor.u32 %v4358_v19, %v3305_v18  ;;  %v3370_v27 = vor.u32 %v4374_v21, %v3369_v20  ;;  %v3361_v34 = vld [vmem:[#allocation8 + $0xd0] sm:$0xf]  ;;  %v669_v35 = vld [vmem:[#allocation7] sm:$0xf]  ;;  %v4372_v37 = vld [vmem:[#allocation8 + $0xd4] sm:$0xf0] }
  0x57   :  { %613 = vmatpush.bf16.msrb.mxu0 %v3058_v30  ;;  %v3310_v30 = vor.u32 %v4357_v25, %v3307_v26  ;;  %v4355_v38 = vld [vmem:[#allocation8 + $0x54] sm:$0xf]  ;;  %671 = vst [vmem:[#allocation1] ss:$9 sm:$0xff] %v669_v35  ;;  %v3362_v39 = vor.u32 %v4372_v37, %v3361_v34  ;;  %v3363_v41 = vld [vmem:[#allocation8 + $0xd8] sm:$0xf0] }
  0x58   :  { %627 = vmatpush.bf16.msrb.mxu1 %v3186_v31  ;;  %v3374_v31 = vor.u32 %v4373_v28, %v3371_v29  ;;  %v4371_v40 = vld [vmem:[#allocation8 + $0xd4] sm:$0xf]  ;;  %v3353_v45 = vld [vmem:[#allocation8 + $0xc0] sm:$0xf]  ;;  %v4370_v47 = vld [vmem:[#allocation8 + $0xc4] sm:$0xf0] }
  0x59   :  { %641 = vmatpush.bf16.msrb.mxu2 %v3062_v32  ;;  %v3297_v32 = vld [vmem:[#allocation8 + $0x50] sm:$0xf]  ;;  %v3291_v49 = vld [vmem:[#allocation8 + $0x48] sm:$0xf0]  ;;  %v3354_v50 = vor.u32 %v4370_v47, %v3353_v45  ;;  %v4369_v53 = vld [vmem:[#allocation8 + $0xc4] sm:$0xf] }
  0x5a   :  { %655 = vmatpush.bf16.msrb.mxu3 %v3190_v36  ;;  %v3298_v36 = vor.u32 %v4356_v33, %v3297_v32  ;;  %v3355_v54 = vld [vmem:[#allocation8 + $0xc8] sm:$0xf0]  ;;  %v3281_v57 = vld [vmem:[#allocation8 + $0x30] sm:$0xf]  ;;  %v4368_v61 = vld [vmem:[#allocation8 + $0xb4] sm:$0xf0] }
  0x5b   :  { %614 = vmatpush.bf16.msrb.mxu0 %v3042_v42  ;;  %v3366_v42 = vor.u32 %v4371_v40, %v3363_v41  ;;  %v3283_v0 = vld [vmem:[#allocation8 + $0x38] sm:$0xf0]  ;;  %v4367_v1 = vld [vmem:[#allocation8 + $0xb4] sm:$0xf]  ;;  %v3273_v5 = vld [vmem:[#allocation8 + $0x20] sm:$0xf] }
  0x5c   :  { %628 = vmatpush.bf16.msrb.mxu1 %v3170_v43  ;;  %v3289_v43 = vld [vmem:[#allocation8 + $0x40] sm:$0xf]  ;;  %v3347_v3 = vld [vmem:[#allocation8 + $0xb8] sm:$0xf0]  ;;  %v4365_v13 = vld [vmem:[#allocation8 + $0xa4] sm:$0xf] }
  0x5d   :  { %642 = vmatpush.bf16.msrb.mxu2 %v3046_v44  ;;  %v4354_v44 = vld [vmem:[#allocation8 + $0x44] sm:$0xf0]  ;;  %v3350_v4 = vor.u32 %v4367_v1, %v3347_v3  ;;  %v3337_v8 = vld [vmem:[#allocation8 + $0xa0] sm:$0xf]  ;;  %v3339_v14 = vld [vmem:[#allocation8 + $0xa8] sm:$0xf0] }
  0x5e   :  { %656 = vmatpush.bf16.msrb.mxu3 %v3174_v48  ;;  %v3290_v46 = vor.u32 %v4354_v44, %v3289_v43  ;;  %v4353_v48 = vld [vmem:[#allocation8 + $0x44] sm:$0xf]  ;;  %v3265_v17 = vld [vmem:[#allocation8 + $0x10] sm:$0xf]  ;;  %v4348_v18 = vld [vmem:[#allocation8 + $0x14] sm:$0xf0] }
  0x5f   :  { %615 = vmatpush.bf16.msrb.mxu0 %v3026_v56  ;;  %v3294_v52 = vor.u32 %v4353_v48, %v3291_v49  ;;  %v3358_v56 = vor.u32 %v4369_v53, %v3355_v54  ;;  %v3329_v19 = vld [vmem:[#allocation8 + $0x90] sm:$0xf]  ;;  %v3266_v20 = vor.u32 %v4348_v18, %v3265_v17  ;;  %v4364_v21 = vld [vmem:[#allocation8 + $0x94] sm:$0xf0]  ;;  %v4363_v26 = vld [vmem:[#allocation8 + $0x94] sm:$0xf] }
  0x60   :  { %629 = vmatpush.bf16.msrb.mxu1 %v3154_v58  ;;  %v4352_v58 = vld [vmem:[#allocation8 + $0x34] sm:$0xf0]  ;;  %v3257_v29 = vld [vmem:[#allocation8] sm:$0xf]  ;;  %v4362_v33 = vld [vmem:[#allocation8 + $0x84] sm:$0xf0] }
  0x61   :  { %643 = vmatpush.bf16.msrb.mxu2 %v3030_v59  ;;  %v3345_v59 = vld [vmem:[#allocation8 + $0xb0] sm:$0xf]  ;;  %v3282_v60 = vor.u32 %v4352_v58, %v3281_v57  ;;  %v4345_v34 = vld [vmem:[#allocation8 + $0x4] sm:$0xf]  ;;  %v3259_v35 = vld [vmem:[#allocation8 + $0x8] sm:$0xf0] }
  0x62   :  { %657 = vmatpush.bf16.msrb.mxu3 %v3158_v63  ;;  %v3346_v62 = vor.u32 %v4368_v61, %v3345_v59  ;;  %v4351_v63 = vld [vmem:[#allocation8 + $0x34] sm:$0xf]  ;;  %v3323_v40 = vld [vmem:[#allocation8 + $0x88] sm:$0xf0]  ;;  %v4408_v44 = vld [vmem:[#allocation11 + $0xf4] sm:$0xf0] }
  0x63   :  { %616 = vmatpush.bf16.msrb.mxu0 %v3010_v6  ;;  %v3286_v2 = vor.u32 %v4351_v63, %v3283_v0  ;;  %v4350_v6 = vld [vmem:[#allocation8 + $0x24] sm:$0xf0]  ;;  %v673_v37 = vld [vmem:[#allocation1 + $0x9] sm:$0xff]  ;;  %v4391_v47 = vld [vmem:[#allocation11 + $0x74] sm:$0xf]  ;;  %s2974_s17 = sshll.u32 %s5060_s10, 4  ;;  %s2975_s17 = int_to_ptr.hbm [resolvable:$true] %s2974_s17 }
  0x64   :  { %630 = vmatpush.bf16.msrb.mxu1 %v3138_v9  ;;  %v3274_v7 = vor.u32 %v4350_v6, %v3273_v5  ;;  %v4366_v9 = vld [vmem:[#allocation8 + $0xa4] sm:$0xf0]  ;;  %v3505_v43 = vld [vmem:[#allocation11 + $0xf0] sm:$0xf]  ;;  %v3443_v48 = vld [vmem:[#allocation11 + $0x78] sm:$0xf0] }
  0x65   :  { %644 = vmatpush.bf16.msrb.mxu2 %v3014_v10  ;;  %v4349_v10 = vld [vmem:[#allocation8 + $0x24] sm:$0xf]  ;;  %v4407_v49 = vld [vmem:[#allocation11 + $0xf4] sm:$0xf]  ;;  %v4389_v63 = vld [vmem:[#allocation11 + $0x64] sm:$0xf] }
  0x66   :  { %658 = vmatpush.bf16.msrb.mxu3 %v3142_v11  ;;  %617 = vmatmul.bf16.vlgmr.msrb.gmra.mxu0 %v4952_v51  ;;  %v3338_v11 = vor.u32 %v4366_v9, %v3337_v8  ;;  %v3433_v54 = vld [vmem:[#allocation11 + $0x60] sm:$0xf]  ;;  %v3435_v0 = vld [vmem:[#allocation11 + $0x68] sm:$0xf0]  ;;  %v4388_v8 = vld [vmem:[#allocation11 + $0x54] sm:$0xf0] }
  0x67   :  { %934 = vmatpush.bf16.msra.mxu0 %v3314_v12  ;;  %631 = vmatmul.bf16.vlgmr.msrb.gmra.mxu1 %v4954_v55  ;;  %v3275_v12 = vld [vmem:[#allocation8 + $0x28] sm:$0xf0]  ;;  %v3497_v57 = vld [vmem:[#allocation11 + $0xe0] sm:$0xf]  ;;  %v3438_v3 = vor.u32 %v4389_v63, %v3435_v0  ;;  %v3499_v5 = vld [vmem:[#allocation11 + $0xe8] sm:$0xf0] }
  0x68   :  { %948 = vmatpush.bf16.msra.mxu1 %v3378_v16  ;;  %645 = vmatmul.bf16.vlgmr.msrb.gmra.mxu2 %v4952_v51  ;;  %v3299_v51 = vld [vmem:[#allocation8 + $0x58] sm:$0xf0]  ;;  %v3278_v15 = vor.u32 %v4349_v10, %v3275_v12  ;;  %v3342_v16 = vor.u32 %v4365_v13, %v3339_v14  ;;  %v3489_v9 = vld [vmem:[#allocation11 + $0xd0] sm:$0xf]  ;;  %v4387_v17 = vld [vmem:[#allocation11 + $0x54] sm:$0xf] }
  0x69   :  { %659 = vmatmul.bf16.vlgmr.msrb.gmra.mxu3 %v4954_v55  ;;  %962 = vmatpush.bf16.msra.mxu2 %v3318_v22  ;;  %v3302_v55 = vor.u32 %v4355_v38, %v3299_v51  ;;  %v4347_v22 = vld [vmem:[#allocation8 + $0x14] sm:$0xf]  ;;  %v4361_v51 = vld [vmem:[#allocation8 + $0x84] sm:$0xf]  ;;  %v4404_v13 = vld [vmem:[#allocation11 + $0xd4] sm:$0xf0] }
  0x6a   :  { %976 = vmatpush.bf16.msra.mxu3 %v3382_v23  ;;  %v3267_v23 = vld [vmem:[#allocation8 + $0x18] sm:$0xf0]  ;;  %v3326_v41 = vor.u32 %v4361_v51, %v3323_v40  ;;  %v3427_v18 = vld [vmem:[#allocation11 + $0x58] sm:$0xf0] }
  0x6b   :  { %935 = vmatpush.bf16.msra.mxu0 %v3306_v24  ;;  %v3330_v24 = vor.u32 %v4364_v21, %v3329_v19  ;;  %v3270_v25 = vor.u32 %v4347_v22, %v3267_v23  ;;  %v4403_v19 = vld [vmem:[#allocation11 + $0xd4] sm:$0xf]  ;;  %v3430_v21 = vor.u32 %v4387_v17, %v3427_v18  ;;  %v3491_v22 = vld [vmem:[#allocation11 + $0xd8] sm:$0xf0] }
  0x6c   :  { %949 = vmatpush.bf16.msra.mxu1 %v3370_v27  ;;  %v3331_v27 = vld [vmem:[#allocation8 + $0x98] sm:$0xf0] }
  0x6d   :  { %963 = vmatpush.bf16.msra.mxu2 %v3310_v30  ;;  %v3334_v28 = vor.u32 %v4363_v26, %v3331_v27  ;;  %v4346_v30 = vld [vmem:[#allocation8 + $0x4] sm:$0xf0]  ;;  %v4386_v26 = vld [vmem:[#allocation11 + $0x44] sm:$0xf0] }
  0x6e   :  { %977 = vmatpush.bf16.msra.mxu3 %v3374_v31  ;;  %v3321_v31 = vld [vmem:[#allocation8 + $0x80] sm:$0xf]  ;;  %v3258_v32 = vor.u32 %v4346_v30, %v3257_v29  ;;  %v4402_v29 = vld [vmem:[#allocation11 + $0xc4] sm:$0xf0]  ;;  %v4385_v30 = vld [vmem:[#allocation11 + $0x44] sm:$0xf] }
  0x6f   :  { %936 = vmatpush.bf16.msra.mxu0 %v3298_v36  ;;  %v672_v36 = vld [vmem:[#allocation1] sm:$0xff]  ;;  %v3322_v38 = vor.u32 %v4362_v33, %v3321_v31 }
  0x70   :  { %950 = vmatpush.bf16.msra.mxu1 %v3362_v39  ;;  %v3262_v39 = vor.u32 %v4345_v34, %v3259_v35  ;;  %v676_v59 = vpack.i.b16 %v672_v36, %v672_v36 }
  0x71   :  { %964 = vmatpush.bf16.msra.mxu2 %v3302_v55  ;;  %v3441_v55 = vld [vmem:[#allocation11 + $0x70] sm:$0xf] }
  0x72   :  { %978 = vmatpush.bf16.msra.mxu3 %v3366_v42  ;;  %v4392_v42 = vld [vmem:[#allocation11 + $0x74] sm:$0xf0]  ;;  %v4964_v10 = vperm.slane %v676_v59, 0 }
  0x73   :  { %937 = vmatpush.bf16.msra.mxu0 %v3290_v46  ;;  %v3442_v45 = vor.u32 %v4392_v42, %v3441_v55  ;;  %v3506_v46 = vor.u32 %v4408_v44, %v3505_v43  ;;  %v3409_v42 = vld [vmem:[#allocation11 + $0x30] sm:$0xf]  ;;  %v4384_v43 = vld [vmem:[#allocation11 + $0x34] sm:$0xf0] }
  0x74   :  { %951 = vmatpush.bf16.msra.mxu1 %v3354_v50  ;;  %v3446_v50 = vor.u32 %v4391_v47, %v3443_v48  ;;  %v3473_v44 = vld [vmem:[#allocation11 + $0xb0] sm:$0xf]  ;;  %v4400_v47 = vld [vmem:[#allocation11 + $0xb4] sm:$0xf0]  ;;  %v4383_v48 = vld [vmem:[#allocation11 + $0x34] sm:$0xf] }
  0x75   :  { %965 = vmatpush.bf16.msra.mxu2 %v3294_v52  ;;  %v3507_v52 = vld [vmem:[#allocation11 + $0xf8] sm:$0xf0]  ;;  %v4974_v59 = vld [vmem:[#allocation1 + $0x12] sm:$0xff] }
  0x76   :  { %979 = vmatpush.bf16.msra.mxu3 %v3358_v56  ;;  %v3510_v53 = vor.u32 %v4407_v49, %v3507_v52  ;;  %v4390_v56 = vld [vmem:[#allocation11 + $0x64] sm:$0xf0]  ;;  %v3411_v49 = vld [vmem:[#allocation11 + $0x38] sm:$0xf0] }
  0x77   :  { %938 = vmatpush.bf16.msra.mxu0 %v3282_v60  ;;  %v679_v60 = vpack.i.b16 %v673_v37, %v673_v37  ;;  %v3434_v61 = vor.u32 %v4390_v56, %v3433_v54  ;;  %v3419_v37 = vld [vmem:[#allocation11 + $0x48] sm:$0xf0]  ;;  %v3474_v54 = vor.u32 %v4400_v47, %v3473_v44  ;;  %v4399_v56 = vld [vmem:[#allocation11 + $0xb4] sm:$0xf]  ;;  %v4393_v44 = vld [vmem:[#allocation11 + $0x84] sm:$0xf] }
  0x78   :  { %952 = vmatpush.bf16.msra.mxu1 %v3346_v62  ;;  %v4406_v62 = vld [vmem:[#allocation11 + $0xe4] sm:$0xf0]  ;;  %v3422_v51 = vor.u32 %v4385_v30, %v3419_v37 }
  0x79   :  { %966 = vmatpush.bf16.msra.mxu2 %v3286_v2  ;;  %v3498_v2 = vor.u32 %v4406_v62, %v3497_v57  ;;  %v3475_v57 = vld [vmem:[#allocation11 + $0xb8] sm:$0xf0] }
  0x7a   :  { %980 = vmatpush.bf16.msra.mxu3 %v3350_v4  ;;  %v4405_v4 = vld [vmem:[#allocation11 + $0xe4] sm:$0xf]  ;;  %v3478_v62 = vor.u32 %v4399_v56, %v3475_v57  ;;  %v3633_v56 = vld [vmem:[#allocation8 + $0x1f0] sm:$0xf] }
  0x7b   :  { %939 = vmatpush.bf16.msra.mxu0 %v3274_v7  ;;  %v3502_v6 = vor.u32 %v4405_v4, %v3499_v5  ;;  %v3425_v7 = vld [vmem:[#allocation11 + $0x50] sm:$0xf]  ;;  %v4382_v4 = vld [vmem:[#allocation11 + $0x24] sm:$0xf0]  ;;  %v3465_v5 = vld [vmem:[#allocation11 + $0xa0] sm:$0xf] }
  0x7c   :  { %953 = vmatpush.bf16.msra.mxu1 %v3338_v11  ;;  %v4966_v11 = vperm.slane %v679_v60, 0  ;;  %v3426_v12 = vor.u32 %v4388_v8, %v3425_v7  ;;  %v4976_v60 = vld [vmem:[#allocation1 + $0x1b] sm:$0xff]  ;;  %v4398_v8 = vld [vmem:[#allocation11 + $0xa4] sm:$0xf0] }
  0x7d   :  { %967 = vmatpush.bf16.msra.mxu2 %v3278_v15 }
  0x7e   :  { %981 = vmatpush.bf16.msra.mxu3 %v3342_v16  ;;  %v3490_v16 = vor.u32 %v4404_v13, %v3489_v9  ;;  %v697_v33 = vunpack.c.l.bf16 %v4966_v11  ;;  %v4381_v9 = vld [vmem:[#allocation11 + $0x24] sm:$0xf]  ;;  %v3466_v13 = vor.u32 %v4398_v8, %v3465_v5  ;;  %v682_v5 = vpack.i.b16 %v4974_v59, %v4974_v59 }
  0x7f   :  { %940 = vmatpush.bf16.msra.mxu0 %v3266_v20 }
  0x80   :  { %954 = vmatpush.bf16.msra.mxu1 %v3330_v24  ;;  %v3494_v24 = vor.u32 %v4403_v19, %v3491_v22  ;;  %v3393_v19 = vld [vmem:[#allocation11 + $0x10] sm:$0xf] }
  0x81   :  { %968 = vmatpush.bf16.msra.mxu2 %v3270_v25  ;;  %v3417_v25 = vld [vmem:[#allocation11 + $0x40] sm:$0xf] }
  0x82   :  { %982 = vmatpush.bf16.msra.mxu3 %v3334_v28  ;;  %v3418_v27 = vor.u32 %v4386_v26, %v3417_v25  ;;  %v3481_v28 = vld [vmem:[#allocation11 + $0xc0] sm:$0xf]  ;;  %v4396_v25 = vld [vmem:[#allocation11 + $0x94] sm:$0xf0]  ;;  %v4379_v26 = vld [vmem:[#allocation11 + $0x14] sm:$0xf] }
  0x83   :  { %941 = vmatpush.bf16.msra.mxu0 %v3258_v32  ;;  %v696_v32 = vunpack.c.l.bf16 %v4964_v10  ;;  %v3482_v36 = vor.u32 %v4402_v29, %v3481_v28  ;;  %v4394_v10 = vld [vmem:[#allocation11 + $0x84] sm:$0xf0] }
  0x84   :  { %955 = vmatpush.bf16.msra.mxu1 %v3322_v38  ;;  %v4401_v38 = vld [vmem:[#allocation11 + $0xc4] sm:$0xf] }
  0x85   :  { %969 = vmatpush.bf16.msra.mxu2 %v3262_v39  ;;  %v3483_v39 = vld [vmem:[#allocation11 + $0xc8] sm:$0xf0] }
  0x86   :  { %983 = vmatpush.bf16.msra.mxu3 %v3326_v41  ;;  %v3486_v40 = vor.u32 %v4401_v38, %v3483_v39  ;;  %v3385_v39 = vld [vmem:[#allocation11] sm:$0xf] }
  0x87   :  { %1227 = vmatpush.bf16.msrb.mxu0 %v3442_v45 }
  0x88   :  { %1241 = vmatpush.bf16.msrb.mxu1 %v3506_v46  ;;  %v3410_v46 = vor.u32 %v4384_v43, %v3409_v42  ;;  %v3387_v43 = vld [vmem:[#allocation11 + $0x8] sm:$0xf0] }
  0x89   :  { %1255 = vmatpush.bf16.msrb.mxu2 %v3446_v50 }
  0x8a   :  { %1269 = vmatpush.bf16.msrb.mxu3 %v3510_v53 }
  0x8b   :  { %1228 = vmatpush.bf16.msrb.mxu0 %v3434_v61  ;;  %v3414_v61 = vor.u32 %v4383_v48, %v3411_v49 }
  0x8c   :  { %1242 = vmatpush.bf16.msrb.mxu1 %v3498_v2  ;;  %v992_v2 = vld [vmem:[#allocation10] sm:$0x5] }
  0x8d   :  { %1256 = vmatpush.bf16.msrb.mxu2 %v3438_v3  ;;  %v3401_v3 = vld [vmem:[#allocation11 + $0x20] sm:$0xf]  ;;  %994 = vst [vmem:[#allocation1] ss:$4 sm:$0xff] %v992_v2 }
  0x8e   :  { %1270 = vmatpush.bf16.msrb.mxu3 %v3502_v6  ;;  %v3402_v7 = vor.u32 %v4382_v4, %v3401_v3  ;;  %v4439_v3 = vld [vmem:[#allocation8 + $0x1f4] sm:$0xf]  ;;  %v3635_v4 = vld [vmem:[#allocation8 + $0x1f8] sm:$0xf0] }
  0x8f   :  { %1229 = vmatpush.bf16.msrb.mxu0 %v3426_v12  ;;  %v3403_v12 = vld [vmem:[#allocation11 + $0x28] sm:$0xf0] }
  0x90   :  { %1243 = vmatpush.bf16.msrb.mxu1 %v3490_v16  ;;  %v3467_v16 = vld [vmem:[#allocation11 + $0xa8] sm:$0xf0] }
  0x91   :  { %1257 = vmatpush.bf16.msrb.mxu2 %v3430_v21  ;;  %v3457_v21 = vld [vmem:[#allocation11 + $0x90] sm:$0xf] }
  0x92   :  { %1271 = vmatpush.bf16.msrb.mxu3 %v3494_v24  ;;  %v3458_v30 = vor.u32 %v4396_v25, %v3457_v21 }
  0x93   :  { %1230 = vmatpush.bf16.msrb.mxu0 %v3418_v27  ;;  %v3395_v27 = vld [vmem:[#allocation11 + $0x18] sm:$0xf0] }
  0x94   :  { %1244 = vmatpush.bf16.msrb.mxu1 %v3482_v36 }
  0x95   :  { %1258 = vmatpush.bf16.msrb.mxu2 %v3422_v51  ;;  %v4378_v51 = vld [vmem:[#allocation11 + $0x4] sm:$0xf0] }
  0x96   :  { %1272 = vmatpush.bf16.msrb.mxu3 %v3486_v40  ;;  %v3386_v40 = vor.u32 %v4378_v51, %v3385_v39 }
  0x97   :  { %1231 = vmatpush.bf16.msrb.mxu0 %v3410_v46 }
  0x98   :  { %1245 = vmatpush.bf16.msrb.mxu1 %v3474_v54  ;;  %v4424_v54 = vld [vmem:[#allocation8 + $0x174] sm:$0xf0] }
  0x99   :  { %1259 = vmatpush.bf16.msrb.mxu2 %v3414_v61  ;;  %v4423_v61 = vld [vmem:[#allocation8 + $0x174] sm:$0xf] }
  0x9a   :  { %1273 = vmatpush.bf16.msrb.mxu3 %v3478_v62  ;;  %v3571_v62 = vld [vmem:[#allocation8 + $0x178] sm:$0xf0] }
  0x9b   :  { %1232 = vmatpush.bf16.msrb.mxu0 %v3402_v7  ;;  %v3574_v2 = vor.u32 %v4423_v61, %v3571_v62  ;;  %v3638_v7 = vor.u32 %v4439_v3, %v3635_v4  ;;  %v4419_v62 = vld [vmem:[#allocation8 + $0x154] sm:$0xf]  ;;  %v3545_v4 = vld [vmem:[#allocation8 + $0x140] sm:$0xf] }
  0x9c   :  { %1246 = vmatpush.bf16.msrb.mxu1 %v3466_v13 }
  0xa0   :  { %1247 = vmatpush.bf16.msrb.mxu1 %v3458_v30 }
  0xc3   :  { %v562_v58 = vpop.f32.mrf.mxu0 }
  0xc4   :  { %v576_v1 = vpop.f32.mrf.mxu1 }
  0xc5   :  { %v577_v14 = vadd.f32 %v576_v1, %v562_v58 }
  0xcb   :  { %v590_v15 = vpop.f32.mrf.mxu2  ;;  %v564_v34 = vpop.f32.mrf.mxu0 }
  0xcc   :  { %v604_v20 = vpop.f32.mrf.mxu3  ;;  %v578_v35 = vpop.f32.mrf.mxu1 }
  0xcd   :  { %v605_v23 = vadd.f32 %v604_v20, %v590_v15  ;;  %v579_v45 = vadd.f32 %v578_v35, %v564_v34  ;;  %v4397_v15 = vld [vmem:[#allocation11 + $0xa4] sm:$0xf]  ;;  %v4380_v20 = vld [vmem:[#allocation11 + $0x14] sm:$0xf0]  ;;  %v4395_v34 = vld [vmem:[#allocation11 + $0x94] sm:$0xf] }
  0xce   :  { %v3394_v24 = vor.u32 %v4380_v20, %v3393_v19  ;;  %v3459_v35 = vld [vmem:[#allocation11 + $0x98] sm:$0xf0] }
  0xcf   :  { %v665_v31 = vpack.c.bf16 %v605_v23, %v577_v14  ;;  %v3406_v14 = vor.u32 %v4381_v9, %v3403_v12  ;;  %v3470_v23 = vor.u32 %v4397_v15, %v3467_v16  ;;  %v3462_v36 = vor.u32 %v4395_v34, %v3459_v35 }
  0xd0   :  { %1233 = vmatpush.bf16.msrb.mxu0 %v3394_v24 }
  0xd1   :  { %v688_v55 = vunpack.c.l.bf16 %v665_v31  ;;  %v689_v41 = vunpack.c.h.bf16 %v665_v31  ;;  %1260 = vmatpush.bf16.msrb.mxu2 %v3406_v14  ;;  %v3398_v31 = vor.u32 %v4379_v26, %v3395_v27  ;;  %1274 = vmatpush.bf16.msrb.mxu3 %v3470_v23  ;;  %v684_v14 = vperm.slane %v682_v5, 0  ;;  %v4418_v5 = vld [vmem:[#allocation8 + $0x144] sm:$0xf0] }
  0xd3   :  { %v700_v50 = vadd.f32 %v696_v32, %v688_v55  ;;  %v701_v52 = vadd.f32 %v697_v33, %v689_v41  ;;  %v592_v53 = vpop.f32.mrf.mxu2  ;;  %v3449_v55 = vld [vmem:[#allocation11 + $0x80] sm:$0xf]  ;;  %v698_v19 = vunpack.c.l.bf16 %v684_v14 }
  0xd4   :  { %v606_v58 = vpop.f32.mrf.mxu3  ;;  %v3450_v42 = vor.u32 %v4394_v10, %v3449_v55  ;;  %1234 = vmatpush.bf16.msrb.mxu0 %v3386_v40 }
  0xd5   :  { %v720_v63 = vmax.f32 %v700_v50, 0.0  ;;  %v721_v0 = vmax.f32 %v701_v52, 0.0  ;;  %v607_v1 = vadd.f32 %v606_v58, %v592_v53  ;;  %1261 = vmatpush.bf16.msrb.mxu2 %v3398_v31  ;;  %1275 = vmatpush.bf16.msrb.mxu3 %v3462_v36  ;;  %v3569_v53 = vld [vmem:[#allocation8 + $0x170] sm:$0xf]  ;;  %v4440_v58 = vld [vmem:[#allocation8 + $0x1f4] sm:$0xf0] }
  0xd6   :  { %1248 = vmatpush.bf16.msrb.mxu1 %v3450_v42  ;;  %v3570_v57 = vor.u32 %v4424_v54, %v3569_v53  ;;  %v3625_v42 = vld [vmem:[#allocation8 + $0x1e0] sm:$0xf]  ;;  %v4420_v54 = vld [vmem:[#allocation8 + $0x154] sm:$0xf0] }
  0xd7   :  { %v667_v6 = vpack.c.bf16 %v607_v1, %v579_v45  ;;  %v728_v22 = vpack.c.bf16 %v721_v0, %v720_v63  ;;  %v3451_v45 = vld [vmem:[#allocation11 + $0x88] sm:$0xf0]  ;;  %v3634_v1 = vor.u32 %v4440_v58, %v3633_v56 }
  0xd8   :  { %v3454_v47 = vor.u32 %v4393_v44, %v3451_v45  ;;  %v4438_v44 = vld [vmem:[#allocation8 + $0x1e4] sm:$0xf0]  ;;  %v4421_v45 = vld [vmem:[#allocation8 + $0x164] sm:$0xf]  ;;  %v3617_v56 = vld [vmem:[#allocation8 + $0x1d0] sm:$0xf] }
  0xd9   :  { %v692_v17 = vunpack.c.l.bf16 %v667_v6  ;;  %v693_v18 = vunpack.c.h.bf16 %v667_v6  ;;  %v766_v11 = vunpack.c.l.b16 %v728_v22  ;;  %v685_v6 = vpack.i.b16 %v4976_v60, %v4976_v60 }
  0xda   :  { %1276 = vmatpush.bf16.msrb.mxu3 %v3454_v47  ;;  %v3626_v47 = vor.u32 %v4438_v44, %v3625_v42  ;;  %v4411_v44 = vld [vmem:[#allocation8 + $0x114] sm:$0xf] }
  0xdb   :  { %v704_v28 = vadd.f32 %v696_v32, %v692_v17  ;;  %v705_v29 = vadd.f32 %v697_v33, %v693_v18  ;;  %v4377_v32 = vld [vmem:[#allocation11 + $0x4] sm:$0xf]  ;;  %v767_v33 = vunpack.c.h.b16 %v728_v22  ;;  %v687_v15 = vperm.slane %v685_v6, 0  ;;  %v3609_v6 = vld [vmem:[#allocation8 + $0x1c0] sm:$0xf] }
  0xdc   :  { %v3390_v46 = vor.u32 %v4377_v32, %v3387_v43 }
  0xdd   :  { %v724_v37 = vmax.f32 %v704_v28, 0.0  ;;  %v725_v38 = vmax.f32 %v705_v29, 0.0  ;;  %v699_v20 = vunpack.c.l.bf16 %v687_v15  ;;  %v4433_v15 = vld [vmem:[#allocation8 + $0x1c4] sm:$0xf] }
  0xde   :  { %1262 = vmatpush.bf16.msrb.mxu2 %v3390_v46  ;;  %v3563_v46 = vld [vmem:[#allocation8 + $0x168] sm:$0xf0] }
  0xdf   :  { %v730_v41 = vpack.c.bf16 %v725_v38, %v724_v37 }
  0xe1   :  { %v768_v48 = vunpack.c.l.b16 %v730_v41  ;;  %v769_v49 = vunpack.c.h.b16 %v730_v41 }
  0xe3   :  { %v770_v50 = vpack.c.b16 %v768_v48, %v766_v11  ;;  %v771_v52 = vpack.c.b16 %v769_v49, %v767_v33  ;;  %v618_v63 = vpop.f32.mrf.mxu0  ;;  %v3561_v11 = vld [vmem:[#allocation8 + $0x160] sm:$0xf]  ;;  %v4422_v33 = vld [vmem:[#allocation8 + $0x164] sm:$0xf0]  ;;  %v3566_v48 = vor.u32 %v4421_v45, %v3563_v46  ;;  %v4437_v49 = vld [vmem:[#allocation8 + $0x1e4] sm:$0xf] }
  0xe4   :  { %v632_v0 = vpop.f32.mrf.mxu1  ;;  %v3562_v43 = vor.u32 %v4422_v33, %v3561_v11  ;;  %v4412_v11 = vld [vmem:[#allocation8 + $0x114] sm:$0xf0]  ;;  %v3585_v33 = vld [vmem:[#allocation8 + $0x190] sm:$0xf]  ;;  %v3523_v45 = vld [vmem:[#allocation8 + $0x118] sm:$0xf0] }
  0xe5   :  { %942 = vmatmul.bf16.vlgmr.msra.gmra.mxu0 %v770_v50  ;;  %956 = vmatmul.bf16.vlgmr.msra.gmra.mxu1 %v771_v52  ;;  %v633_v8 = vadd.f32 %v632_v0, %v618_v63  ;;  %v3555_v63 = vld [vmem:[#allocation8 + $0x158] sm:$0xf0]  ;;  %v4435_v0 = vld [vmem:[#allocation8 + $0x1d4] sm:$0xf] }
  0xe6   :  { %970 = vmatmul.bf16.vlgmr.msra.gmra.mxu2 %v770_v50  ;;  %984 = vmatmul.bf16.vlgmr.msra.gmra.mxu3 %v771_v52  ;;  %v3627_v50 = vld [vmem:[#allocation8 + $0x1e8] sm:$0xf0]  ;;  %v3553_v52 = vld [vmem:[#allocation8 + $0x150] sm:$0xf] }
  0xe7   :  { %1511 = vmatpush.bf16.msra.mxu0 %v3570_v57  ;;  %1525 = vmatpush.bf16.msra.mxu1 %v3634_v1  ;;  %v3630_v53 = vor.u32 %v4437_v49, %v3627_v50  ;;  %v4436_v57 = vld [vmem:[#allocation8 + $0x1d4] sm:$0xf0]  ;;  %v3554_v58 = vor.u32 %v4420_v54, %v3553_v52  ;;  %v3558_v1 = vor.u32 %v4419_v62, %v3555_v63  ;;  %v3587_v49 = vld [vmem:[#allocation8 + $0x198] sm:$0xf0]  ;;  %v3513_v52 = vld [vmem:[#allocation8 + $0x100] sm:$0xf] }
  0xe8   :  { %1539 = vmatpush.bf16.msra.mxu2 %v3574_v2  ;;  %1553 = vmatpush.bf16.msra.mxu3 %v3638_v7  ;;  %v3618_v61 = vor.u32 %v4436_v57, %v3617_v56  ;;  %v3619_v2 = vld [vmem:[#allocation8 + $0x1d8] sm:$0xf0]  ;;  %v3546_v7 = vor.u32 %v4418_v5, %v3545_v4  ;;  %v3577_v54 = vld [vmem:[#allocation8 + $0x180] sm:$0xf]  ;;  %v4426_v57 = vld [vmem:[#allocation8 + $0x184] sm:$0xf0] }
  0xe9   :  { %v3622_v3 = vor.u32 %v4435_v0, %v3619_v2  ;;  %v3578_v62 = vor.u32 %v4426_v57, %v3577_v54  ;;  %v4425_v0 = vld [vmem:[#allocation8 + $0x184] sm:$0xf]  ;;  %v3697_v2 = vld [vmem:[#allocation11 + $0x170] sm:$0xf]  ;;  %v4456_v4 = vld [vmem:[#allocation11 + $0x174] sm:$0xf0] }
  0xea   :  { %v3761_v5 = vld [vmem:[#allocation11 + $0x1f0] sm:$0xf]  ;;  %v3739_v54 = vld [vmem:[#allocation11 + $0x1c8] sm:$0xf0] }
  0xeb   :  { %v646_v9 = vpop.f32.mrf.mxu2  ;;  %v620_v59 = vpop.f32.mrf.mxu0  ;;  %1512 = vmatpush.bf16.msra.mxu0 %v3562_v43  ;;  %1526 = vmatpush.bf16.msra.mxu1 %v3626_v47  ;;  %v4428_v43 = vld [vmem:[#allocation8 + $0x194] sm:$0xf0]  ;;  %v3526_v47 = vor.u32 %v4411_v44, %v3523_v45  ;;  %v4449_v44 = vld [vmem:[#allocation11 + $0x144] sm:$0xf]  ;;  %v3675_v45 = vld [vmem:[#allocation11 + $0x148] sm:$0xf0] }
  0xec   :  { %v660_v12 = vpop.f32.mrf.mxu3  ;;  %v634_v21 = vpop.f32.mrf.mxu1  ;;  %1540 = vmatpush.bf16.msra.mxu2 %v3566_v48  ;;  %1554 = vmatpush.bf16.msra.mxu3 %v3630_v53  ;;  %v3586_v46 = vor.u32 %v4428_v43, %v3585_v33  ;;  %v4427_v48 = vld [vmem:[#allocation8 + $0x194] sm:$0xf]  ;;  %v4410_v53 = vld [vmem:[#allocation8 + $0x104] sm:$0xf0]  ;;  %v3737_v33 = vld [vmem:[#allocation11 + $0x1c0] sm:$0xf] }
  0xed   :  { %v661_v13 = vadd.f32 %v660_v12, %v646_v9  ;;  %v635_v25 = vadd.f32 %v634_v21, %v620_v59  ;;  %v4417_v9 = vld [vmem:[#allocation8 + $0x144] sm:$0xf]  ;;  %v3547_v12 = vld [vmem:[#allocation8 + $0x148] sm:$0xf0]  ;;  %v3601_v59 = vld [vmem:[#allocation8 + $0x1b0] sm:$0xf]  ;;  %v3590_v50 = vor.u32 %v4427_v48, %v3587_v49  ;;  %v3514_v56 = vor.u32 %v4410_v53, %v3513_v52 }
  0xee   :  { %v3550_v14 = vor.u32 %v4417_v9, %v3547_v12  ;;  %v4432_v21 = vld [vmem:[#allocation8 + $0x1b4] sm:$0xf0]  ;;  %v3699_v12 = vld [vmem:[#allocation11 + $0x178] sm:$0xf0]  ;;  %v4466_v43 = vld [vmem:[#allocation11 + $0x1c4] sm:$0xf0]  ;;  %v3678_v52 = vor.u32 %v4449_v44, %v3675_v45 }
  0xef   :  { %v666_v16 = vpack.c.bf16 %v661_v13, %v633_v8  ;;  %1513 = vmatpush.bf16.msra.mxu0 %v3554_v58  ;;  %1527 = vmatpush.bf16.msra.mxu1 %v3618_v61  ;;  %v4434_v8 = vld [vmem:[#allocation8 + $0x1c4] sm:$0xf0]  ;;  %v4409_v58 = vld [vmem:[#allocation8 + $0x104] sm:$0xf]  ;;  %v3515_v61 = vld [vmem:[#allocation8 + $0x108] sm:$0xf0] }
  0xf0   :  { %1541 = vmatpush.bf16.msra.mxu2 %v3558_v1  ;;  %1555 = vmatpush.bf16.msra.mxu3 %v3622_v3  ;;  %v3610_v13 = vor.u32 %v4434_v8, %v3609_v6  ;;  %v3518_v63 = vor.u32 %v4409_v58, %v3515_v61  ;;  %v3579_v1 = vld [vmem:[#allocation8 + $0x188] sm:$0xf0]  ;;  %v4472_v6 = vld [vmem:[#allocation11 + $0x1f4] sm:$0xf0]  ;;  %v4455_v9 = vld [vmem:[#allocation11 + $0x174] sm:$0xf] }
  0xf1   :  { %v690_v17 = vunpack.c.l.bf16 %v666_v16  ;;  %v691_v18 = vunpack.c.h.bf16 %v666_v16  ;;  %v3611_v16 = vld [vmem:[#allocation8 + $0x1c8] sm:$0xf0]  ;;  %v3582_v3 = vor.u32 %v4425_v0, %v3579_v1  ;;  %v3762_v8 = vor.u32 %v4472_v6, %v3761_v5  ;;  %v4465_v53 = vld [vmem:[#allocation11 + $0x1c4] sm:$0xf]  ;;  %v3665_v61 = vld [vmem:[#allocation11 + $0x130] sm:$0xf] }
  0xf2   :  { %v3742_v58 = vor.u32 %v4465_v53, %v3739_v54  ;;  %v3729_v0 = vld [vmem:[#allocation11 + $0x1b0] sm:$0xf]  ;;  %v4464_v1 = vld [vmem:[#allocation11 + $0x1b4] sm:$0xf0]  ;;  %v4441_v53 = vld [vmem:[#allocation11 + $0x104] sm:$0xf] }
  0xf3   :  { %v648_v22 = vpop.f32.mrf.mxu2  ;;  %v702_v23 = vadd.f32 %v698_v19, %v690_v17  ;;  %v703_v24 = vadd.f32 %v699_v20, %v691_v18  ;;  %1514 = vmatpush.bf16.msra.mxu0 %v3546_v7  ;;  %v3614_v17 = vor.u32 %v4433_v15, %v3611_v16  ;;  %v3537_v18 = vld [vmem:[#allocation8 + $0x130] sm:$0xf]  ;;  %1528 = vmatpush.bf16.msra.mxu1 %v3610_v13  ;;  %v4471_v13 = vld [vmem:[#allocation11 + $0x1f4] sm:$0xf]  ;;  %v3763_v15 = vld [vmem:[#allocation11 + $0x1f8] sm:$0xf0] }
  0xf4   :  { %v662_v60 = vpop.f32.mrf.mxu3  ;;  %1542 = vmatpush.bf16.msra.mxu2 %v3550_v14  ;;  %v3698_v7 = vor.u32 %v4456_v4, %v3697_v2  ;;  %v3702_v14 = vor.u32 %v4455_v9, %v3699_v12  ;;  %v3689_v16 = vld [vmem:[#allocation11 + $0x160] sm:$0xf]  ;;  %v4447_v2 = vld [vmem:[#allocation11 + $0x134] sm:$0xf]  ;;  %v3731_v4 = vld [vmem:[#allocation11 + $0x1b8] sm:$0xf0] }
  0xf5   :  { %v663_v26 = vadd.f32 %v662_v60, %v648_v22  ;;  %v722_v28 = vmax.f32 %v702_v23, 0.0  ;;  %v723_v29 = vmax.f32 %v703_v24, 0.0  ;;  %v4415_v22 = vld [vmem:[#allocation8 + $0x134] sm:$0xf]  ;;  %1556 = vmatpush.bf16.msra.mxu3 %v3614_v17  ;;  %v3602_v60 = vor.u32 %v4432_v21, %v3601_v59  ;;  %v3539_v23 = vld [vmem:[#allocation8 + $0x138] sm:$0xf0] }
  0xf6   :  { %v4431_v24 = vld [vmem:[#allocation8 + $0x1b4] sm:$0xf]  ;;  %v4454_v17 = vld [vmem:[#allocation11 + $0x164] sm:$0xf0]  ;;  %v4453_v21 = vld [vmem:[#allocation11 + $0x164] sm:$0xf] }
  0xf7   :  { %v668_v27 = vpack.c.bf16 %v663_v26, %v635_v25  ;;  %v729_v36 = vpack.c.bf16 %v723_v29, %v722_v28  ;;  %v3603_v25 = vld [vmem:[#allocation8 + $0x1b8] sm:$0xf0]  ;;  %v4986_v26 = vld.sshfl [vmem:[#allocation1] sm:$0xff pattern:$0x73625140]  ;;  %v3542_v28 = vor.u32 %v4415_v22, %v3539_v23  ;;  %1529 = vmatpush.bf16.msra.mxu1 %v3602_v60 }
  0xf8   :  { %v3606_v29 = vor.u32 %v4431_v24, %v3603_v25  ;;  %v4470_v59 = vld [vmem:[#allocation11 + $0x1e4] sm:$0xf0]  ;;  %v3691_v60 = vld [vmem:[#allocation11 + $0x168] sm:$0xf0]  ;;  %v4469_v23 = vld [vmem:[#allocation11 + $0x1e4] sm:$0xf]  ;;  %v997_v48 = vpack.i.b16 %v4986_v26, %v4986_v26  ;;  %v3730_v26 = vor.u32 %v4464_v1, %v3729_v0 }
  0xf9   :  { %v694_v30 = vunpack.c.l.bf16 %v668_v27  ;;  %v695_v31 = vunpack.c.h.bf16 %v668_v27  ;;  %v1059_v51 = vunpack.c.l.b16 %v729_v36  ;;  %v1060_v55 = vunpack.c.h.b16 %v729_v36  ;;  %v4988_v27 = vld.sshfl [vmem:[#allocation1 + $0x8] sm:$0xff pattern:$0x73625140]  ;;  %1543 = vmatpush.bf16.msra.mxu2 %v3542_v28  ;;  %v3657_v12 = vld [vmem:[#allocation11 + $0x120] sm:$0xf] }
  0xfa   :  { %1557 = vmatpush.bf16.msra.mxu3 %v3606_v29  ;;  %v3755_v24 = vld [vmem:[#allocation11 + $0x1e8] sm:$0xf0]  ;;  %v3694_v25 = vor.u32 %v4453_v21, %v3691_v60  ;;  %v3681_v29 = vld [vmem:[#allocation11 + $0x150] sm:$0xf]  ;;  %v1000_v49 = vpack.i.b16 %v4988_v27, %v4988_v27  ;;  %v4463_v27 = vld [vmem:[#allocation11 + $0x1b4] sm:$0xf] }
  0xfb   :  { %v706_v34 = vadd.f32 %v698_v19, %v694_v30  ;;  %v707_v35 = vadd.f32 %v699_v20, %v695_v31  ;;  %v4416_v19 = vld [vmem:[#allocation8 + $0x134] sm:$0xf0]  ;;  %v3529_v30 = vld [vmem:[#allocation8 + $0x120] sm:$0xf]  ;;  %v4414_v31 = vld [vmem:[#allocation8 + $0x124] sm:$0xf0]  ;;  %v3758_v28 = vor.u32 %v4469_v23, %v3755_v24 }
  0xfc   :  { %v3538_v20 = vor.u32 %v4416_v19, %v3537_v18  ;;  %v3530_v36 = vor.u32 %v4414_v31, %v3529_v30  ;;  %v3766_v18 = vor.u32 %v4471_v13, %v3763_v15  ;;  %v3690_v19 = vor.u32 %v4454_v17, %v3689_v16  ;;  %v4452_v30 = vld [vmem:[#allocation11 + $0x154] sm:$0xf0]  ;;  %v3745_v31 = vld [vmem:[#allocation11 + $0x1d0] sm:$0xf]  ;;  %v4446_v13 = vld [vmem:[#allocation11 + $0x124] sm:$0xf0] }
  0xfd   :  { %v726_v37 = vmax.f32 %v706_v34, 0.0  ;;  %v727_v38 = vmax.f32 %v707_v35, 0.0  ;;  %v3593_v34 = vld [vmem:[#allocation8 + $0x1a0] sm:$0xf]  ;;  %v1285_v35 = vld [vmem:[%s5056_s6] sm:$0x5]  ;;  %v3658_v17 = vor.u32 %v4446_v13, %v3657_v12 }
  0xfe   :  { %1515 = vmatpush.bf16.msra.mxu0 %v3538_v20  ;;  %1287 = vst [vmem:[#allocation1] ss:$4 sm:$0xff] %v1285_v35  ;;  %v3753_v20 = vld [vmem:[#allocation11 + $0x1e0] sm:$0xf]  ;;  %v4451_v35 = vld [vmem:[#allocation11 + $0x154] sm:$0xf] }
  0xff   :  { %v731_v39 = vpack.c.bf16 %v727_v38, %v726_v37  ;;  %v4430_v37 = vld [vmem:[#allocation8 + $0x1a4] sm:$0xf0]  ;;  %v4413_v38 = vld [vmem:[#allocation8 + $0x124] sm:$0xf]  ;;  %v3754_v22 = vor.u32 %v4470_v59, %v3753_v20  ;;  %v999_v5 = vperm.slane %v997_v48, 0  ;;  %v1002_v6 = vperm.slane %v1000_v49, 0 }
 0x100   :  { %v3659_v20 = vld [vmem:[#allocation11 + $0x128] sm:$0xf0]  ;;  %v4461_v21 = vld [vmem:[#allocation11 + $0x1a4] sm:$0xf]  ;;  %v4442_v48 = vld [vmem:[#allocation11 + $0x104] sm:$0xf0] }
 0x101   :  { %v1061_v40 = vunpack.c.l.b16 %v731_v39  ;;  %v1062_v10 = vunpack.c.h.b16 %v731_v39  ;;  %v3594_v39 = vor.u32 %v4430_v37, %v3593_v34  ;;  %v4468_v34 = vld [vmem:[#allocation11 + $0x1d4] sm:$0xf0]  ;;  %v3682_v37 = vor.u32 %v4452_v30, %v3681_v29  ;;  %v3705_v49 = vld [vmem:[#allocation11 + $0x180] sm:$0xf]  ;;  %v3643_v54 = vld [vmem:[#allocation11 + $0x108] sm:$0xf0] }
 0x102   :  { %1516 = vmatpush.bf16.msra.mxu0 %v3530_v36  ;;  %v3683_v36 = vld [vmem:[#allocation11 + $0x158] sm:$0xf0]  ;;  %v1007_v60 = vunpack.c.l.bf16 %v999_v5  ;;  %v1008_v23 = vunpack.c.l.bf16 %v1002_v6  ;;  %v3825_v5 = vld [vmem:[#allocation8 + $0x270] sm:$0xf]  ;;  %v4488_v6 = vld [vmem:[#allocation8 + $0x274] sm:$0xf0] }
 0x103   :  { %v1063_v32 = vpack.c.b16 %v1061_v40, %v1059_v51  ;;  %v1064_v41 = vpack.c.b16 %v1062_v10, %v1060_v55  ;;  %v3531_v51 = vld [vmem:[#allocation8 + $0x128] sm:$0xf0]  ;;  %v4429_v40 = vld [vmem:[#allocation8 + $0x1a4] sm:$0xf]  ;;  %1530 = vmatpush.bf16.msra.mxu1 %v3594_v39  ;;  %v3747_v39 = vld [vmem:[#allocation11 + $0x1d8] sm:$0xf0] }
 0x104   :  { %v3534_v55 = vor.u32 %v4413_v38, %v3531_v51  ;;  %v3595_v10 = vld [vmem:[#allocation8 + $0x1a8] sm:$0xf0]  ;;  %v4467_v38 = vld [vmem:[#allocation11 + $0x1d4] sm:$0xf]  ;;  %v3746_v51 = vor.u32 %v4468_v34, %v3745_v31  ;;  %v4487_v12 = vld [vmem:[#allocation8 + $0x274] sm:$0xf] }
 0x105   :  { %1235 = vmatmul.bf16.vlgmr.msrb.gmra.mxu0 %v1063_v32  ;;  %1249 = vmatmul.bf16.vlgmr.msrb.gmra.mxu1 %v1064_v41  ;;  %v3827_v13 = vld [vmem:[#allocation8 + $0x278] sm:$0xf0] }
 0x106   :  { %1263 = vmatmul.bf16.vlgmr.msrb.gmra.mxu2 %v1063_v32  ;;  %1277 = vmatmul.bf16.vlgmr.msrb.gmra.mxu3 %v1064_v41  ;;  %v3598_v32 = vor.u32 %v4429_v40, %v3595_v10  ;;  %v3521_v41 = vld [vmem:[#allocation8 + $0x110] sm:$0xf]  ;;  %v3686_v40 = vor.u32 %v4451_v35, %v3683_v36  ;;  %v3649_v36 = vld [vmem:[#allocation11 + $0x110] sm:$0xf] }
 0x107   :  { %1544 = vmatpush.bf16.msra.mxu2 %v3534_v55  ;;  %v3522_v42 = vor.u32 %v4412_v11, %v3521_v41  ;;  %1531 = vmatpush.bf16.msra.mxu1 %v3586_v46  ;;  %v3673_v41 = vld [vmem:[#allocation11 + $0x140] sm:$0xf]  ;;  %v4450_v11 = vld [vmem:[#allocation11 + $0x144] sm:$0xf0] }
 0x108   :  { %1558 = vmatpush.bf16.msra.mxu3 %v3598_v32  ;;  %v3750_v32 = vor.u32 %v4467_v38, %v3747_v39  ;;  %v3713_v39 = vld [vmem:[#allocation11 + $0x190] sm:$0xf] }
 0x109   :  { %1517 = vmatpush.bf16.msra.mxu0 %v3522_v42  ;;  %v3674_v42 = vor.u32 %v4450_v11, %v3673_v41  ;;  %v4459_v41 = vld [vmem:[#allocation11 + $0x194] sm:$0xf]  ;;  %v3715_v11 = vld [vmem:[#allocation11 + $0x198] sm:$0xf0] }
 0x10b   :  { %1545 = vmatpush.bf16.msra.mxu2 %v3526_v47  ;;  %1532 = vmatpush.bf16.msra.mxu1 %v3578_v62  ;;  %v4448_v62 = vld [vmem:[#allocation11 + $0x134] sm:$0xf0] }
 0x10c   :  { %1559 = vmatpush.bf16.msra.mxu3 %v3590_v50  ;;  %v3738_v50 = vor.u32 %v4466_v43, %v3737_v33 }
 0x10d   :  { %1518 = vmatpush.bf16.msra.mxu0 %v3514_v56 }
 0x10f   :  { %1546 = vmatpush.bf16.msra.mxu2 %v3518_v63  ;;  %1811 = vmatpush.bf16.msrb.mxu1 %v3762_v8  ;;  %v3666_v63 = vor.u32 %v4448_v62, %v3665_v61  ;;  %v3734_v8 = vor.u32 %v4463_v27, %v3731_v4  ;;  %v4457_v61 = vld [vmem:[#allocation11 + $0x184] sm:$0xf]  ;;  %v3707_v62 = vld [vmem:[#allocation11 + $0x188] sm:$0xf0] }
 0x110   :  { %1560 = vmatpush.bf16.msra.mxu3 %v3582_v3  ;;  %v3667_v3 = vld [vmem:[#allocation11 + $0x138] sm:$0xf0]  ;;  %v3710_v0 = vor.u32 %v4457_v61, %v3707_v62  ;;  %v4485_v61 = vld [vmem:[#allocation8 + $0x264] sm:$0xf]  ;;  %v3819_v62 = vld [vmem:[#allocation8 + $0x268] sm:$0xf0] }
 0x111   :  { %1797 = vmatpush.bf16.msrb.mxu0 %v3698_v7  ;;  %v3670_v7 = vor.u32 %v4447_v2, %v3667_v3 }
 0x113   :  { %1825 = vmatpush.bf16.msrb.mxu2 %v3702_v14  ;;  %1812 = vmatpush.bf16.msrb.mxu1 %v3754_v22  ;;  %v3721_v14 = vld [vmem:[#allocation11 + $0x1a0] sm:$0xf]  ;;  %v3723_v22 = vld [vmem:[#allocation11 + $0x1a8] sm:$0xf0] }
 0x114   :  { %1839 = vmatpush.bf16.msrb.mxu3 %v3766_v18  ;;  %v4462_v18 = vld [vmem:[#allocation11 + $0x1a4] sm:$0xf0]  ;;  %v3726_v29 = vor.u32 %v4461_v21, %v3723_v22 }
 0x115   :  { %1798 = vmatpush.bf16.msrb.mxu0 %v3690_v19  ;;  %v4445_v19 = vld [vmem:[#allocation11 + $0x124] sm:$0xf]  ;;  %v3722_v59 = vor.u32 %v4462_v18, %v3721_v14  ;;  %v1289_v21 = vld.sshfl [vmem:[#allocation1 + $0x8] sm:$0xff pattern:$0x73625140] }
 0x117   :  { %1826 = vmatpush.bf16.msrb.mxu2 %v3694_v25  ;;  %1813 = vmatpush.bf16.msrb.mxu1 %v3746_v51  ;;  %v4460_v51 = vld [vmem:[#allocation11 + $0x194] sm:$0xf0] }
 0x118   :  { %1840 = vmatpush.bf16.msrb.mxu3 %v3758_v28  ;;  %v3662_v28 = vor.u32 %v4445_v19, %v3659_v20 }
 0x119   :  { %1799 = vmatpush.bf16.msrb.mxu0 %v3682_v37  ;;  %v4444_v37 = vld [vmem:[#allocation11 + $0x114] sm:$0xf0] }
 0x11a   :  { %v3650_v38 = vor.u32 %v4444_v37, %v3649_v36 }
 0x11b   :  { %1827 = vmatpush.bf16.msrb.mxu2 %v3686_v40  ;;  %1814 = vmatpush.bf16.msrb.mxu1 %v3738_v50  ;;  %v4443_v40 = vld [vmem:[#allocation11 + $0x114] sm:$0xf] }
 0x11c   :  { %1841 = vmatpush.bf16.msrb.mxu3 %v3750_v32  ;;  %v3651_v32 = vld [vmem:[#allocation11 + $0x118] sm:$0xf0] }
 0x11d   :  { %1800 = vmatpush.bf16.msrb.mxu0 %v3674_v42  ;;  %v3654_v33 = vor.u32 %v4443_v40, %v3651_v32  ;;  %v3718_v42 = vor.u32 %v4459_v41, %v3715_v11 }
 0x11f   :  { %1828 = vmatpush.bf16.msrb.mxu2 %v3678_v52  ;;  %1815 = vmatpush.bf16.msrb.mxu1 %v3730_v26  ;;  %v4458_v52 = vld [vmem:[#allocation11 + $0x184] sm:$0xf0] }
 0x120   :  { %1842 = vmatpush.bf16.msrb.mxu3 %v3742_v58  ;;  %v3706_v58 = vor.u32 %v4458_v52, %v3705_v49  ;;  %v3817_v52 = vld [vmem:[#allocation8 + $0x260] sm:$0xf] }
 0x121   :  { %1801 = vmatpush.bf16.msrb.mxu0 %v3666_v63  ;;  %v3646_v63 = vor.u32 %v4441_v53, %v3643_v54  ;;  %v4486_v53 = vld [vmem:[#allocation8 + $0x264] sm:$0xf0]  ;;  %v3881_v54 = vld [vmem:[#allocation8 + $0x2e0] sm:$0xf] }
 0x123   :  { %1829 = vmatpush.bf16.msrb.mxu2 %v3670_v7  ;;  %1816 = vmatpush.bf16.msrb.mxu1 %v3722_v59  ;;  %v3889_v7 = vld [vmem:[#allocation8 + $0x2f0] sm:$0xf]  ;;  %v1288_v59 = vld.sshfl [vmem:[#allocation1] sm:$0xff pattern:$0x73625140] }
 0x124   :  { %1843 = vmatpush.bf16.msrb.mxu3 %v3734_v8  ;;  %v3826_v8 = vor.u32 %v4488_v6, %v3825_v5  ;;  %v4500_v5 = vld [vmem:[#allocation8 + $0x2d4] sm:$0xf0] }
 0x125   :  { %1802 = vmatpush.bf16.msrb.mxu0 %v3658_v17  ;;  %v3891_v17 = vld [vmem:[#allocation8 + $0x2f8] sm:$0xf0] }
 0x127   :  { %1830 = vmatpush.bf16.msrb.mxu2 %v3662_v28 }
 0x128   :  { %1844 = vmatpush.bf16.msrb.mxu3 %v3726_v29 }
 0x129   :  { %1803 = vmatpush.bf16.msrb.mxu0 %v3650_v38 }
 0x12b   :  { %1831 = vmatpush.bf16.msrb.mxu2 %v3654_v33 }
 0x12c   :  { %1845 = vmatpush.bf16.msrb.mxu3 %v3718_v42 }
 0x12f   :  { %1832 = vmatpush.bf16.msrb.mxu2 %v3646_v63 }
 0x130   :  { %1846 = vmatpush.bf16.msrb.mxu3 %v3710_v0  ;;  %v3822_v0 = vor.u32 %v4485_v61, %v3819_v62  ;;  %v4491_v62 = vld [vmem:[#allocation8 + $0x294] sm:$0xf] }
 0x162   :  { %v943_v55 = vpop.f32.mrf.mxu0  ;;  %v957_v10 = vpop.f32.mrf.mxu1 }
 0x163   :  { %v958_v56 = vadd.f32 %v957_v10, %v943_v55  ;;  %v3714_v10 = vor.u32 %v4460_v51, %v3713_v39 }
 0x165   :  { %1817 = vmatpush.bf16.msrb.mxu1 %v3714_v10 }
 0x169   :  { %v971_v46 = vpop.f32.mrf.mxu2  ;;  %v985_v47 = vpop.f32.mrf.mxu3  ;;  %1818 = vmatpush.bf16.msrb.mxu1 %v3706_v58  ;;  %v4502_v58 = vld [vmem:[#allocation8 + $0x2e4] sm:$0xf0] }
 0x16a   :  { %v986_v57 = vadd.f32 %v985_v47, %v971_v46  ;;  %v945_v15 = vpop.f32.mrf.mxu0  ;;  %v959_v16 = vpop.f32.mrf.mxu1  ;;  %v3641_v47 = vld [vmem:[#allocation11 + $0x100] sm:$0xf]  ;;  %v3882_v63 = vor.u32 %v4502_v58, %v3881_v54  ;;  %v4492_v54 = vld [vmem:[#allocation8 + $0x294] sm:$0xf0] }
 0x16b   :  { %v960_v34 = vadd.f32 %v959_v16, %v945_v15  ;;  %v3642_v50 = vor.u32 %v4442_v48, %v3641_v47  ;;  %v3830_v15 = vor.u32 %v4487_v12, %v3827_v13  ;;  %v4503_v16 = vld [vmem:[#allocation8 + $0x2f4] sm:$0xf] }
 0x16c   :  { %v990_v9 = vpack.c.bf16 %v986_v57, %v958_v56  ;;  %v3894_v18 = vor.u32 %v4503_v16, %v3891_v17  ;;  %v4499_v12 = vld [vmem:[#allocation8 + $0x2d4] sm:$0xf]  ;;  %v3801_v16 = vld [vmem:[#allocation8 + $0x240] sm:$0xf]  ;;  %v4482_v17 = vld [vmem:[#allocation8 + $0x244] sm:$0xf0] }
 0x16d   :  { %1804 = vmatpush.bf16.msrb.mxu0 %v3642_v50 }
 0x16e   :  { %v1003_v30 = vunpack.c.l.bf16 %v990_v9  ;;  %v1004_v31 = vunpack.c.h.bf16 %v990_v9  ;;  %v4504_v9 = vld [vmem:[#allocation8 + $0x2f4] sm:$0xf0] }
 0x16f   :  { %v3890_v14 = vor.u32 %v4504_v9, %v3889_v7  ;;  %v3811_v9 = vld [vmem:[#allocation8 + $0x258] sm:$0xf0] }
 0x170   :  { %v1009_v43 = vadd.f32 %v1007_v60, %v1003_v30  ;;  %v1010_v44 = vadd.f32 %v1008_v23, %v1004_v31 }
 0x171   :  { %v973_v24 = vpop.f32.mrf.mxu2  ;;  %v987_v25 = vpop.f32.mrf.mxu3 }
 0x172   :  { %v988_v35 = vadd.f32 %v987_v25, %v973_v24  ;;  %v1019_v1 = vmax.f32 %v1009_v43, 0.0  ;;  %v1020_v2 = vmax.f32 %v1010_v44, 0.0  ;;  %v1293_v24 = vpack.i.b16 %v1289_v21, %v1289_v21  ;;  %v3803_v21 = vld [vmem:[#allocation8 + $0x248] sm:$0xf0] }
 0x174   :  { %v991_v55 = vpack.c.bf16 %v988_v35, %v960_v34  ;;  %v1295_v30 = vperm.slane %v1293_v24, 0  ;;  %v3867_v24 = vld [vmem:[#allocation8 + $0x2c8] sm:$0xf0] }
 0x176   :  { %v1005_v45 = vunpack.c.l.bf16 %v991_v55  ;;  %v1006_v46 = vunpack.c.h.bf16 %v991_v55  ;;  %v1301_v37 = vunpack.c.l.bf16 %v1295_v30 }
 0x178   :  { %v1011_v56 = vadd.f32 %v1007_v60, %v1005_v45  ;;  %v1012_v57 = vadd.f32 %v1008_v23, %v1006_v46  ;;  %v1290_v23 = vpack.i.b16 %v1288_v59, %v1288_v59  ;;  %v4481_v59 = vld [vmem:[#allocation8 + $0x244] sm:$0xf] }
 0x17a   :  { %v1021_v26 = vmax.f32 %v1011_v56, 0.0  ;;  %v1022_v3 = vmax.f32 %v1012_v57, 0.0  ;;  %v1292_v29 = vperm.slane %v1290_v23, 0  ;;  %v1569_v56 = vld [vmem:[#allocation10] sm:$0x5]  ;;  %v3818_v57 = vor.u32 %v4486_v53, %v3817_v52 }
 0x17b   :  { %1571 = vst [vmem:[#allocation1] ss:$4 sm:$0xff] %v1569_v56  ;;  %v4497_v23 = vld [vmem:[#allocation8 + $0x2c4] sm:$0xf]  ;;  %v3841_v52 = vld [vmem:[#allocation8 + $0x290] sm:$0xf] }
 0x17c   :  { %v1023_v27 = vpack.c.bf16 %v1021_v26, %v1019_v1  ;;  %v1024_v4 = vpack.c.bf16 %v1022_v3, %v1020_v2  ;;  %v1300_v36 = vunpack.c.l.bf16 %v1292_v29  ;;  %v4501_v1 = vld [vmem:[#allocation8 + $0x2e4] sm:$0xf]  ;;  %v3883_v2 = vld [vmem:[#allocation8 + $0x2e8] sm:$0xf0]  ;;  %v3809_v26 = vld [vmem:[#allocation8 + $0x250] sm:$0xf]  ;;  %v3842_v58 = vor.u32 %v4492_v54, %v3841_v52 }
 0x17d   :  { %v3886_v3 = vor.u32 %v4501_v1, %v3883_v2  ;;  %v4480_v29 = vld [vmem:[#allocation8 + $0x234] sm:$0xf0]  ;;  %v4475_v56 = vld [vmem:[#allocation8 + $0x214] sm:$0xf]  ;;  %v3769_v2 = vld [vmem:[#allocation8 + $0x200] sm:$0xf] }
 0x17e   :  { %1519 = vmatmul.bf16.vlgmr.msra.gmra.mxu0 %v1023_v27  ;;  %1533 = vmatmul.bf16.vlgmr.msra.gmra.mxu1 %v1024_v4  ;;  %v4514_v54 = vld [vmem:[#allocation11 + $0x244] sm:$0xf0] }
 0x17f   :  { %1547 = vmatmul.bf16.vlgmr.msra.gmra.mxu2 %v1023_v27  ;;  %1561 = vmatmul.bf16.vlgmr.msra.gmra.mxu3 %v1024_v4  ;;  %v4484_v27 = vld [vmem:[#allocation8 + $0x254] sm:$0xf0]  ;;  %v3873_v4 = vld [vmem:[#allocation8 + $0x2d0] sm:$0xf] }
 0x180   :  { %2083 = vmatpush.bf16.msra.mxu0 %v3826_v8  ;;  %2097 = vmatpush.bf16.msra.mxu1 %v3890_v14  ;;  %v3810_v6 = vor.u32 %v4484_v27, %v3809_v26  ;;  %v3874_v7 = vor.u32 %v4500_v5, %v3873_v4  ;;  %v4483_v8 = vld [vmem:[#allocation8 + $0x254] sm:$0xf]  ;;  %v3875_v14 = vld [vmem:[#allocation8 + $0x2d8] sm:$0xf0]  ;;  %v4474_v26 = vld [vmem:[#allocation8 + $0x204] sm:$0xf0] }
 0x181   :  { %2111 = vmatpush.bf16.msra.mxu2 %v3830_v15  ;;  %2125 = vmatpush.bf16.msra.mxu3 %v3894_v18  ;;  %v3814_v13 = vor.u32 %v4483_v8, %v3811_v9  ;;  %v3878_v15 = vor.u32 %v4499_v12, %v3875_v14  ;;  %v3865_v18 = vld [vmem:[#allocation8 + $0x2c0] sm:$0xf]  ;;  %v3770_v27 = vor.u32 %v4474_v26, %v3769_v2  ;;  %v4490_v4 = vld [vmem:[#allocation8 + $0x284] sm:$0xf0]  ;;  %v4473_v5 = vld [vmem:[#allocation8 + $0x204] sm:$0xf] }
 0x182   :  { %v1236_v19 = vpop.f32.mrf.mxu0  ;;  %v1250_v20 = vpop.f32.mrf.mxu1  ;;  %v4489_v9 = vld [vmem:[#allocation8 + $0x284] sm:$0xf]  ;;  %v3835_v12 = vld [vmem:[#allocation8 + $0x288] sm:$0xf0]  ;;  %v4529_v26 = vld [vmem:[#allocation11 + $0x2c4] sm:$0xf] }
 0x183   :  { %v1251_v28 = vadd.f32 %v1250_v20, %v1236_v19  ;;  %v3802_v19 = vor.u32 %v4482_v17, %v3801_v16  ;;  %v4498_v20 = vld [vmem:[#allocation8 + $0x2c4] sm:$0xf0]  ;;  %v3838_v14 = vor.u32 %v4489_v9, %v3835_v12  ;;  %v4017_v16 = vld [vmem:[#allocation11 + $0x2f0] sm:$0xf]  ;;  %v4536_v17 = vld [vmem:[#allocation11 + $0x2f4] sm:$0xf0] }
 0x184   :  { %2084 = vmatpush.bf16.msra.mxu0 %v3818_v57  ;;  %2098 = vmatpush.bf16.msra.mxu1 %v3882_v63  ;;  %v3779_v57 = vld [vmem:[#allocation8 + $0x218] sm:$0xf0] }
 0x185   :  { %2112 = vmatpush.bf16.msra.mxu2 %v3822_v0  ;;  %2126 = vmatpush.bf16.msra.mxu3 %v3886_v3  ;;  %v3782_v61 = vor.u32 %v4475_v56, %v3779_v57  ;;  %v3843_v63 = vld [vmem:[#allocation8 + $0x298] sm:$0xf0]  ;;  %v3833_v3 = vld [vmem:[#allocation8 + $0x280] sm:$0xf]  ;;  %v3993_v56 = vld [vmem:[#allocation11 + $0x2c0] sm:$0xf] }
 0x186   :  { %v3846_v1 = vor.u32 %v4491_v62, %v3843_v63  ;;  %v3931_v62 = vld [vmem:[#allocation11 + $0x248] sm:$0xf0] }
 0x188   :  { %2085 = vmatpush.bf16.msra.mxu0 %v3810_v6  ;;  %2099 = vmatpush.bf16.msra.mxu1 %v3874_v7  ;;  %v3771_v6 = vld [vmem:[#allocation8 + $0x208] sm:$0xf0]  ;;  %v3834_v7 = vor.u32 %v4490_v4, %v3833_v3  ;;  %v3995_v3 = vld [vmem:[#allocation11 + $0x2c8] sm:$0xf0] }
 0x189   :  { %v1264_v22 = vpop.f32.mrf.mxu2  ;;  %v1278_v60 = vpop.f32.mrf.mxu3  ;;  %2113 = vmatpush.bf16.msra.mxu2 %v3814_v13  ;;  %2127 = vmatpush.bf16.msra.mxu3 %v3878_v15  ;;  %v3774_v8 = vor.u32 %v4473_v5, %v3771_v6  ;;  %v3953_v13 = vld [vmem:[#allocation11 + $0x270] sm:$0xf]  ;;  %v4520_v15 = vld [vmem:[#allocation11 + $0x274] sm:$0xf0]  ;;  %v3998_v6 = vor.u32 %v4529_v26, %v3995_v3  ;;  %v3961_v26 = vld [vmem:[#allocation11 + $0x280] sm:$0xf] }
 0x18a   :  { %v1279_v25 = vadd.f32 %v1278_v60, %v1264_v22  ;;  %v1238_v34 = vpop.f32.mrf.mxu0  ;;  %v1252_v35 = vpop.f32.mrf.mxu1  ;;  %v3866_v22 = vor.u32 %v4498_v20, %v3865_v18  ;;  %v3806_v60 = vor.u32 %v4481_v59, %v3803_v21  ;;  %v3954_v18 = vor.u32 %v4520_v15, %v3953_v13  ;;  %v4519_v20 = vld [vmem:[#allocation11 + $0x274] sm:$0xf]  ;;  %v3955_v59 = vld [vmem:[#allocation11 + $0x278] sm:$0xf0]  ;;  %v4528_v15 = vld [vmem:[#allocation11 + $0x2b4] sm:$0xf0] }
 0x18b   :  { %v1253_v55 = vadd.f32 %v1252_v35, %v1238_v34  ;;  %v4496_v34 = vld [vmem:[#allocation8 + $0x2b4] sm:$0xf0]  ;;  %v4479_v35 = vld [vmem:[#allocation8 + $0x234] sm:$0xf] }
 0x18c   :  { %v1283_v31 = vpack.c.bf16 %v1279_v25, %v1251_v28  ;;  %2086 = vmatpush.bf16.msra.mxu0 %v3802_v19  ;;  %v3870_v25 = vor.u32 %v4497_v23, %v3867_v24  ;;  %2100 = vmatpush.bf16.msra.mxu1 %v3866_v22  ;;  %v3793_v28 = vld [vmem:[#allocation8 + $0x230] sm:$0xf]  ;;  %v4018_v19 = vor.u32 %v4536_v17, %v4017_v16  ;;  %v4535_v21 = vld [vmem:[#allocation11 + $0x2f4] sm:$0xf]  ;;  %v3945_v23 = vld [vmem:[#allocation11 + $0x260] sm:$0xf] }
 0x18d   :  { %2114 = vmatpush.bf16.msra.mxu2 %v3806_v60  ;;  %v3794_v30 = vor.u32 %v4480_v29, %v3793_v28  ;;  %v3958_v22 = vor.u32 %v4519_v20, %v3955_v59  ;;  %v4019_v60 = vld [vmem:[#allocation11 + $0x2f8] sm:$0xf0]  ;;  %v4518_v24 = vld [vmem:[#allocation11 + $0x264] sm:$0xf0]  ;;  %v4009_v29 = vld [vmem:[#allocation11 + $0x2e0] sm:$0xf] }
 0x18e   :  { %v1296_v51 = vunpack.c.l.bf16 %v1283_v31  ;;  %v1297_v40 = vunpack.c.h.bf16 %v1283_v31  ;;  %2128 = vmatpush.bf16.msra.mxu3 %v3870_v25  ;;  %v3857_v31 = vld [vmem:[#allocation8 + $0x2b0] sm:$0xf]  ;;  %v4022_v28 = vor.u32 %v4535_v21, %v4019_v60  ;;  %v4511_v16 = vld [vmem:[#allocation11 + $0x234] sm:$0xf]  ;;  %v3987_v20 = vld [vmem:[#allocation11 + $0x2b8] sm:$0xf0] }
 0x18f   :  { %v1573_v25 = vld.sshfl [vmem:[#allocation1 + $0x8] sm:$0xff pattern:$0x73625140]  ;;  %v3913_v21 = vld [vmem:[#allocation11 + $0x220] sm:$0xf] }
 0x190   :  { %v1302_v41 = vadd.f32 %v1300_v36, %v1296_v51  ;;  %v1303_v11 = vadd.f32 %v1301_v37, %v1297_v40  ;;  %2087 = vmatpush.bf16.msra.mxu0 %v3794_v30  ;;  %v4534_v30 = vld [vmem:[#allocation11 + $0x2e4] sm:$0xf0]  ;;  %v3977_v60 = vld [vmem:[#allocation11 + $0x2a0] sm:$0xf] }
 0x191   :  { %v1266_v38 = vpop.f32.mrf.mxu2  ;;  %v1280_v39 = vpop.f32.mrf.mxu3 }
 0x192   :  { %v1281_v10 = vadd.f32 %v1280_v39, %v1266_v38  ;;  %v1312_v45 = vmax.f32 %v1302_v41, 0.0  ;;  %v1313_v46 = vmax.f32 %v1303_v11, 0.0  ;;  %v4495_v38 = vld [vmem:[#allocation8 + $0x2b4] sm:$0xf]  ;;  %v3859_v39 = vld [vmem:[#allocation8 + $0x2b8] sm:$0xf0] }
 0x193   :  { %v3862_v40 = vor.u32 %v4495_v38, %v3859_v39  ;;  %v4494_v11 = vld [vmem:[#allocation8 + $0x2a4] sm:$0xf0]  ;;  %v4011_v38 = vld [vmem:[#allocation11 + $0x2e8] sm:$0xf0] }
 0x194   :  { %v1284_v32 = vpack.c.bf16 %v1281_v10, %v1253_v55  ;;  %v3785_v55 = vld [vmem:[#allocation8 + $0x220] sm:$0xf]  ;;  %v4478_v10 = vld [vmem:[#allocation8 + $0x224] sm:$0xf0] }
 0x195   :  { %v3786_v41 = vor.u32 %v4478_v10, %v3785_v55  ;;  %2129 = vmatpush.bf16.msra.mxu3 %v3862_v40  ;;  %v3937_v40 = vld [vmem:[#allocation11 + $0x250] sm:$0xf]  ;;  %v4516_v55 = vld [vmem:[#allocation11 + $0x254] sm:$0xf0] }
 0x196   :  { %v1298_v33 = vunpack.c.l.bf16 %v1284_v32  ;;  %v1299_v42 = vunpack.c.h.bf16 %v1284_v32  ;;  %v3849_v32 = vld [vmem:[#allocation8 + $0x2a0] sm:$0xf]  ;;  %v4001_v10 = vld [vmem:[#allocation11 + $0x2d0] sm:$0xf] }
 0x197   :  { %2088 = vmatpush.bf16.msra.mxu0 %v3786_v41  ;;  %v4515_v41 = vld [vmem:[#allocation11 + $0x254] sm:$0xf] }
 0x198   :  { %v1304_v43 = vadd.f32 %v1300_v36, %v1298_v33  ;;  %v1305_v44 = vadd.f32 %v1301_v37, %v1299_v42  ;;  %v3858_v36 = vor.u32 %v4496_v34, %v3857_v31  ;;  %v3795_v37 = vld [vmem:[#allocation8 + $0x238] sm:$0xf0]  ;;  %v4477_v33 = vld [vmem:[#allocation8 + $0x224] sm:$0xf]  ;;  %v3850_v42 = vor.u32 %v4494_v11, %v3849_v32  ;;  %v4517_v31 = vld [vmem:[#allocation11 + $0x264] sm:$0xf] }
 0x199   :  { %v3798_v51 = vor.u32 %v4479_v35, %v3795_v37  ;;  %v3946_v34 = vor.u32 %v4518_v24, %v3945_v23  ;;  %v4010_v35 = vor.u32 %v4534_v30, %v4009_v29  ;;  %v4533_v37 = vld [vmem:[#allocation11 + $0x2e4] sm:$0xf]  ;;  %v4532_v32 = vld [vmem:[#allocation11 + $0x2d4] sm:$0xf0]  ;;  %v3939_v11 = vld [vmem:[#allocation11 + $0x258] sm:$0xf0] }
 0x19a   :  { %v1314_v47 = vmax.f32 %v1304_v43, 0.0  ;;  %v1315_v48 = vmax.f32 %v1305_v44, 0.0  ;;  %2101 = vmatpush.bf16.msra.mxu1 %v3858_v36  ;;  %v3787_v43 = vld [vmem:[#allocation8 + $0x228] sm:$0xf0]  ;;  %v4493_v44 = vld [vmem:[#allocation8 + $0x2a4] sm:$0xf] }
 0x19b   :  { %2115 = vmatpush.bf16.msra.mxu2 %v3798_v51  ;;  %v3947_v36 = vld [vmem:[#allocation11 + $0x268] sm:$0xf0]  ;;  %v4014_v51 = vor.u32 %v4533_v37, %v4011_v38  ;;  %v4526_v29 = vld [vmem:[#allocation11 + $0x2a4] sm:$0xf0]  ;;  %v4509_v30 = vld [vmem:[#allocation11 + $0x224] sm:$0xf] }
 0x19c   :  { %v1316_v49 = vpack.c.bf16 %v1314_v47, %v1312_v45  ;;  %v1317_v50 = vpack.c.bf16 %v1315_v48, %v1313_v46  ;;  %v3851_v45 = vld [vmem:[#allocation8 + $0x2a8] sm:$0xf0]  ;;  %v4997_v46 = vld.sshfl [vmem:[#allocation1] sm:$0xff pattern:$0x73625140]  ;;  %v3790_v47 = vor.u32 %v4477_v33, %v3787_v43  ;;  %v3950_v39 = vor.u32 %v4517_v31, %v3947_v36 }
 0x19d   :  { %v3854_v48 = vor.u32 %v4493_v44, %v3851_v45  ;;  %v1574_v0 = vshrl.u32 %v4997_v46, 16  ;;  %v4531_v33 = vld [vmem:[#allocation11 + $0x2d4] sm:$0xf]  ;;  %v1855_v43 = vld [vmem:[%s5056_s6] sm:$0x5]  ;;  %v1578_v44 = vshrl.u32 %v1573_v25, 16  ;;  %v3938_v45 = vor.u32 %v4516_v55, %v3937_v40 }
 0x19e   :  { %1805 = vmatmul.bf16.vlgmr.msrb.gmra.mxu0 %v1316_v49  ;;  %1819 = vmatmul.bf16.vlgmr.msrb.gmra.mxu1 %v1317_v50  ;;  %1857 = vst [vmem:[#allocation1] ss:$4 sm:$0xff] %v1855_v43  ;;  %v3921_v46 = vld [vmem:[#allocation11 + $0x230] sm:$0xf]  ;;  %v3915_v31 = vld [vmem:[#allocation11 + $0x228] sm:$0xf0]  ;;  %v3978_v40 = vor.u32 %v4526_v29, %v3977_v60 }
 0x19f   :  { %1833 = vmatmul.bf16.vlgmr.msrb.gmra.mxu2 %v1316_v49  ;;  %1847 = vmatmul.bf16.vlgmr.msrb.gmra.mxu3 %v1317_v50  ;;  %v3777_v49 = vld [vmem:[#allocation8 + $0x210] sm:$0xf]  ;;  %v4476_v50 = vld [vmem:[#allocation8 + $0x214] sm:$0xf0]  ;;  %v1575_v57 = vpack.i.b16 %v1574_v0, %v1574_v0  ;;  %v1579_v63 = vpack.i.b16 %v1578_v44, %v1578_v44  ;;  %v3985_v0 = vld [vmem:[#allocation11 + $0x2b0] sm:$0xf]  ;;  %v3918_v55 = vor.u32 %v4509_v30, %v3915_v31 }
 0x1a0   :  { %2102 = vmatpush.bf16.msra.mxu1 %v3850_v42  ;;  %v3778_v53 = vor.u32 %v4476_v50, %v3777_v49  ;;  %2116 = vmatpush.bf16.msra.mxu2 %v3790_v47  ;;  %v4003_v42 = vld [vmem:[#allocation11 + $0x2d8] sm:$0xf0]  ;;  %v4002_v47 = vor.u32 %v4532_v32, %v4001_v10  ;;  %v3942_v50 = vor.u32 %v4515_v41, %v3939_v11  ;;  %v4525_v36 = vld [vmem:[#allocation11 + $0x2a4] sm:$0xf]  ;;  %v3979_v37 = vld [vmem:[#allocation11 + $0x2a8] sm:$0xf0] }
 0x1a1   :  { %2130 = vmatpush.bf16.msra.mxu3 %v3854_v48  ;;  %v4006_v52 = vor.u32 %v4531_v33, %v4003_v42  ;;  %v1577_v12 = vperm.slane %v1575_v57, 0  ;;  %v1581_v13 = vperm.slane %v1579_v63, 0  ;;  %v3986_v17 = vor.u32 %v4528_v15, %v3985_v0  ;;  %v3905_v42 = vld [vmem:[#allocation11 + $0x210] sm:$0xf]  ;;  %v4508_v43 = vld [vmem:[#allocation11 + $0x214] sm:$0xf0] }
 0x1a2   :  { %2089 = vmatpush.bf16.msra.mxu0 %v3778_v53  ;;  %v3929_v53 = vld [vmem:[#allocation11 + $0x240] sm:$0xf]  ;;  %v3982_v10 = vor.u32 %v4525_v36, %v3979_v37  ;;  %v3969_v44 = vld [vmem:[#allocation11 + $0x290] sm:$0xf]  ;;  %v3963_v0 = vld [vmem:[#allocation11 + $0x288] sm:$0xf0] }
 0x1a3   :  { %v1587_v38 = vunpack.c.l.bf16 %v1581_v13 }
 0x1a4   :  { %2103 = vmatpush.bf16.msra.mxu1 %v3842_v58  ;;  %2117 = vmatpush.bf16.msra.mxu2 %v3782_v61  ;;  %v4530_v58 = vld [vmem:[#allocation11 + $0x2c4] sm:$0xf0]  ;;  %v4513_v61 = vld [vmem:[#allocation11 + $0x244] sm:$0xf] }
 0x1a5   :  { %2131 = vmatpush.bf16.msra.mxu3 %v3846_v1  ;;  %v3930_v1 = vor.u32 %v4514_v54, %v3929_v53  ;;  %v3994_v2 = vor.u32 %v4530_v58, %v3993_v56  ;;  %v3934_v5 = vor.u32 %v4513_v61, %v3931_v62  ;;  %v4523_v53 = vld [vmem:[#allocation11 + $0x294] sm:$0xf]  ;;  %v3971_v54 = vld [vmem:[#allocation11 + $0x298] sm:$0xf0] }
 0x1a6   :  { %2090 = vmatpush.bf16.msra.mxu0 %v3770_v27  ;;  %v3974_v57 = vor.u32 %v4523_v53, %v3971_v54 }
 0x1a8   :  { %2104 = vmatpush.bf16.msra.mxu1 %v3834_v7  ;;  %2118 = vmatpush.bf16.msra.mxu2 %v3774_v8  ;;  %v4512_v8 = vld [vmem:[#allocation11 + $0x234] sm:$0xf0] }
 0x1a9   :  { %2132 = vmatpush.bf16.msra.mxu3 %v3838_v14  ;;  %v3922_v14 = vor.u32 %v4512_v8, %v3921_v46  ;;  %v4521_v8 = vld [vmem:[#allocation11 + $0x284] sm:$0xf] }
 0x1aa   :  { %2367 = vmatpush.bf16.msrb.mxu0 %v3954_v18  ;;  %v3923_v18 = vld [vmem:[#allocation11 + $0x238] sm:$0xf0] }
 0x1ab   :  { %v3926_v25 = vor.u32 %v4511_v16, %v3923_v18 }
 0x1ac   :  { %2381 = vmatpush.bf16.msrb.mxu1 %v4018_v19  ;;  %2395 = vmatpush.bf16.msrb.mxu2 %v3958_v22  ;;  %v4527_v19 = vld [vmem:[#allocation11 + $0x2b4] sm:$0xf]  ;;  %v4510_v22 = vld [vmem:[#allocation11 + $0x224] sm:$0xf0] }
 0x1ad   :  { %2409 = vmatpush.bf16.msrb.mxu3 %v4022_v28  ;;  %v3990_v28 = vor.u32 %v4527_v19, %v3987_v20  ;;  %v1858_v19 = vld.sshfl [vmem:[#allocation1] sm:$0xff pattern:$0x73625140]  ;;  %v1859_v20 = vld.sshfl [vmem:[#allocation1 + $0x8] sm:$0xff pattern:$0x73625140] }
 0x1ae   :  { %2368 = vmatpush.bf16.msrb.mxu0 %v3946_v34  ;;  %v1586_v34 = vunpack.c.l.bf16 %v1577_v12  ;;  %v3966_v12 = vor.u32 %v4521_v8, %v3963_v0  ;;  %v1864_v60 = vshrl.u32 %v1859_v20, 16  ;;  %v4598_v0 = vld [vmem:[#allocation14 + $0xe4] sm:$0xf0]  ;;  %v4129_v20 = vld [vmem:[#allocation14 + $0xd0] sm:$0xf] }
 0x1b0   :  { %2382 = vmatpush.bf16.msrb.mxu1 %v4010_v35  ;;  %2396 = vmatpush.bf16.msrb.mxu2 %v3950_v39  ;;  %v3914_v35 = vor.u32 %v4510_v22, %v3913_v21  ;;  %v1860_v22 = vshrl.u32 %v1858_v19, 16  ;;  %v4580_v19 = vld [vmem:[#allocation14 + $0x54] sm:$0xf0] }
 0x1b1   :  { %2410 = vmatpush.bf16.msrb.mxu3 %v4014_v51 }
 0x1b2   :  { %2369 = vmatpush.bf16.msrb.mxu0 %v3938_v45  ;;  %v4524_v45 = vld [vmem:[#allocation11 + $0x294] sm:$0xf0] }
 0x1b4   :  { %2383 = vmatpush.bf16.msrb.mxu1 %v4002_v47  ;;  %2397 = vmatpush.bf16.msrb.mxu2 %v3942_v50  ;;  %v4507_v47 = vld [vmem:[#allocation11 + $0x214] sm:$0xf]  ;;  %v3970_v50 = vor.u32 %v4524_v45, %v3969_v44 }
 0x1b5   :  { %2411 = vmatpush.bf16.msrb.mxu3 %v4006_v52  ;;  %v3907_v52 = vld [vmem:[#allocation11 + $0x218] sm:$0xf0] }
 0x1b6   :  { %2370 = vmatpush.bf16.msrb.mxu0 %v3930_v1  ;;  %v3910_v56 = vor.u32 %v4507_v47, %v3907_v52  ;;  %v3897_v1 = vld [vmem:[#allocation11 + $0x200] sm:$0xf] }
 0x1b8   :  { %2384 = vmatpush.bf16.msrb.mxu1 %v3994_v2  ;;  %2398 = vmatpush.bf16.msrb.mxu2 %v3934_v5  ;;  %v4506_v2 = vld [vmem:[#allocation11 + $0x204] sm:$0xf0]  ;;  %v3899_v5 = vld [vmem:[#allocation11 + $0x208] sm:$0xf0] }
 0x1b9   :  { %2412 = vmatpush.bf16.msrb.mxu3 %v3998_v6  ;;  %v3898_v3 = vor.u32 %v4506_v2, %v3897_v1  ;;  %v4583_v1 = vld [vmem:[#allocation14 + $0x74] sm:$0xf] }
 0x1ba   :  { %2371 = vmatpush.bf16.msrb.mxu0 %v3922_v14 }
 0x1bc   :  { %2385 = vmatpush.bf16.msrb.mxu1 %v3986_v17  ;;  %2399 = vmatpush.bf16.msrb.mxu2 %v3926_v25  ;;  %v1861_v25 = vpack.i.b16 %v1860_v22, %v1860_v22  ;;  %v4579_v22 = vld [vmem:[#allocation14 + $0x54] sm:$0xf] }
 0x1bd   :  { %2413 = vmatpush.bf16.msrb.mxu3 %v3990_v28  ;;  %v1865_v28 = vpack.i.b16 %v1864_v60, %v1864_v60  ;;  %v4067_v60 = vld [vmem:[#allocation14 + $0x58] sm:$0xf0] }
 0x1be   :  { %2372 = vmatpush.bf16.msrb.mxu0 %v3914_v35  ;;  %v1863_v31 = vperm.slane %v1861_v25, 0  ;;  %v4595_v25 = vld [vmem:[#allocation14 + $0xd4] sm:$0xf] }
 0x1c0   :  { %2386 = vmatpush.bf16.msrb.mxu1 %v3978_v40  ;;  %2400 = vmatpush.bf16.msrb.mxu2 %v3918_v55 }
 0x1c1   :  { %2414 = vmatpush.bf16.msrb.mxu3 %v3982_v10 }
 0x1c4   :  { %2387 = vmatpush.bf16.msrb.mxu1 %v3970_v50  ;;  %2401 = vmatpush.bf16.msrb.mxu2 %v3910_v56  ;;  %v2141_v56 = vld [vmem:[#allocation10] sm:$0xa] }
 0x1c5   :  { %2415 = vmatpush.bf16.msrb.mxu3 %v3974_v57  ;;  %2143 = vst [vmem:[#allocation1] ss:$4 sm:$0xff] %v2141_v56  ;;  %v4081_v57 = vld [vmem:[#allocation14 + $0x70] sm:$0xf]  ;;  %v4041_v56 = vld [vmem:[#allocation14 + $0x20] sm:$0xf] }
 0x1c9   :  { %2416 = vmatpush.bf16.msrb.mxu3 %v3966_v12  ;;  %v4075_v12 = vld [vmem:[#allocation14 + $0x68] sm:$0xf0] }
 0x1fb   :  { %v1520_v48 = vpop.f32.mrf.mxu0  ;;  %v1534_v49 = vpop.f32.mrf.mxu1 }
 0x1fc   :  { %v1535_v9 = vadd.f32 %v1534_v49, %v1520_v48  ;;  %v3906_v49 = vor.u32 %v4508_v43, %v3905_v42 }
 0x1fe   :  { %2373 = vmatpush.bf16.msrb.mxu0 %v3906_v49 }
 0x202   :  { %v1548_v27 = vpop.f32.mrf.mxu2  ;;  %v1562_v4 = vpop.f32.mrf.mxu3  ;;  %2374 = vmatpush.bf16.msrb.mxu0 %v3898_v3  ;;  %v4599_v3 = vld [vmem:[#allocation14 + $0xf4] sm:$0xf] }
 0x203   :  { %v1563_v7 = vadd.f32 %v1562_v4, %v1548_v27  ;;  %v1522_v23 = vpop.f32.mrf.mxu0  ;;  %v1536_v24 = vpop.f32.mrf.mxu1  ;;  %v4522_v27 = vld [vmem:[#allocation11 + $0x284] sm:$0xf0]  ;;  %v4505_v4 = vld [vmem:[#allocation11 + $0x204] sm:$0xf] }
 0x204   :  { %v1537_v11 = vadd.f32 %v1536_v24, %v1522_v23  ;;  %v3962_v46 = vor.u32 %v4522_v27, %v3961_v26  ;;  %v4083_v26 = vld [vmem:[#allocation14 + $0x78] sm:$0xf0] }
 0x205   :  { %v1567_v59 = vpack.c.bf16 %v1563_v7, %v1535_v9  ;;  %v3902_v9 = vor.u32 %v4505_v4, %v3899_v5  ;;  %v4147_v27 = vld [vmem:[#allocation14 + $0xf8] sm:$0xf0]  ;;  %v4086_v4 = vor.u32 %v4583_v1, %v4083_v26  ;;  %v4043_v1 = vld [vmem:[#allocation14 + $0x28] sm:$0xf0] }
 0x206   :  { %2388 = vmatpush.bf16.msrb.mxu1 %v3962_v46  ;;  %v4150_v5 = vor.u32 %v4599_v3, %v4147_v27  ;;  %v4137_v46 = vld [vmem:[#allocation14 + $0xe0] sm:$0xf]  ;;  %v4589_v3 = vld [vmem:[#allocation14 + $0xa4] sm:$0xf]  ;;  %v4107_v27 = vld [vmem:[#allocation14 + $0xa8] sm:$0xf0] }
 0x207   :  { %v1582_v32 = vunpack.c.l.bf16 %v1567_v59  ;;  %v1583_v41 = vunpack.c.h.bf16 %v1567_v59  ;;  %2402 = vmatpush.bf16.msrb.mxu2 %v3902_v9  ;;  %v4581_v9 = vld [vmem:[#allocation14 + $0x64] sm:$0xf] }
 0x209   :  { %v1588_v58 = vadd.f32 %v1586_v34, %v1582_v32  ;;  %v1589_v61 = vadd.f32 %v1587_v38, %v1583_v41 }
 0x20a   :  { %v1550_v39 = vpop.f32.mrf.mxu2  ;;  %v1564_v51 = vpop.f32.mrf.mxu3 }
 0x20b   :  { %v1565_v33 = vadd.f32 %v1564_v51, %v1550_v39  ;;  %v1598_v13 = vmax.f32 %v1588_v58, 0.0  ;;  %v1599_v14 = vmax.f32 %v1589_v61, 0.0  ;;  %v4584_v58 = vld [vmem:[#allocation14 + $0x74] sm:$0xf0] }
 0x20c   :  { %v4082_v61 = vor.u32 %v4584_v58, %v4081_v57  ;;  %v4574_v57 = vld [vmem:[#allocation14 + $0x24] sm:$0xf0]  ;;  %v4105_v58 = vld [vmem:[#allocation14 + $0xa0] sm:$0xf] }
 0x20d   :  { %v1568_v48 = vpack.c.bf16 %v1565_v33, %v1537_v11 }
 0x20f   :  { %v1584_v62 = vunpack.c.l.bf16 %v1568_v48  ;;  %v1585_v63 = vunpack.c.h.bf16 %v1568_v48 }
 0x211   :  { %v1590_v6 = vadd.f32 %v1586_v34, %v1584_v62  ;;  %v1591_v7 = vadd.f32 %v1587_v38, %v1585_v63  ;;  %v1867_v34 = vperm.slane %v1865_v28, 0  ;;  %v1872_v38 = vunpack.c.l.bf16 %v1863_v31  ;;  %v4145_v62 = vld [vmem:[#allocation14 + $0xf0] sm:$0xf]  ;;  %v4600_v63 = vld [vmem:[#allocation14 + $0xf4] sm:$0xf0] }
 0x212   :  { %v4146_v2 = vor.u32 %v4600_v63, %v4145_v62  ;;  %v4131_v28 = vld [vmem:[#allocation14 + $0xd8] sm:$0xf0]  ;;  %v4578_v31 = vld [vmem:[#allocation14 + $0x44] sm:$0xf0]  ;;  %v4573_v63 = vld [vmem:[#allocation14 + $0x24] sm:$0xf] }
 0x213   :  { %v1600_v15 = vmax.f32 %v1590_v6, 0.0  ;;  %v1601_v16 = vmax.f32 %v1591_v7, 0.0  ;;  %v1873_v39 = vunpack.c.l.bf16 %v1867_v34  ;;  %v4073_v6 = vld [vmem:[#allocation14 + $0x60] sm:$0xf]  ;;  %v4582_v7 = vld [vmem:[#allocation14 + $0x64] sm:$0xf0]  ;;  %v4046_v26 = vor.u32 %v4573_v63, %v4043_v1 }
 0x214   :  { %v4074_v8 = vor.u32 %v4582_v7, %v4073_v6  ;;  %v4121_v34 = vld [vmem:[#allocation14 + $0xc0] sm:$0xf]  ;;  %v4590_v62 = vld [vmem:[#allocation14 + $0xa4] sm:$0xf0]  ;;  %v4572_v6 = vld [vmem:[#allocation14 + $0x14] sm:$0xf0] }
 0x215   :  { %v1602_v17 = vpack.c.bf16 %v1600_v15, %v1598_v13  ;;  %v1603_v18 = vpack.c.bf16 %v1601_v16, %v1599_v14  ;;  %v4138_v13 = vor.u32 %v4598_v0, %v4137_v46  ;;  %v4078_v14 = vor.u32 %v4581_v9, %v4075_v12  ;;  %v4597_v15 = vld [vmem:[#allocation14 + $0xe4] sm:$0xf]  ;;  %v4139_v16 = vld [vmem:[#allocation14 + $0xe8] sm:$0xf0]  ;;  %v4097_v7 = vld [vmem:[#allocation14 + $0x90] sm:$0xf] }
 0x216   :  { %v4571_v0 = vld [vmem:[#allocation14 + $0x14] sm:$0xf]  ;;  %v4035_v9 = vld [vmem:[#allocation14 + $0x18] sm:$0xf0] }
 0x217   :  { %2091 = vmatmul.bf16.vlgmr.msra.gmra.mxu0 %v1602_v17  ;;  %2105 = vmatmul.bf16.vlgmr.msra.gmra.mxu1 %v1603_v18  ;;  %v4547_v63 = vld [vmem:[#allocation13 + $0x54] sm:$0xf] }
 0x218   :  { %2119 = vmatmul.bf16.vlgmr.msra.gmra.mxu2 %v1602_v17  ;;  %2133 = vmatmul.bf16.vlgmr.msra.gmra.mxu3 %v1603_v18  ;;  %v4142_v17 = vor.u32 %v4597_v15, %v4139_v16  ;;  %v4065_v18 = vld [vmem:[#allocation14 + $0x50] sm:$0xf]  ;;  %v4099_v15 = vld [vmem:[#allocation14 + $0x98] sm:$0xf0] }
 0x219   :  { %2682 = vmatpush.bf16.msra.mxu0 %v4082_v61  ;;  %2696 = vmatpush.bf16.msra.mxu1 %v4146_v2  ;;  %v4042_v61 = vor.u32 %v4574_v57, %v4041_v56  ;;  %v4106_v2 = vor.u32 %v4590_v62, %v4105_v58  ;;  %v4193_v56 = vld [vmem:[#allocation13 + $0x50] sm:$0xf]  ;;  %v4548_v57 = vld [vmem:[#allocation13 + $0x54] sm:$0xf0] }
 0x21a   :  { %2710 = vmatpush.bf16.msra.mxu2 %v4086_v4  ;;  %2724 = vmatpush.bf16.msra.mxu3 %v4150_v5  ;;  %v4110_v4 = vor.u32 %v4589_v3, %v4107_v27  ;;  %v4033_v5 = vld [vmem:[#allocation14 + $0x10] sm:$0xf]  ;;  %v4194_v58 = vor.u32 %v4548_v57, %v4193_v56  ;;  %v4564_v62 = vld [vmem:[#allocation13 + $0xd4] sm:$0xf0]  ;;  %v4259_v3 = vld [vmem:[#allocation13 + $0xd8] sm:$0xf0] }
 0x21b   :  { %v1806_v59 = vpop.f32.mrf.mxu0  ;;  %v1820_v21 = vpop.f32.mrf.mxu1  ;;  %v4034_v46 = vor.u32 %v4572_v6, %v4033_v5  ;;  %v4555_v56 = vld [vmem:[#allocation13 + $0x94] sm:$0xf]  ;;  %v4227_v57 = vld [vmem:[#allocation13 + $0x98] sm:$0xf0] }
 0x21c   :  { %v1821_v30 = vadd.f32 %v1820_v21, %v1806_v59  ;;  %v4066_v59 = vor.u32 %v4580_v19, %v4065_v18  ;;  %v4596_v21 = vld [vmem:[#allocation14 + $0xd4] sm:$0xf0]  ;;  %v4570_v18 = vld [vmem:[#allocation14 + $0x4] sm:$0xf0]  ;;  %v4089_v19 = vld [vmem:[#allocation14 + $0x80] sm:$0xf] }
 0x21d   :  { %2683 = vmatpush.bf16.msra.mxu0 %v4074_v8  ;;  %2697 = vmatpush.bf16.msra.mxu1 %v4138_v13  ;;  %v4588_v8 = vld [vmem:[#allocation14 + $0x94] sm:$0xf0]  ;;  %v4038_v13 = vor.u32 %v4571_v0, %v4035_v9  ;;  %v4562_v9 = vld [vmem:[#allocation13 + $0xc4] sm:$0xf0] }
 0x21e   :  { %2711 = vmatpush.bf16.msra.mxu2 %v4078_v14  ;;  %2725 = vmatpush.bf16.msra.mxu3 %v4142_v17  ;;  %v4098_v12 = vor.u32 %v4588_v8, %v4097_v7  ;;  %v4587_v14 = vld [vmem:[#allocation14 + $0x94] sm:$0xf]  ;;  %v4025_v17 = vld [vmem:[#allocation14] sm:$0xf] }
 0x21f   :  { %v4102_v16 = vor.u32 %v4587_v14, %v4099_v15  ;;  %v4185_v7 = vld [vmem:[#allocation13 + $0x40] sm:$0xf]  ;;  %v4561_v15 = vld [vmem:[#allocation13 + $0xc4] sm:$0xf] }
 0x220   :  { %v4249_v8 = vld [vmem:[#allocation13 + $0xc0] sm:$0xf] }
 0x221   :  { %2684 = vmatpush.bf16.msra.mxu0 %v4066_v59  ;;  %v4586_v59 = vld [vmem:[#allocation14 + $0x84] sm:$0xf0]  ;;  %v4250_v14 = vor.u32 %v4562_v9, %v4249_v8  ;;  %v4537_v8 = vld [vmem:[#allocation13 + $0x4] sm:$0xf] }
 0x222   :  { %v1834_v23 = vpop.f32.mrf.mxu2  ;;  %v1848_v24 = vpop.f32.mrf.mxu3  ;;  %v4553_v9 = vld [vmem:[#allocation13 + $0x84] sm:$0xf] }
 0x223   :  { %v1849_v29 = vadd.f32 %v1848_v24, %v1834_v23  ;;  %v1808_v36 = vpop.f32.mrf.mxu0  ;;  %v1822_v37 = vpop.f32.mrf.mxu1  ;;  %v4130_v23 = vor.u32 %v4596_v21, %v4129_v20  ;;  %v4070_v24 = vor.u32 %v4579_v22, %v4067_v60  ;;  %v4026_v20 = vor.u32 %v4570_v18, %v4025_v17  ;;  %v4569_v21 = vld [vmem:[#allocation14 + $0x4] sm:$0xf]  ;;  %v4027_v60 = vld [vmem:[#allocation14 + $0x8] sm:$0xf0] }
 0x224   :  { %v1823_v32 = vadd.f32 %v1822_v37, %v1808_v36  ;;  %v4594_v36 = vld [vmem:[#allocation14 + $0xc4] sm:$0xf0]  ;;  %v4577_v37 = vld [vmem:[#allocation14 + $0x44] sm:$0xf]  ;;  %v4090_v22 = vor.u32 %v4586_v59, %v4089_v19  ;;  %v4177_v59 = vld [vmem:[#allocation13 + $0x30] sm:$0xf] }
 0x225   :  { %v1853_v35 = vpack.c.bf16 %v1849_v29, %v1821_v30  ;;  %v4134_v29 = vor.u32 %v4595_v25, %v4131_v28  ;;  %2698 = vmatpush.bf16.msra.mxu1 %v4130_v23  ;;  %v4057_v30 = vld [vmem:[#allocation14 + $0x40] sm:$0xf]  ;;  %2712 = vmatpush.bf16.msra.mxu2 %v4070_v24  ;;  %v4585_v23 = vld [vmem:[#allocation14 + $0x84] sm:$0xf]  ;;  %v4091_v24 = vld [vmem:[#allocation14 + $0x88] sm:$0xf0]  ;;  %v4030_v25 = vor.u32 %v4569_v21, %v4027_v60 }
 0x226   :  { %v4209_v28 = vld [vmem:[#allocation13 + $0x70] sm:$0xf]  ;;  %v4544_v21 = vld [vmem:[#allocation13 + $0x34] sm:$0xf0] }
 0x227   :  { %v1868_v55 = vunpack.c.l.bf16 %v1853_v35  ;;  %v1869_v10 = vunpack.c.h.bf16 %v1853_v35  ;;  %2726 = vmatpush.bf16.msra.mxu3 %v4134_v29  ;;  %v4058_v35 = vor.u32 %v4578_v31, %v4057_v30  ;;  %v4552_v29 = vld [vmem:[#allocation13 + $0x74] sm:$0xf0]  ;;  %v4273_v30 = vld [vmem:[#allocation13 + $0xf0] sm:$0xf]  ;;  %v4094_v31 = vor.u32 %v4585_v23, %v4091_v24  ;;  %v4543_v24 = vld [vmem:[#allocation13 + $0x34] sm:$0xf] }
 0x228   :  { %v4178_v60 = vor.u32 %v4544_v21, %v4177_v59  ;;  %v4560_v23 = vld [vmem:[#allocation13 + $0xb4] sm:$0xf0] }
 0x229   :  { %v1874_v33 = vadd.f32 %v1872_v38, %v1868_v55  ;;  %v1875_v42 = vadd.f32 %v1873_v39, %v1869_v10  ;;  %v4123_v55 = vld [vmem:[#allocation14 + $0xc8] sm:$0xf0]  ;;  %v4049_v10 = vld [vmem:[#allocation14 + $0x30] sm:$0xf]  ;;  %2685 = vmatpush.bf16.msra.mxu0 %v4058_v35  ;;  %v4568_v35 = vld [vmem:[#allocation13 + $0xf4] sm:$0xf0] }
 0x22a   :  { %v1836_v51 = vpop.f32.mrf.mxu2  ;;  %v1850_v40 = vpop.f32.mrf.mxu3 }
 0x22b   :  { %v1851_v41 = vadd.f32 %v1850_v40, %v1836_v51  ;;  %v1884_v48 = vmax.f32 %v1874_v33, 0.0  ;;  %v1885_v49 = vmax.f32 %v1875_v42, 0.0  ;;  %v4593_v40 = vld [vmem:[#allocation14 + $0xc4] sm:$0xf]  ;;  %v4592_v33 = vld [vmem:[#allocation14 + $0xb4] sm:$0xf0] }
 0x22d   :  { %v1854_v11 = vpack.c.bf16 %v1851_v41, %v1823_v32  ;;  %v4126_v32 = vor.u32 %v4593_v40, %v4123_v55  ;;  %v4576_v41 = vld [vmem:[#allocation14 + $0x34] sm:$0xf0]  ;;  %v4275_v40 = vld [vmem:[#allocation13 + $0xf8] sm:$0xf0]  ;;  %v4201_v55 = vld [vmem:[#allocation13 + $0x60] sm:$0xf] }
 0x22e   :  { %v4050_v42 = vor.u32 %v4576_v41, %v4049_v10  ;;  %v4265_v41 = vld [vmem:[#allocation13 + $0xe0] sm:$0xf] }
 0x22f   :  { %v1870_v43 = vunpack.c.l.bf16 %v1854_v11  ;;  %v1871_v44 = vunpack.c.h.bf16 %v1854_v11  ;;  %v4113_v11 = vld [vmem:[#allocation14 + $0xb0] sm:$0xf]  ;;  %2727 = vmatpush.bf16.msra.mxu3 %v4126_v32  ;;  %v4550_v32 = vld [vmem:[#allocation13 + $0x64] sm:$0xf0] }
 0x230   :  { %2686 = vmatpush.bf16.msra.mxu0 %v4050_v42  ;;  %v4549_v42 = vld [vmem:[#allocation13 + $0x64] sm:$0xf] }
 0x231   :  { %v1876_v45 = vadd.f32 %v1872_v38, %v1870_v43  ;;  %v1877_v47 = vadd.f32 %v1873_v39, %v1871_v44  ;;  %v4059_v38 = vld [vmem:[#allocation14 + $0x48] sm:$0xf0]  ;;  %v4122_v39 = vor.u32 %v4594_v36, %v4121_v34  ;;  %v4114_v43 = vor.u32 %v4592_v33, %v4113_v11  ;;  %v4575_v44 = vld [vmem:[#allocation14 + $0x34] sm:$0xf]  ;;  %v4566_v11 = vld [vmem:[#allocation13 + $0xe4] sm:$0xf0] }
 0x232   :  { %v4062_v51 = vor.u32 %v4577_v37, %v4059_v38  ;;  %v4210_v34 = vor.u32 %v4552_v29, %v4209_v28  ;;  %v4551_v36 = vld [vmem:[#allocation13 + $0x74] sm:$0xf]  ;;  %v4211_v37 = vld [vmem:[#allocation13 + $0x78] sm:$0xf0]  ;;  %v4274_v38 = vor.u32 %v4568_v35, %v4273_v30  ;;  %v4202_v33 = vor.u32 %v4550_v32, %v4201_v55  ;;  %v4541_v55 = vld [vmem:[#allocation13 + $0x24] sm:$0xf] }
 0x233   :  { %v1886_v50 = vmax.f32 %v1876_v45, 0.0  ;;  %v1887_v52 = vmax.f32 %v1877_v47, 0.0  ;;  %2699 = vmatpush.bf16.msra.mxu1 %v4122_v39  ;;  %v4051_v45 = vld [vmem:[#allocation14 + $0x38] sm:$0xf0]  ;;  %v4591_v47 = vld [vmem:[#allocation14 + $0xb4] sm:$0xf]  ;;  %v4214_v39 = vor.u32 %v4551_v36, %v4211_v37 }
 0x234   :  { %2713 = vmatpush.bf16.msra.mxu2 %v4062_v51  ;;  %2687 = vmatpush.bf16.msra.mxu0 %v4042_v61  ;;  %v4567_v51 = vld [vmem:[#allocation13 + $0xf4] sm:$0xf]  ;;  %v4257_v61 = vld [vmem:[#allocation13 + $0xd0] sm:$0xf]  ;;  %v4542_v36 = vld [vmem:[#allocation13 + $0x24] sm:$0xf0] }
 0x235   :  { %v1888_v53 = vpack.c.bf16 %v1886_v50, %v1884_v48  ;;  %v1889_v54 = vpack.c.bf16 %v1887_v52, %v1885_v49  ;;  %v5006_v48 = vld.sshfl [vmem:[#allocation1] sm:$0xff pattern:$0x73625140]  ;;  %v4054_v49 = vor.u32 %v4575_v44, %v4051_v45  ;;  %v4115_v50 = vld [vmem:[#allocation14 + $0xb8] sm:$0xf0]  ;;  %v4278_v10 = vor.u32 %v4567_v51, %v4275_v40 }
 0x236   :  { %v5008_v52 = vld.sshfl [vmem:[#allocation1 + $0x8] sm:$0xff pattern:$0x73625140]  ;;  %v4565_v44 = vld [vmem:[#allocation13 + $0xe4] sm:$0xf]  ;;  %v4258_v1 = vor.u32 %v4564_v62, %v4257_v61 }
 0x237   :  { %2375 = vmatmul.bf16.vlgmr.msrb.gmra.mxu0 %v1888_v53  ;;  %2389 = vmatmul.bf16.vlgmr.msrb.gmra.mxu1 %v1889_v54  ;;  %v4559_v30 = vld [vmem:[#allocation13 + $0xb4] sm:$0xf]  ;;  %v4233_v37 = vld [vmem:[#allocation13 + $0xa0] sm:$0xf]  ;;  %v4557_v32 = vld [vmem:[#allocation13 + $0xa4] sm:$0xf] }
 0x238   :  { %2403 = vmatmul.bf16.vlgmr.msrb.gmra.mxu2 %v1888_v53  ;;  %2417 = vmatmul.bf16.vlgmr.msrb.gmra.mxu3 %v1889_v54  ;;  %v4118_v53 = vor.u32 %v4591_v47, %v4115_v50  ;;  %v2425_v54 = vld [vmem:[%s5056_s6] sm:$0xa] }
 0x239   :  { %2427 = vst [vmem:[#allocation1] ss:$4 sm:$0xff] %v2425_v54  ;;  %2700 = vmatpush.bf16.msra.mxu1 %v4114_v43  ;;  %2714 = vmatpush.bf16.msra.mxu2 %v4054_v49  ;;  %v4203_v43 = vld [vmem:[#allocation13 + $0x68] sm:$0xf0]  ;;  %v4266_v49 = vor.u32 %v4566_v11, %v4265_v41 }
 0x23a   :  { %2728 = vmatpush.bf16.msra.mxu3 %v4118_v53  ;;  %2688 = vmatpush.bf16.msra.mxu0 %v4034_v46  ;;  %v4206_v50 = vor.u32 %v4549_v42, %v4203_v43  ;;  %v4267_v53 = vld [vmem:[#allocation13 + $0xe8] sm:$0xf0]  ;;  %v4546_v46 = vld [vmem:[#allocation13 + $0x44] sm:$0xf0]  ;;  %v4161_v42 = vld [vmem:[#allocation13 + $0x10] sm:$0xf] }
 0x23b   :  { %v4270_v54 = vor.u32 %v4565_v44, %v4267_v53  ;;  %v4186_v0 = vor.u32 %v4546_v46, %v4185_v7  ;;  %v4540_v43 = vld [vmem:[#allocation13 + $0x14] sm:$0xf0]  ;;  %v4539_v53 = vld [vmem:[#allocation13 + $0x14] sm:$0xf]  ;;  %v4230_v7 = vor.u32 %v4555_v56, %v4227_v57  ;;  %v4554_v46 = vld [vmem:[#allocation13 + $0x84] sm:$0xf0] }
 0x23d   :  { %2701 = vmatpush.bf16.msra.mxu1 %v4106_v2  ;;  %2715 = vmatpush.bf16.msra.mxu2 %v4046_v26  ;;  %v4195_v2 = vld [vmem:[#allocation13 + $0x58] sm:$0xf0]  ;;  %v4563_v26 = vld [vmem:[#allocation13 + $0xd4] sm:$0xf] }
 0x23e   :  { %2729 = vmatpush.bf16.msra.mxu3 %v4110_v4  ;;  %2689 = vmatpush.bf16.msra.mxu0 %v4026_v20  ;;  %v4198_v5 = vor.u32 %v4547_v63, %v4195_v2  ;;  %v4262_v6 = vor.u32 %v4563_v26, %v4259_v3  ;;  %v4153_v3 = vld [vmem:[#allocation13] sm:$0xf] }
 0x240   :  { %v2428_v62 = vld.sshfl [vmem:[#allocation1] sm:$0xff pattern:$0x73625140]  ;;  %v2429_v63 = vld.sshfl [vmem:[#allocation1 + $0x8] sm:$0xff pattern:$0x73625140] }
 0x241   :  { %2702 = vmatpush.bf16.msra.mxu1 %v4098_v12  ;;  %2716 = vmatpush.bf16.msra.mxu2 %v4038_v13  ;;  %v4545_v12 = vld [vmem:[#allocation13 + $0x44] sm:$0xf]  ;;  %v4187_v13 = vld [vmem:[#allocation13 + $0x48] sm:$0xf0] }
 0x242   :  { %2730 = vmatpush.bf16.msra.mxu3 %v4102_v16  ;;  %2898 = vmatpush.bf16.msrb.mxu0 %v4210_v34  ;;  %v4251_v16 = vld [vmem:[#allocation13 + $0xc8] sm:$0xf0]  ;;  %v4190_v17 = vor.u32 %v4545_v12, %v4187_v13  ;;  %v4169_v34 = vld [vmem:[#allocation13 + $0x20] sm:$0xf] }
 0x243   :  { %v4254_v18 = vor.u32 %v4561_v15, %v4251_v16  ;;  %v4170_v40 = vor.u32 %v4542_v36, %v4169_v34  ;;  %v4219_v12 = vld [vmem:[#allocation13 + $0x88] sm:$0xf0]  ;;  %v2430_v15 = vpack.i.b16 %v2428_v62, %v2428_v62  ;;  %v2433_v16 = vpack.i.b16 %v2429_v63, %v2429_v63 }
 0x245   :  { %2703 = vmatpush.bf16.msra.mxu1 %v4090_v22  ;;  %2717 = vmatpush.bf16.msra.mxu2 %v4030_v25  ;;  %v4241_v22 = vld [vmem:[#allocation13 + $0xb0] sm:$0xf]  ;;  %v4179_v25 = vld [vmem:[#allocation13 + $0x38] sm:$0xf0] }
 0x246   :  { %2731 = vmatpush.bf16.msra.mxu3 %v4094_v31  ;;  %2899 = vmatpush.bf16.msrb.mxu0 %v4202_v33  ;;  %v4242_v28 = vor.u32 %v4560_v23, %v4241_v22  ;;  %v4182_v29 = vor.u32 %v4543_v24, %v4179_v25  ;;  %v4243_v31 = vld [vmem:[#allocation13 + $0xb8] sm:$0xf0]  ;;  %v4235_v33 = vld [vmem:[#allocation13 + $0xa8] sm:$0xf0]  ;;  %v4222_v22 = vor.u32 %v4553_v9, %v4219_v12  ;;  %v2432_v23 = vperm.slane %v2430_v15, 1 }
 0x247   :  { %v4246_v35 = vor.u32 %v4559_v30, %v4243_v31  ;;  %v4238_v44 = vor.u32 %v4557_v32, %v4235_v33  ;;  %v2435_v24 = vperm.slane %v2433_v16, 1 }
 0x248   :  { %v2440_v30 = vunpack.c.l.bf16 %v2432_v23 }
 0x249   :  { %2912 = vmatpush.bf16.msrb.mxu1 %v4274_v38  ;;  %2926 = vmatpush.bf16.msrb.mxu2 %v4214_v39  ;;  %v4558_v38 = vld [vmem:[#allocation13 + $0xa4] sm:$0xf0]  ;;  %v2441_v31 = vunpack.c.l.bf16 %v2435_v24 }
 0x24a   :  { %2940 = vmatpush.bf16.msrb.mxu3 %v4278_v10  ;;  %2900 = vmatpush.bf16.msrb.mxu0 %v4194_v58  ;;  %v4171_v10 = vld [vmem:[#allocation13 + $0x28] sm:$0xf0]  ;;  %v4234_v41 = vor.u32 %v4558_v38, %v4233_v37 }
 0x24b   :  { %v4174_v11 = vor.u32 %v4541_v55, %v4171_v10 }
 0x24d   :  { %2913 = vmatpush.bf16.msrb.mxu1 %v4266_v49  ;;  %2927 = vmatpush.bf16.msrb.mxu2 %v4206_v50  ;;  %v4225_v49 = vld [vmem:[#allocation13 + $0x90] sm:$0xf]  ;;  %v4556_v50 = vld [vmem:[#allocation13 + $0x94] sm:$0xf0] }
 0x24e   :  { %2941 = vmatpush.bf16.msrb.mxu3 %v4270_v54  ;;  %2901 = vmatpush.bf16.msrb.mxu0 %v4186_v0  ;;  %v4163_v54 = vld [vmem:[#allocation13 + $0x18] sm:$0xf0]  ;;  %v4226_v2 = vor.u32 %v4556_v50, %v4225_v49  ;;  %v4155_v0 = vld [vmem:[#allocation13 + $0x8] sm:$0xf0]  ;;  %v2146_v49 = vpack.i.b16 %v5006_v48, %v5006_v48  ;;  %v2149_v50 = vpack.i.b16 %v5008_v52, %v5008_v52 }
 0x24f   :  { %v4166_v26 = vor.u32 %v4539_v53, %v4163_v54  ;;  %v4158_v21 = vor.u32 %v4537_v8, %v4155_v0 }
 0x250   :  { %v2151_v63 = vperm.slane %v2149_v50, 1 }
 0x251   :  { %2914 = vmatpush.bf16.msrb.mxu1 %v4258_v1  ;;  %2928 = vmatpush.bf16.msrb.mxu2 %v4198_v5  ;;  %v4162_v1 = vor.u32 %v4540_v43, %v4161_v42  ;;  %v4538_v5 = vld [vmem:[#allocation13 + $0x4] sm:$0xf0] }
 0x252   :  { %2942 = vmatpush.bf16.msrb.mxu3 %v4262_v6  ;;  %2902 = vmatpush.bf16.msrb.mxu0 %v4178_v60  ;;  %v4217_v6 = vld [vmem:[#allocation13 + $0x80] sm:$0xf] }
 0x253   :  { %v4218_v59 = vor.u32 %v4554_v46, %v4217_v6 }
 0x255   :  { %2915 = vmatpush.bf16.msrb.mxu1 %v4250_v14  ;;  %2929 = vmatpush.bf16.msrb.mxu2 %v4190_v17  ;;  %v4154_v17 = vor.u32 %v4538_v5, %v4153_v3 }
 0x256   :  { %2943 = vmatpush.bf16.msrb.mxu3 %v4254_v18  ;;  %2903 = vmatpush.bf16.msrb.mxu0 %v4170_v40 }
 0x259   :  { %2916 = vmatpush.bf16.msrb.mxu1 %v4242_v28  ;;  %2930 = vmatpush.bf16.msrb.mxu2 %v4182_v29 }
 0x25a   :  { %2944 = vmatpush.bf16.msrb.mxu3 %v4246_v35  ;;  %2904 = vmatpush.bf16.msrb.mxu0 %v4162_v1 }
 0x25d   :  { %2917 = vmatpush.bf16.msrb.mxu1 %v4234_v41  ;;  %2931 = vmatpush.bf16.msrb.mxu2 %v4174_v11 }
 0x25e   :  { %2945 = vmatpush.bf16.msrb.mxu3 %v4238_v44  ;;  %2905 = vmatpush.bf16.msrb.mxu0 %v4154_v17  ;;  %v2954_v17 = vld [vmem:[%s5059_s9] sm:$0x3]  ;;  %s4854_s9 = smov [#allocation16]  }
 0x25f   :  { %v2956_v24 = vperm.slane %v2954_v17, 0  ;;  %s2972_s15 = sshll.u32 %s4854_s9, 4  ;;  %s2973_s15 = int_to_ptr.vmem [resolvable:$true] %s2972_s15 }
 0x261   :  { %2918 = vmatpush.bf16.msrb.mxu1 %v4226_v2  ;;  %2932 = vmatpush.bf16.msrb.mxu2 %v4166_v26  ;;  %v2157_v2 = vunpack.c.l.bf16 %v2151_v63 }
 0x262   :  { %2946 = vmatpush.bf16.msrb.mxu3 %v4230_v7 }
 0x265   :  { %2919 = vmatpush.bf16.msrb.mxu1 %v4218_v59  ;;  %2933 = vmatpush.bf16.msrb.mxu2 %v4158_v21 }
 0x266   :  { %2947 = vmatpush.bf16.msrb.mxu3 %v4222_v22 }
 0x294   :  { %v5013_v45 = vpop.f32.mrf.mxu0  ;;  %v5015_v47 = vpop.f32.mrf.mxu1 }
 0x29b   :  { %v5017_v27 = vpop.f32.mrf.mxu2  ;;  %v5019_v4 = vpop.f32.mrf.mxu3 }
 0x29c   :  { %v5021_v19 = vpop.f32.mrf.mxu0  ;;  %v5023_v20 = vpop.f32.mrf.mxu1  ;;  %v2135_v44 = vadd.f32 %v5019_v4, %v5017_v27  ;;  %v2148_v4 = vperm.slane %v2146_v49, 1 }
 0x29d   :  { %v2109_v53 = vadd.f32 %v5023_v20, %v5021_v19 }
 0x29e   :  { %v2156_v1 = vunpack.c.l.bf16 %v2148_v4 }
 0x2a3   :  { %v5025_v39 = vpop.f32.mrf.mxu2  ;;  %v5027_v51 = vpop.f32.mrf.mxu3 }
 0x2a4   :  { %v2137_v33 = vadd.f32 %v5027_v51, %v5025_v39  ;;  %v2107_v39 = vadd.f32 %v5015_v47, %v5013_v45 }
 0x2a6   :  { %v2140_v51 = vpack.c.bf16 %v2137_v33, %v2109_v53  ;;  %v2139_v27 = vpack.c.bf16 %v2135_v44, %v2107_v39 }
 0x2a8   :  { %v2154_v48 = vunpack.c.l.bf16 %v2140_v51  ;;  %v2155_v52 = vunpack.c.h.bf16 %v2140_v51  ;;  %v2152_v19 = vunpack.c.l.bf16 %v2139_v27  ;;  %v2153_v20 = vunpack.c.h.bf16 %v2139_v27 }
 0x2aa   :  { %v2160_v26 = vadd.f32 %v2156_v1, %v2154_v48  ;;  %v2161_v3 = vadd.f32 %v2157_v2, %v2155_v52  ;;  %v2158_v5 = vadd.f32 %v2156_v1, %v2152_v19  ;;  %v2159_v45 = vadd.f32 %v2157_v2, %v2153_v20 }
 0x2ac   :  { %v2170_v47 = vmax.f32 %v2160_v26, 0.0  ;;  %v2171_v6 = vmax.f32 %v2161_v3, 0.0  ;;  %v2168_v7 = vmax.f32 %v2158_v5, 0.0  ;;  %v2169_v46 = vmax.f32 %v2159_v45, 0.0 }
 0x2ae   :  { %v2172_v8 = vpack.c.bf16 %v2170_v47, %v2168_v7  ;;  %v2173_v0 = vpack.c.bf16 %v2171_v6, %v2169_v46 }
 0x2b4   :  { %v2376_v58 = vpop.f32.mrf.mxu0  ;;  %v2390_v61 = vpop.f32.mrf.mxu1 }
 0x2b5   :  { %v2391_v60 = vadd.f32 %v2390_v61, %v2376_v58 }
 0x2bb   :  { %v2404_v13 = vpop.f32.mrf.mxu2  ;;  %v2418_v14 = vpop.f32.mrf.mxu3 }
 0x2bc   :  { %v2419_v18 = vadd.f32 %v2418_v14, %v2404_v13  ;;  %v2378_v28 = vpop.f32.mrf.mxu0  ;;  %v2392_v29 = vpop.f32.mrf.mxu1 }
 0x2bd   :  { %v2393_v38 = vadd.f32 %v2392_v29, %v2378_v28 }
 0x2be   :  { %v2423_v25 = vpack.c.bf16 %v2419_v18, %v2391_v60 }
 0x2c0   :  { %v2436_v36 = vunpack.c.l.bf16 %v2423_v25  ;;  %v2437_v37 = vunpack.c.h.bf16 %v2423_v25 }
 0x2c2   :  { %v2442_v10 = vadd.f32 %v2440_v30, %v2436_v36  ;;  %v2443_v32 = vadd.f32 %v2441_v31, %v2437_v37  ;;  %v2957_v36 = vperm.slane %v2954_v17, 1 }
 0x2c3   :  { %v2406_v34 = vpop.f32.mrf.mxu2  ;;  %v2420_v35 = vpop.f32.mrf.mxu3 }
 0x2c4   :  { %v2421_v40 = vadd.f32 %v2420_v35, %v2406_v34  ;;  %v2452_v54 = vmax.f32 %v2442_v10, 0.0  ;;  %v2453_v56 = vmax.f32 %v2443_v32, 0.0 }
 0x2c6   :  { %v2424_v55 = vpack.c.bf16 %v2421_v40, %v2393_v38 }
 0x2c8   :  { %v2438_v41 = vunpack.c.l.bf16 %v2424_v55  ;;  %v2439_v11 = vunpack.c.h.bf16 %v2424_v55 }
 0x2ca   :  { %v2444_v42 = vadd.f32 %v2440_v30, %v2438_v41  ;;  %v2445_v43 = vadd.f32 %v2441_v31, %v2439_v11 }
 0x2cc   :  { %v2454_v57 = vmax.f32 %v2444_v42, 0.0  ;;  %v2455_v58 = vmax.f32 %v2445_v43, 0.0 }
 0x2ce   :  { %v2456_v61 = vpack.c.bf16 %v2454_v57, %v2452_v54  ;;  %v2457_v62 = vpack.c.bf16 %v2455_v58, %v2453_v56 }
 0x2d0   :  { %2690 = vmatmul.bf16.vlgmr.msra.gmra.mxu0 %v2456_v61  ;;  %2704 = vmatmul.bf16.vlgmr.msra.gmra.mxu1 %v2457_v62 }
 0x2d1   :  { %2718 = vmatmul.bf16.vlgmr.msra.gmra.mxu2 %v2456_v61  ;;  %2732 = vmatmul.bf16.vlgmr.msra.gmra.mxu3 %v2457_v62 }
 0x2e0   :  { %2906 = vmatmul.bf16.vlgmr.msrb.gmra.mxu0 %v2172_v8  ;;  %2920 = vmatmul.bf16.vlgmr.msrb.gmra.mxu1 %v2173_v0 }
 0x2e1   :  { %2934 = vmatmul.bf16.vlgmr.msrb.gmra.mxu2 %v2172_v8  ;;  %2948 = vmatmul.bf16.vlgmr.msrb.gmra.mxu3 %v2173_v0 }
 0x34d   :  { %v2691_v9 = vpop.f32.mrf.mxu0  ;;  %v2705_v12 = vpop.f32.mrf.mxu1 }
 0x34e   :  { %v2706_v18 = vadd.f32 %v2705_v12, %v2691_v9 }
 0x354   :  { %v2719_v13 = vpop.f32.mrf.mxu2  ;;  %v2733_v14 = vpop.f32.mrf.mxu3 }
 0x355   :  { %v2693_v15 = vpop.f32.mrf.mxu0  ;;  %v2707_v16 = vpop.f32.mrf.mxu1  ;;  %v2734_v29 = vadd.f32 %v2733_v14, %v2719_v13 }
 0x356   :  { %v2708_v30 = vadd.f32 %v2707_v16, %v2693_v15 }
 0x35c   :  { %v2721_v59 = vpop.f32.mrf.mxu2  ;;  %v2735_v21 = vpop.f32.mrf.mxu3 }
 0x35d   :  { %v2907_v22 = vpop.f32.mrf.mxu0  ;;  %v2921_v60 = vpop.f32.mrf.mxu1  ;;  %v2736_v11 = vadd.f32 %v2735_v21, %v2721_v59 }
 0x35e   :  { %v2908_v23 = vadd.f32 %v2907_v22, %v2706_v18 }
 0x360   :  { %v2922_v25 = vadd.f32 %v2921_v60, %v2908_v23 }
 0x362   :  { %v2960_v28 = vadd.f32 %v2956_v24, %v2922_v25 }
 0x364   :  { %2964 = vst [vmem:[#allocation16] sm:$0xff] %v2960_v28  ;;  %v2935_v31 = vpop.f32.mrf.mxu2  ;;  %v2949_v34 = vpop.f32.mrf.mxu3 }
 0x365   :  { %v2936_v35 = vadd.f32 %v2935_v31, %v2734_v29  ;;  %v2909_v37 = vpop.f32.mrf.mxu0  ;;  %v2923_v55 = vpop.f32.mrf.mxu1 }
 0x366   :  { %v2910_v38 = vadd.f32 %v2909_v37, %v2708_v30 }
 0x367   :  { %v2950_v40 = vadd.f32 %v2949_v34, %v2936_v35 }
 0x368   :  { %v2924_v10 = vadd.f32 %v2923_v55, %v2910_v38 }
 0x369   :  { %v2961_v32 = vadd.f32 %v2957_v36, %v2950_v40 }
 0x36a   :  { %v2962_v41 = vadd.f32 %v2956_v24, %v2924_v10 }
 0x36b   :  { %2965 = vst [vmem:[#allocation16 + $0x8] sm:$0xff] %v2961_v32 }
 0x36c   :  { %2966 = vst [vmem:[#allocation16 + $0x10] sm:$0xff] %v2962_v41  ;;  %v2937_v33 = vpop.f32.mrf.mxu2  ;;  %v2951_v43 = vpop.f32.mrf.mxu3 }
 0x36d   :  { %v2938_v42 = vadd.f32 %v2937_v33, %v2736_v11 }
 0x36f   :  { %v2952_v44 = vadd.f32 %v2951_v43, %v2938_v42 }
 0x371   :  { %v2963_v49 = vadd.f32 %v2957_v36, %v2952_v44 }
 0x373   :  { %2967 = vst [vmem:[#allocation16 + $0x18] sm:$0xff] %v2963_v49 }
 0x374   :  { %2980 = dma.vmem_to_hbm [thread:$0]  %s2973_s15, 512, %s2975_s17, [#allocation4], %s4843_s18, %s4843_s18, %s4844_s19  }
 0x375   :  { %4840 = dma.done.wait [#allocation4], 512  }
 0x376   :  { %4841 = vsyncadd [#allocation4], 4294966784 }
 0x377   :  { %2985 = vsyncpa [#allocation3], 1 }
 0x378   :  { %2986 = vsyncpa [#allocation6], 1 }
 0x379   :  { %2987 = vsyncpa [#allocation9], 1 }
 0x37a   :  { %2988 = vsyncpa [#allocation12], 1 }
 0x37b   :  { %2989 = vsyncpa [#allocation15], 1 }
 0x37c   :  { %2990 = vsyncpa [#allocation4], 1 }

// kernel: tpu_custom_call.1
= control target key start
LH: loop header
LB: loop body
LE: loop exit
PB: predicated region body
PF: predicated region fallthrough
CT: control target
= control target key end

     0   :  { %15 = vsyncpa [#allocation3], 0  ;;  %s5050_s0 = inlined_call_operand.hbm [shape: bf16[16,256], index: 0, kind: input, shape index: {}]   ;;  %s5051_s1 = inlined_call_operand.hbm [shape: bf16[256,512], index: 1, kind: input, shape index: {}]   ;;  %s5052_s2 = inlined_call_operand.hbm [shape: bf16[1,512], index: 2, kind: input, shape index: {}]   ;;  %s5053_s3 = inlined_call_operand.hbm [shape: bf16[3,256,256], index: 3, kind: input, shape index: {}]   ;;  %s5054_s4 = inlined_call_operand.hbm [shape: bf16[3,256], index: 4, kind: input, shape index: {}]   ;;  %s5055_s5 = inlined_call_operand.hbm [shape: bf16[3,256,256], index: 5, kind: input, shape index: {}]   ;;  %s5056_s6 = inlined_call_operand.vmem [shape: bf16[3,256], index: 6, kind: input, shape index: {}]   ;;  %s5057_s7 = inlined_call_operand.hbm [shape: bf16[256,256], index: 7, kind: input, shape index: {}]   ;;  %s5058_s8 = inlined_call_operand.hbm [shape: bf16[256,256], index: 8, kind: input, shape index: {}]   ;;  %s5059_s9 = inlined_call_operand.vmem [shape: f32[1,256], index: 9, kind: input, shape index: {}]   ;;  %s5060_s10 = inlined_call_operand.hbm [shape: f32[16,256], index: 10, kind: output, shape index: {}]  }
   0x1   :  { %16 = vsyncpa [#allocation6], 0 }
   0x2   :  { %17 = vsyncpa [#allocation9], 0 }
   0x3   :  { %18 = vsyncpa [#allocation12], 0 }
   0x4   :  { %19 = vsyncpa [#allocation15], 0  ;;  %s38_s15 = sshll.u32 %s5051_s1, 4  ;;  %s39_s15 = int_to_ptr.hbm [resolvable:$true] %s38_s15 }
   0x5   :  { %20 = vsyncpa [#allocation4], 0  ;;  %s4842_s16 = smov [#allocation5]   ;;  %s4843_s18 = smov 256  }
   0x6   :  { %s40_s17 = sshll.u32 %s4842_s16, 4  ;;  %s4844_s19 = smov 16   ;;  %s41_s17 = int_to_ptr.vmem [resolvable:$true] %s40_s17 }
   0x7   :  { %46 = dma.hbm_to_vmem [thread:$0]  %s39_s15, 8192, %s41_s17, [#allocation6], %s4843_s18, %s4843_s18, %s4844_s19  }
   0x8   :  { %s62_s22 = sshll.u32 %s5053_s3, 4  ;;  %s4845_s23 = smov [#allocation8]   ;;  %s63_s22 = int_to_ptr.hbm [resolvable:$true] %s62_s22 }
   0x9   :  { %s64_s24 = sshll.u32 %s4845_s23, 4  ;;  %s86_s26 = sshll.u32 %s5055_s5, 4  ;;  %s65_s24 = int_to_ptr.vmem [resolvable:$true] %s64_s24  ;;  %s87_s26 = int_to_ptr.hbm [resolvable:$true] %s86_s26 }
   0xa   :  { %s4846_s27 = smov 128   ;;  %s4847_s28 = smov 8  }
   0xb   :  { %70 = dma.hbm_to_vmem [thread:$0]  %s63_s22, 12288, %s65_s24, [#allocation9], %s4846_s27, %s4846_s27, %s4847_s28  }
   0xc   :  { %s25_s11 = sshll.u32 %s5050_s0, 4  ;;  %s4848_s3 = smov [#allocation11]   ;;  %s26_s11 = int_to_ptr.hbm [resolvable:$true] %s25_s11 }
   0xd   :  { %s88_s12 = sshll.u32 %s4848_s3, 4  ;;  %s4849_s5 = smov [#allocation2]   ;;  %s89_s12 = int_to_ptr.vmem [resolvable:$true] %s88_s12 }
   0xe   :  { %94 = dma.hbm_to_vmem [thread:$0]  %s87_s26, 12288, %s89_s12, [#allocation12], %s4846_s27, %s4846_s27, %s4847_s28  }
   0xf   :  { %s27_s13 = sshll.u32 %s4849_s5, 4  ;;  %s52_s16 = sshll.u32 %s5052_s2, 4  ;;  %s28_s13 = int_to_ptr.vmem [resolvable:$true] %s27_s13  ;;  %s53_s16 = int_to_ptr.hbm [resolvable:$true] %s52_s16 }
  0x10   :  { %33 = dma.hbm_to_vmem [thread:$0]  %s26_s11, 256, %s28_s13, [#allocation3], %s4846_s27, %s4846_s27, %s4847_s28  }
  0x11   :  { %s76_s20 = sshll.u32 %s5054_s4, 4  ;;  %s4850_s21 = smov [#allocation7]   ;;  %s77_s20 = int_to_ptr.hbm [resolvable:$true] %s76_s20 }
  0x12   :  { %s54_s22 = sshll.u32 %s4850_s21, 4  ;;  %s4851_s23 = smov [#allocation10]   ;;  %s55_s22 = int_to_ptr.vmem [resolvable:$true] %s54_s22 }
  0x13   :  { %57 = dma.hbm_to_vmem [thread:$0]  %s53_s16, 64, %s55_s22, [#allocation6]  }
  0x14   :  { %s78_s24 = sshll.u32 %s4851_s23, 4  ;;  %s101_s2 = sshll.u32 %s5057_s7, 4  ;;  %s79_s24 = int_to_ptr.vmem [resolvable:$true] %s78_s24  ;;  %s102_s2 = int_to_ptr.hbm [resolvable:$true] %s101_s2 }
  0x15   :  { %81 = dma.hbm_to_vmem [thread:$0]  %s77_s20, 64, %s79_s24, [#allocation9]  }
  0x16   :  { %s114_s30 = sshll.u32 %s5058_s8, 4  ;;  %s4852_s11 = smov [#allocation13]   ;;  %s115_s30 = int_to_ptr.hbm [resolvable:$true] %s114_s30 }
  0x17   :  { %s103_s4 = sshll.u32 %s4852_s11, 4  ;;  %s4853_s3 = smov [#allocation14]   ;;  %s104_s4 = int_to_ptr.vmem [resolvable:$true] %s103_s4 }
  0x18   :  { %109 = dma.hbm_to_vmem [thread:$0]  %s102_s2, 4096, %s104_s4, [#allocation12], %s4846_s27, %s4846_s27, %s4847_s28  }
  0x19   :  { %s116_s12 = sshll.u32 %s4853_s3, 4  ;;  %s117_s12 = int_to_ptr.vmem [resolvable:$true] %s116_s12 }
  0x1a   :  { %122 = dma.hbm_to_vmem [thread:$0]  %s115_s30, 4096, %s117_s12, [#allocation15], %s4846_s27, %s4846_s27, %s4847_s28  }
  0x1b   :  { %4830 = dma.done.wait [#allocation3], 256  }
  0x1c   :  { %4831 = vsyncadd [#allocation3], 4294967040 }
  0x1d   :  { %4832 = dma.done.wait [#allocation6], 8256  }
  0x1e   :  { %4833 = vsyncadd [#allocation6], 4294959040 }
  0x1f   :  { %4834 = dma.done.wait [#allocation9], 12352  }
  0x20   :  { %4835 = vsyncadd [#allocation9], 4294954944 }
  0x21   :  { %4836 = dma.done.wait [#allocation12], 16384  }
  0x22   :  { %4837 = vsyncadd [#allocation12], 4294950912 }
  0x23   :  { %4838 = dma.done.wait [#allocation15], 4096  }
  0x24   :  { %4839 = vsyncadd [#allocation15], 4294963200  ;;  %v3113_v0 = vld [vmem:[#allocation5 + $0xe0] sm:$0xf]  ;;  %v4311_v1 = vld [vmem:[#allocation5 + $0xec] sm:$0xf0] }
  0x25   :  { %v3241_v2 = vld [vmem:[#allocation5 + $0x1e0] sm:$0xf]  ;;  %v3114_v3 = vor.u32 %v4311_v1, %v3113_v0  ;;  %v4343_v4 = vld [vmem:[#allocation5 + $0x1ec] sm:$0xf0]  ;;  %v4309_v5 = vld [vmem:[#allocation5 + $0xe4] sm:$0xf] }
  0x26   :  { %v3115_v6 = vld [vmem:[#allocation5 + $0xf0] sm:$0xf0]  ;;  %v3242_v7 = vor.u32 %v4343_v4, %v3241_v2  ;;  %v4341_v9 = vld [vmem:[#allocation5 + $0x1e4] sm:$0xf]  ;;  %v3097_v11 = vld [vmem:[#allocation5 + $0xc0] sm:$0xf] }
  0x27   :  { %v3118_v8 = vor.u32 %v4309_v5, %v3115_v6  ;;  %v3243_v10 = vld [vmem:[#allocation5 + $0x1f0] sm:$0xf0]  ;;  %553 = vmatpush.bf16.msra.mxu0 %v3114_v3  ;;  %v4307_v13 = vld [vmem:[#allocation5 + $0xcc] sm:$0xf0]  ;;  %v3225_v14 = vld [vmem:[#allocation5 + $0x1c0] sm:$0xf] }
  0x28   :  { %v3246_v12 = vor.u32 %v4341_v9, %v3243_v10  ;;  %v4339_v15 = vld [vmem:[#allocation5 + $0x1cc] sm:$0xf0]  ;;  %567 = vmatpush.bf16.msra.mxu1 %v3242_v7  ;;  %v3098_v16 = vor.u32 %v4307_v13, %v3097_v11  ;;  %v4305_v18 = vld [vmem:[#allocation5 + $0xc4] sm:$0xf]  ;;  %v3099_v19 = vld [vmem:[#allocation5 + $0xd0] sm:$0xf0] }
  0x29   :  { %581 = vmatpush.bf16.msra.mxu2 %v3118_v8  ;;  %v3226_v17 = vor.u32 %v4339_v15, %v3225_v14  ;;  %v4337_v20 = vld [vmem:[#allocation5 + $0x1c4] sm:$0xf]  ;;  %v3102_v21 = vor.u32 %v4305_v18, %v3099_v19  ;;  %v3227_v22 = vld [vmem:[#allocation5 + $0x1d0] sm:$0xf0]  ;;  %v3081_v23 = vld [vmem:[#allocation5 + $0xa0] sm:$0xf] }
  0x2a   :  { %595 = vmatpush.bf16.msra.mxu3 %v3246_v12  ;;  %v4303_v24 = vld [vmem:[#allocation5 + $0xac] sm:$0xf0]  ;;  %v3230_v25 = vor.u32 %v4337_v20, %v3227_v22  ;;  %v3209_v26 = vld [vmem:[#allocation5 + $0x1a0] sm:$0xf]  ;;  %v4301_v28 = vld [vmem:[#allocation5 + $0xa4] sm:$0xf] }
  0x2b   :  { %v4335_v27 = vld [vmem:[#allocation5 + $0x1ac] sm:$0xf0]  ;;  %554 = vmatpush.bf16.msra.mxu0 %v3098_v16  ;;  %v3082_v29 = vor.u32 %v4303_v24, %v3081_v23  ;;  %v3083_v30 = vld [vmem:[#allocation5 + $0xb0] sm:$0xf0]  ;;  %v4333_v31 = vld [vmem:[#allocation5 + $0x1a4] sm:$0xf] }
  0x2c   :  { %v3211_v32 = vld [vmem:[#allocation5 + $0x1b0] sm:$0xf0]  ;;  %568 = vmatpush.bf16.msra.mxu1 %v3226_v17  ;;  %v3210_v33 = vor.u32 %v4335_v27, %v3209_v26  ;;  %v3086_v34 = vor.u32 %v4301_v28, %v3083_v30  ;;  %v3065_v35 = vld [vmem:[#allocation5 + $0x80] sm:$0xf]  ;;  %v4299_v36 = vld [vmem:[#allocation5 + $0x8c] sm:$0xf0] }
  0x2d   :  { %582 = vmatpush.bf16.msra.mxu2 %v3102_v21  ;;  %v3193_v37 = vld [vmem:[#allocation5 + $0x180] sm:$0xf]  ;;  %v3214_v38 = vor.u32 %v4333_v31, %v3211_v32  ;;  %v4331_v39 = vld [vmem:[#allocation5 + $0x18c] sm:$0xf0]  ;;  %v4297_v40 = vld [vmem:[#allocation5 + $0x84] sm:$0xf]  ;;  %v3066_v44 = vor.u32 %v4299_v36, %v3065_v35 }
  0x2e   :  { %596 = vmatpush.bf16.msra.mxu3 %v3230_v25  ;;  %v3067_v41 = vld [vmem:[#allocation5 + $0x90] sm:$0xf0]  ;;  %v4329_v42 = vld [vmem:[#allocation5 + $0x184] sm:$0xf]  ;;  %v3194_v45 = vor.u32 %v4331_v39, %v3193_v37  ;;  %v3049_v47 = vld [vmem:[#allocation5 + $0x60] sm:$0xf] }
  0x2f   :  { %v3195_v43 = vld [vmem:[#allocation5 + $0x190] sm:$0xf0]  ;;  %555 = vmatpush.bf16.msra.mxu0 %v3082_v29  ;;  %v3070_v46 = vor.u32 %v4297_v40, %v3067_v41  ;;  %v4295_v48 = vld [vmem:[#allocation5 + $0x6c] sm:$0xf0]  ;;  %v3177_v49 = vld [vmem:[#allocation5 + $0x160] sm:$0xf] }
  0x30   :  { %569 = vmatpush.bf16.msra.mxu1 %v3210_v33  ;;  %v3198_v50 = vor.u32 %v4329_v42, %v3195_v43  ;;  %v4327_v51 = vld [vmem:[#allocation5 + $0x16c] sm:$0xf0]  ;;  %v4293_v52 = vld [vmem:[#allocation5 + $0x64] sm:$0xf]  ;;  %v3051_v53 = vld [vmem:[#allocation5 + $0x70] sm:$0xf0]  ;;  %v3050_v56 = vor.u32 %v4295_v48, %v3049_v47 }
  0x31   :  { %583 = vmatpush.bf16.msra.mxu2 %v3086_v34  ;;  %v4325_v54 = vld [vmem:[#allocation5 + $0x164] sm:$0xf]  ;;  %v3179_v55 = vld [vmem:[#allocation5 + $0x170] sm:$0xf0]  ;;  %v3178_v57 = vor.u32 %v4327_v51, %v3177_v49  ;;  %v3054_v58 = vor.u32 %v4293_v52, %v3051_v53  ;;  %v3033_v59 = vld [vmem:[#allocation5 + $0x40] sm:$0xf] }
  0x32   :  { %597 = vmatpush.bf16.msra.mxu3 %v3214_v38  ;;  %v4291_v60 = vld [vmem:[#allocation5 + $0x4c] sm:$0xf0]  ;;  %v3161_v61 = vld [vmem:[#allocation5 + $0x140] sm:$0xf]  ;;  %v3182_v62 = vor.u32 %v4325_v54, %v3179_v55  ;;  %v4289_v0 = vld [vmem:[#allocation5 + $0x44] sm:$0xf] }
  0x33   :  { %556 = vmatpush.bf16.msra.mxu0 %v3066_v44  ;;  %v4323_v63 = vld [vmem:[#allocation5 + $0x14c] sm:$0xf0]  ;;  %v3035_v1 = vld [vmem:[#allocation5 + $0x50] sm:$0xf0]  ;;  %v4321_v2 = vld [vmem:[#allocation5 + $0x144] sm:$0xf]  ;;  %v3034_v4 = vor.u32 %v4291_v60, %v3033_v59 }
  0x34   :  { %570 = vmatpush.bf16.msra.mxu1 %v3194_v45  ;;  %v3163_v3 = vld [vmem:[#allocation5 + $0x150] sm:$0xf0]  ;;  %v3162_v5 = vor.u32 %v4323_v63, %v3161_v61  ;;  %v3038_v6 = vor.u32 %v4289_v0, %v3035_v1  ;;  %v3017_v7 = vld [vmem:[#allocation5 + $0x20] sm:$0xf]  ;;  %v4287_v8 = vld [vmem:[#allocation5 + $0x2c] sm:$0xf0] }
  0x35   :  { %584 = vmatpush.bf16.msra.mxu2 %v3070_v46  ;;  %v3145_v9 = vld [vmem:[#allocation5 + $0x120] sm:$0xf]  ;;  %v3166_v10 = vor.u32 %v4321_v2, %v3163_v3  ;;  %v4319_v11 = vld [vmem:[#allocation5 + $0x12c] sm:$0xf0]  ;;  %v4285_v12 = vld [vmem:[#allocation5 + $0x24] sm:$0xf]  ;;  %v3018_v16 = vor.u32 %v4287_v8, %v3017_v7 }
  0x36   :  { %598 = vmatpush.bf16.msra.mxu3 %v3198_v50  ;;  %v3019_v13 = vld [vmem:[#allocation5 + $0x30] sm:$0xf0]  ;;  %v4317_v14 = vld [vmem:[#allocation5 + $0x124] sm:$0xf]  ;;  %v3001_v17 = vld [vmem:[#allocation5] sm:$0xf]  ;;  %v3146_v20 = vor.u32 %v4319_v11, %v3145_v9 }
  0x37   :  { %557 = vmatpush.bf16.msra.mxu0 %v3050_v56  ;;  %v3147_v15 = vld [vmem:[#allocation5 + $0x130] sm:$0xf0]  ;;  %v4283_v18 = vld [vmem:[#allocation5 + $0xc] sm:$0xf0]  ;;  %v3129_v19 = vld [vmem:[#allocation5 + $0x100] sm:$0xf]  ;;  %v3022_v21 = vor.u32 %v4285_v12, %v3019_v13 }
  0x38   :  { %571 = vmatpush.bf16.msra.mxu1 %v3178_v57  ;;  %v4315_v22 = vld [vmem:[#allocation5 + $0x10c] sm:$0xf0]  ;;  %v4281_v23 = vld [vmem:[#allocation5 + $0x4] sm:$0xf]  ;;  %v3003_v24 = vld [vmem:[#allocation5 + $0x10] sm:$0xf0]  ;;  %v3150_v25 = vor.u32 %v4317_v14, %v3147_v15  ;;  %v3002_v32 = vor.u32 %v4283_v18, %v3001_v17 }
  0x39   :  { %585 = vmatpush.bf16.msra.mxu2 %v3054_v58  ;;  %v4313_v26 = vld [vmem:[#allocation5 + $0x104] sm:$0xf]  ;;  %v3131_v27 = vld [vmem:[#allocation5 + $0x110] sm:$0xf0]  ;;  %v3121_v28 = vld [vmem:[#allocation5 + $0xe8] sm:$0xf]  ;;  %v3130_v36 = vor.u32 %v4315_v22, %v3129_v19  ;;  %v3006_v37 = vor.u32 %v4281_v23, %v3003_v24 }
  0x3a   :  { %599 = vmatpush.bf16.msra.mxu3 %v3182_v62  ;;  %v4312_v29 = vld [vmem:[#allocation5 + $0xf4] sm:$0xf0]  ;;  %v3249_v30 = vld [vmem:[#allocation5 + $0x1e8] sm:$0xf]  ;;  %v4310_v33 = vld [vmem:[#allocation5 + $0xec] sm:$0xf]  ;;  %v3134_v41 = vor.u32 %v4313_v26, %v3131_v27 }
  0x3b   :  { %558 = vmatpush.bf16.msra.mxu0 %v3034_v4  ;;  %v4344_v31 = vld [vmem:[#allocation5 + $0x1f4] sm:$0xf0]  ;;  %v3123_v34 = vld [vmem:[#allocation5 + $0xf8] sm:$0xf0]  ;;  %v4342_v35 = vld [vmem:[#allocation5 + $0x1ec] sm:$0xf]  ;;  %v3122_v42 = vor.u32 %v4312_v29, %v3121_v28 }
  0x3c   :  { %572 = vmatpush.bf16.msra.mxu1 %v3162_v5  ;;  %v3251_v38 = vld [vmem:[#allocation5 + $0x1f8] sm:$0xf0]  ;;  %v2993_v39 = vld [vmem:[#allocation2] sm:$0xf]  ;;  %v4280_v40 = vld [vmem:[#allocation2 + $0x4] sm:$0xf0]  ;;  %v3250_v45 = vor.u32 %v4344_v31, %v3249_v30  ;;  %v3126_v46 = vor.u32 %v4310_v33, %v3123_v34 }
  0x3d   :  { %586 = vmatpush.bf16.msra.mxu2 %v3038_v6  ;;  %v4279_v43 = vld [vmem:[#allocation2 + $0x4] sm:$0xf]  ;;  %v2995_v44 = vld [vmem:[#allocation2 + $0x8] sm:$0xf0]  ;;  %v3105_v47 = vld [vmem:[#allocation5 + $0xc8] sm:$0xf]  ;;  %v3254_v50 = vor.u32 %v4342_v35, %v3251_v38  ;;  %v4952_v51 = vor.u32 %v4280_v40, %v2993_v39 }
  0x3e   :  { %600 = vmatpush.bf16.msra.mxu3 %v3166_v10  ;;  %v4308_v48 = vld [vmem:[#allocation5 + $0xd4] sm:$0xf0]  ;;  %v3233_v49 = vld [vmem:[#allocation5 + $0x1c8] sm:$0xf]  ;;  %v4306_v53 = vld [vmem:[#allocation5 + $0xcc] sm:$0xf]  ;;  %v4954_v55 = vor.u32 %v4279_v43, %v2995_v44 }
  0x3f   :  { %559 = vmatpush.bf16.msra.mxu0 %v3018_v16  ;;  %v4340_v52 = vld [vmem:[#allocation5 + $0x1d4] sm:$0xf0]  ;;  %v3107_v54 = vld [vmem:[#allocation5 + $0xd8] sm:$0xf0]  ;;  %v4338_v56 = vld [vmem:[#allocation5 + $0x1cc] sm:$0xf]  ;;  %v3106_v58 = vor.u32 %v4308_v48, %v3105_v47 }
  0x40   :  { %573 = vmatpush.bf16.msra.mxu1 %v3146_v20  ;;  %v3235_v57 = vld [vmem:[#allocation5 + $0x1d8] sm:$0xf0]  ;;  %v3234_v59 = vor.u32 %v4340_v52, %v3233_v49  ;;  %v3110_v60 = vor.u32 %v4306_v53, %v3107_v54  ;;  %v3089_v61 = vld [vmem:[#allocation5 + $0xa8] sm:$0xf]  ;;  %v4304_v62 = vld [vmem:[#allocation5 + $0xb4] sm:$0xf0] }
  0x41   :  { %587 = vmatpush.bf16.msra.mxu2 %v3022_v21  ;;  %v3217_v63 = vld [vmem:[#allocation5 + $0x1a8] sm:$0xf]  ;;  %v3238_v0 = vor.u32 %v4338_v56, %v3235_v57  ;;  %v4336_v1 = vld [vmem:[#allocation5 + $0x1b4] sm:$0xf0]  ;;  %v4302_v2 = vld [vmem:[#allocation5 + $0xac] sm:$0xf]  ;;  %v3090_v6 = vor.u32 %v4304_v62, %v3089_v61 }
  0x42   :  { %601 = vmatpush.bf16.msra.mxu3 %v3150_v25  ;;  %v3091_v3 = vld [vmem:[#allocation5 + $0xb8] sm:$0xf0]  ;;  %v4334_v4 = vld [vmem:[#allocation5 + $0x1ac] sm:$0xf]  ;;  %v3218_v7 = vor.u32 %v4336_v1, %v3217_v63  ;;  %v3073_v9 = vld [vmem:[#allocation5 + $0x88] sm:$0xf] }
  0x43   :  { %560 = vmatpush.bf16.msra.mxu0 %v3002_v32  ;;  %v3219_v5 = vld [vmem:[#allocation5 + $0x1b8] sm:$0xf0]  ;;  %v3094_v8 = vor.u32 %v4302_v2, %v3091_v3  ;;  %v4300_v10 = vld [vmem:[#allocation5 + $0x94] sm:$0xf0]  ;;  %v3201_v11 = vld [vmem:[#allocation5 + $0x188] sm:$0xf] }
  0x44   :  { %574 = vmatpush.bf16.msra.mxu1 %v3130_v36  ;;  %v3222_v12 = vor.u32 %v4334_v4, %v3219_v5  ;;  %v4332_v13 = vld [vmem:[#allocation5 + $0x194] sm:$0xf0]  ;;  %v4298_v14 = vld [vmem:[#allocation5 + $0x8c] sm:$0xf]  ;;  %v3075_v15 = vld [vmem:[#allocation5 + $0x98] sm:$0xf0]  ;;  %v3074_v18 = vor.u32 %v4300_v10, %v3073_v9 }
  0x45   :  { %588 = vmatpush.bf16.msra.mxu2 %v3006_v37  ;;  %v4330_v16 = vld [vmem:[#allocation5 + $0x18c] sm:$0xf]  ;;  %v3203_v17 = vld [vmem:[#allocation5 + $0x198] sm:$0xf0]  ;;  %v3202_v19 = vor.u32 %v4332_v13, %v3201_v11  ;;  %v3078_v20 = vor.u32 %v4298_v14, %v3075_v15  ;;  %v3057_v21 = vld [vmem:[#allocation5 + $0x68] sm:$0xf] }
  0x46   :  { %602 = vmatpush.bf16.msra.mxu3 %v3134_v41  ;;  %561 = vmatmul.bf16.vlgmr.msra.gmra.mxu0 %v4952_v51  ;;  %v4296_v22 = vld [vmem:[#allocation5 + $0x74] sm:$0xf0]  ;;  %v3185_v23 = vld [vmem:[#allocation5 + $0x168] sm:$0xf]  ;;  %v3206_v24 = vor.u32 %v4330_v16, %v3203_v17  ;;  %v4294_v26 = vld [vmem:[#allocation5 + $0x6c] sm:$0xf] }
  0x47   :  { %609 = vmatpush.bf16.msrb.mxu0 %v3122_v42  ;;  %575 = vmatmul.bf16.vlgmr.msra.gmra.mxu1 %v4954_v55  ;;  %v4328_v25 = vld [vmem:[#allocation5 + $0x174] sm:$0xf0]  ;;  %v3059_v27 = vld [vmem:[#allocation5 + $0x78] sm:$0xf0]  ;;  %v4326_v28 = vld [vmem:[#allocation5 + $0x16c] sm:$0xf]  ;;  %v3058_v30 = vor.u32 %v4296_v22, %v3057_v21 }
  0x48   :  { %623 = vmatpush.bf16.msrb.mxu1 %v3250_v45  ;;  %589 = vmatmul.bf16.vlgmr.msra.gmra.mxu2 %v4952_v51  ;;  %v3187_v29 = vld [vmem:[#allocation5 + $0x178] sm:$0xf0]  ;;  %v3186_v31 = vor.u32 %v4328_v25, %v3185_v23  ;;  %v3062_v32 = vor.u32 %v4294_v26, %v3059_v27  ;;  %v3041_v33 = vld [vmem:[#allocation5 + $0x48] sm:$0xf]  ;;  %v4292_v34 = vld [vmem:[#allocation5 + $0x54] sm:$0xf0] }
  0x49   :  { %637 = vmatpush.bf16.msrb.mxu2 %v3126_v46  ;;  %603 = vmatmul.bf16.vlgmr.msra.gmra.mxu3 %v4954_v55  ;;  %v3169_v35 = vld [vmem:[#allocation5 + $0x148] sm:$0xf]  ;;  %v3190_v36 = vor.u32 %v4326_v28, %v3187_v29  ;;  %v4324_v37 = vld [vmem:[#allocation5 + $0x154] sm:$0xf0]  ;;  %v4290_v38 = vld [vmem:[#allocation5 + $0x4c] sm:$0xf]  ;;  %v3042_v42 = vor.u32 %v4292_v34, %v3041_v33 }
  0x4a   :  { %651 = vmatpush.bf16.msrb.mxu3 %v3254_v50  ;;  %v3043_v39 = vld [vmem:[#allocation5 + $0x58] sm:$0xf0]  ;;  %v4322_v40 = vld [vmem:[#allocation5 + $0x14c] sm:$0xf]  ;;  %v3170_v43 = vor.u32 %v4324_v37, %v3169_v35  ;;  %v3025_v45 = vld [vmem:[#allocation5 + $0x28] sm:$0xf] }
  0x4b   :  { %610 = vmatpush.bf16.msrb.mxu0 %v3106_v58  ;;  %v3171_v41 = vld [vmem:[#allocation5 + $0x158] sm:$0xf0]  ;;  %v3046_v44 = vor.u32 %v4290_v38, %v3043_v39  ;;  %v4288_v46 = vld [vmem:[#allocation5 + $0x34] sm:$0xf0]  ;;  %v3153_v47 = vld [vmem:[#allocation5 + $0x128] sm:$0xf] }
  0x4c   :  { %624 = vmatpush.bf16.msrb.mxu1 %v3234_v59  ;;  %v3174_v48 = vor.u32 %v4322_v40, %v3171_v41  ;;  %v4320_v49 = vld [vmem:[#allocation5 + $0x134] sm:$0xf0]  ;;  %v4286_v50 = vld [vmem:[#allocation5 + $0x2c] sm:$0xf]  ;;  %v3027_v52 = vld [vmem:[#allocation5 + $0x38] sm:$0xf0]  ;;  %v3026_v56 = vor.u32 %v4288_v46, %v3025_v45 }
  0x4d   :  { %638 = vmatpush.bf16.msrb.mxu2 %v3110_v60  ;;  %v4318_v53 = vld [vmem:[#allocation5 + $0x12c] sm:$0xf]  ;;  %v3155_v54 = vld [vmem:[#allocation5 + $0x138] sm:$0xf0]  ;;  %v3009_v57 = vld [vmem:[#allocation5 + $0x8] sm:$0xf]  ;;  %v3154_v58 = vor.u32 %v4320_v49, %v3153_v47  ;;  %v3030_v59 = vor.u32 %v4286_v50, %v3027_v52 }
  0x4e   :  { %652 = vmatpush.bf16.msrb.mxu3 %v3238_v0  ;;  %v4284_v60 = vld [vmem:[#allocation5 + $0x14] sm:$0xf0]  ;;  %v3137_v61 = vld [vmem:[#allocation5 + $0x108] sm:$0xf]  ;;  %v3158_v63 = vor.u32 %v4318_v53, %v3155_v54  ;;  %v4282_v0 = vld [vmem:[#allocation5 + $0xc] sm:$0xf] }
  0x4f   :  { %611 = vmatpush.bf16.msrb.mxu0 %v3090_v6  ;;  %v4316_v62 = vld [vmem:[#allocation5 + $0x114] sm:$0xf0]  ;;  %v3011_v1 = vld [vmem:[#allocation5 + $0x18] sm:$0xf0]  ;;  %v4314_v2 = vld [vmem:[#allocation5 + $0x10c] sm:$0xf]  ;;  %v3010_v6 = vor.u32 %v4284_v60, %v3009_v57 }
  0x50   :  { %625 = vmatpush.bf16.msrb.mxu1 %v3218_v7  ;;  %v3139_v3 = vld [vmem:[#allocation5 + $0x118] sm:$0xf0]  ;;  %v3313_v4 = vld [vmem:[#allocation8 + $0x70] sm:$0xf]  ;;  %v3138_v9 = vor.u32 %v4316_v62, %v3137_v61  ;;  %v3014_v10 = vor.u32 %v4282_v0, %v3011_v1  ;;  %v4359_v13 = vld [vmem:[#allocation8 + $0x74] sm:$0xf] }
  0x51   :  { %639 = vmatpush.bf16.msrb.mxu2 %v3094_v8  ;;  %v4360_v5 = vld [vmem:[#allocation8 + $0x74] sm:$0xf0]  ;;  %v3377_v7 = vld [vmem:[#allocation8 + $0xf0] sm:$0xf]  ;;  %v3142_v11 = vor.u32 %v4314_v2, %v3139_v3  ;;  %v3315_v14 = vld [vmem:[#allocation8 + $0x78] sm:$0xf0] }
  0x52   :  { %653 = vmatpush.bf16.msrb.mxu3 %v3222_v12  ;;  %v4376_v8 = vld [vmem:[#allocation8 + $0xf4] sm:$0xf0]  ;;  %v3314_v12 = vor.u32 %v4360_v5, %v3313_v4  ;;  %v4375_v15 = vld [vmem:[#allocation8 + $0xf4] sm:$0xf]  ;;  %v3379_v17 = vld [vmem:[#allocation8 + $0xf8] sm:$0xf0]  ;;  %v3318_v22 = vor.u32 %v4359_v13, %v3315_v14 }
  0x53   :  { %612 = vmatpush.bf16.msrb.mxu0 %v3074_v18  ;;  %v3378_v16 = vor.u32 %v4376_v8, %v3377_v7  ;;  %v3305_v18 = vld [vmem:[#allocation8 + $0x60] sm:$0xf]  ;;  %v4374_v21 = vld [vmem:[#allocation8 + $0xe4] sm:$0xf0]  ;;  %v3382_v23 = vor.u32 %v4375_v15, %v3379_v17  ;;  %v4357_v25 = vld [vmem:[#allocation8 + $0x64] sm:$0xf] }
  0x54   :  { %626 = vmatpush.bf16.msrb.mxu1 %v3202_v19  ;;  %v4358_v19 = vld [vmem:[#allocation8 + $0x64] sm:$0xf0]  ;;  %v3307_v26 = vld [vmem:[#allocation8 + $0x68] sm:$0xf0]  ;;  %v4373_v28 = vld [vmem:[#allocation8 + $0xe4] sm:$0xf] }
  0x55   :  { %640 = vmatpush.bf16.msrb.mxu2 %v3078_v20  ;;  %v3369_v20 = vld [vmem:[#allocation8 + $0xe0] sm:$0xf]  ;;  %v3371_v29 = vld [vmem:[#allocation8 + $0xe8] sm:$0xf0]  ;;  %v4356_v33 = vld [vmem:[#allocation8 + $0x54] sm:$0xf0] }
  0x56   :  { %654 = vmatpush.bf16.msrb.mxu3 %v3206_v24  ;;  %v3306_v24 = vor.u32 %v4358_v19, %v3305_v18  ;;  %v3370_v27 = vor.u32 %v4374_v21, %v3369_v20  ;;  %v3361_v34 = vld [vmem:[#allocation8 + $0xd0] sm:$0xf]  ;;  %v669_v35 = vld [vmem:[#allocation7] sm:$0xf]  ;;  %v4372_v37 = vld [vmem:[#allocation8 + $0xd4] sm:$0xf0] }
  0x57   :  { %613 = vmatpush.bf16.msrb.mxu0 %v3058_v30  ;;  %v3310_v30 = vor.u32 %v4357_v25, %v3307_v26  ;;  %v4355_v38 = vld [vmem:[#allocation8 + $0x54] sm:$0xf]  ;;  %671 = vst [vmem:[#allocation1] ss:$9 sm:$0xff] %v669_v35  ;;  %v3362_v39 = vor.u32 %v4372_v37, %v3361_v34  ;;  %v3363_v41 = vld [vmem:[#allocation8 + $0xd8] sm:$0xf0] }
  0x58   :  { %627 = vmatpush.bf16.msrb.mxu1 %v3186_v31  ;;  %v3374_v31 = vor.u32 %v4373_v28, %v3371_v29  ;;  %v4371_v40 = vld [vmem:[#allocation8 + $0xd4] sm:$0xf]  ;;  %v3353_v45 = vld [vmem:[#allocation8 + $0xc0] sm:$0xf]  ;;  %v4370_v47 = vld [vmem:[#allocation8 + $0xc4] sm:$0xf0] }
  0x59   :  { %641 = vmatpush.bf16.msrb.mxu2 %v3062_v32  ;;  %v3297_v32 = vld [vmem:[#allocation8 + $0x50] sm:$0xf]  ;;  %v3291_v49 = vld [vmem:[#allocation8 + $0x48] sm:$0xf0]  ;;  %v3354_v50 = vor.u32 %v4370_v47, %v3353_v45  ;;  %v4369_v53 = vld [vmem:[#allocation8 + $0xc4] sm:$0xf] }
  0x5a   :  { %655 = vmatpush.bf16.msrb.mxu3 %v3190_v36  ;;  %v3298_v36 = vor.u32 %v4356_v33, %v3297_v32  ;;  %v3355_v54 = vld [vmem:[#allocation8 + $0xc8] sm:$0xf0]  ;;  %v3281_v57 = vld [vmem:[#allocation8 + $0x30] sm:$0xf]  ;;  %v4368_v61 = vld [vmem:[#allocation8 + $0xb4] sm:$0xf0] }
  0x5b   :  { %614 = vmatpush.bf16.msrb.mxu0 %v3042_v42  ;;  %v3366_v42 = vor.u32 %v4371_v40, %v3363_v41  ;;  %v3283_v0 = vld [vmem:[#allocation8 + $0x38] sm:$0xf0]  ;;  %v4367_v1 = vld [vmem:[#allocation8 + $0xb4] sm:$0xf]  ;;  %v3273_v5 = vld [vmem:[#allocation8 + $0x20] sm:$0xf] }
  0x5c   :  { %628 = vmatpush.bf16.msrb.mxu1 %v3170_v43  ;;  %v3289_v43 = vld [vmem:[#allocation8 + $0x40] sm:$0xf]  ;;  %v3347_v3 = vld [vmem:[#allocation8 + $0xb8] sm:$0xf0]  ;;  %v4365_v13 = vld [vmem:[#allocation8 + $0xa4] sm:$0xf] }
  0x5d   :  { %642 = vmatpush.bf16.msrb.mxu2 %v3046_v44  ;;  %v4354_v44 = vld [vmem:[#allocation8 + $0x44] sm:$0xf0]  ;;  %v3350_v4 = vor.u32 %v4367_v1, %v3347_v3  ;;  %v3337_v8 = vld [vmem:[#allocation8 + $0xa0] sm:$0xf]  ;;  %v3339_v14 = vld [vmem:[#allocation8 + $0xa8] sm:$0xf0] }
  0x5e   :  { %656 = vmatpush.bf16.msrb.mxu3 %v3174_v48  ;;  %v3290_v46 = vor.u32 %v4354_v44, %v3289_v43  ;;  %v4353_v48 = vld [vmem:[#allocation8 + $0x44] sm:$0xf]  ;;  %v3265_v17 = vld [vmem:[#allocation8 + $0x10] sm:$0xf]  ;;  %v4348_v18 = vld [vmem:[#allocation8 + $0x14] sm:$0xf0] }
  0x5f   :  { %615 = vmatpush.bf16.msrb.mxu0 %v3026_v56  ;;  %v3294_v52 = vor.u32 %v4353_v48, %v3291_v49  ;;  %v3358_v56 = vor.u32 %v4369_v53, %v3355_v54  ;;  %v3329_v19 = vld [vmem:[#allocation8 + $0x90] sm:$0xf]  ;;  %v3266_v20 = vor.u32 %v4348_v18, %v3265_v17  ;;  %v4364_v21 = vld [vmem:[#allocation8 + $0x94] sm:$0xf0]  ;;  %v4363_v26 = vld [vmem:[#allocation8 + $0x94] sm:$0xf] }
  0x60   :  { %629 = vmatpush.bf16.msrb.mxu1 %v3154_v58  ;;  %v4352_v58 = vld [vmem:[#allocation8 + $0x34] sm:$0xf0]  ;;  %v3257_v29 = vld [vmem:[#allocation8] sm:$0xf]  ;;  %v4362_v33 = vld [vmem:[#allocation8 + $0x84] sm:$0xf0] }
  0x61   :  { %643 = vmatpush.bf16.msrb.mxu2 %v3030_v59  ;;  %v3345_v59 = vld [vmem:[#allocation8 + $0xb0] sm:$0xf]  ;;  %v3282_v60 = vor.u32 %v4352_v58, %v3281_v57  ;;  %v4345_v34 = vld [vmem:[#allocation8 + $0x4] sm:$0xf]  ;;  %v3259_v35 = vld [vmem:[#allocation8 + $0x8] sm:$0xf0] }
  0x62   :  { %657 = vmatpush.bf16.msrb.mxu3 %v3158_v63  ;;  %v3346_v62 = vor.u32 %v4368_v61, %v3345_v59  ;;  %v4351_v63 = vld [vmem:[#allocation8 + $0x34] sm:$0xf]  ;;  %v3323_v40 = vld [vmem:[#allocation8 + $0x88] sm:$0xf0]  ;;  %v4408_v44 = vld [vmem:[#allocation11 + $0xf4] sm:$0xf0] }
  0x63   :  { %616 = vmatpush.bf16.msrb.mxu0 %v3010_v6  ;;  %v3286_v2 = vor.u32 %v4351_v63, %v3283_v0  ;;  %v4350_v6 = vld [vmem:[#allocation8 + $0x24] sm:$0xf0]  ;;  %v673_v37 = vld [vmem:[#allocation1 + $0x9] sm:$0xff]  ;;  %v4391_v47 = vld [vmem:[#allocation11 + $0x74] sm:$0xf]  ;;  %s2974_s17 = sshll.u32 %s5060_s10, 4  ;;  %s2975_s17 = int_to_ptr.hbm [resolvable:$true] %s2974_s17 }
  0x64   :  { %630 = vmatpush.bf16.msrb.mxu1 %v3138_v9  ;;  %v3274_v7 = vor.u32 %v4350_v6, %v3273_v5  ;;  %v4366_v9 = vld [vmem:[#allocation8 + $0xa4] sm:$0xf0]  ;;  %v3505_v43 = vld [vmem:[#allocation11 + $0xf0] sm:$0xf]  ;;  %v3443_v48 = vld [vmem:[#allocation11 + $0x78] sm:$0xf0] }
  0x65   :  { %644 = vmatpush.bf16.msrb.mxu2 %v3014_v10  ;;  %v4349_v10 = vld [vmem:[#allocation8 + $0x24] sm:$0xf]  ;;  %v4407_v49 = vld [vmem:[#allocation11 + $0xf4] sm:$0xf]  ;;  %v4389_v63 = vld [vmem:[#allocation11 + $0x64] sm:$0xf] }
  0x66   :  { %658 = vmatpush.bf16.msrb.mxu3 %v3142_v11  ;;  %617 = vmatmul.bf16.vlgmr.msrb.gmra.mxu0 %v4952_v51  ;;  %v3338_v11 = vor.u32 %v4366_v9, %v3337_v8  ;;  %v3433_v54 = vld [vmem:[#allocation11 + $0x60] sm:$0xf]  ;;  %v3435_v0 = vld [vmem:[#allocation11 + $0x68] sm:$0xf0]  ;;  %v4388_v8 = vld [vmem:[#allocation11 + $0x54] sm:$0xf0] }
  0x67   :  { %934 = vmatpush.bf16.msra.mxu0 %v3314_v12  ;;  %631 = vmatmul.bf16.vlgmr.msrb.gmra.mxu1 %v4954_v55  ;;  %v3275_v12 = vld [vmem:[#allocation8 + $0x28] sm:$0xf0]  ;;  %v3497_v57 = vld [vmem:[#allocation11 + $0xe0] sm:$0xf]  ;;  %v3438_v3 = vor.u32 %v4389_v63, %v3435_v0  ;;  %v3499_v5 = vld [vmem:[#allocation11 + $0xe8] sm:$0xf0] }
  0x68   :  { %948 = vmatpush.bf16.msra.mxu1 %v3378_v16  ;;  %645 = vmatmul.bf16.vlgmr.msrb.gmra.mxu2 %v4952_v51  ;;  %v3299_v51 = vld [vmem:[#allocation8 + $0x58] sm:$0xf0]  ;;  %v3278_v15 = vor.u32 %v4349_v10, %v3275_v12  ;;  %v3342_v16 = vor.u32 %v4365_v13, %v3339_v14  ;;  %v3489_v9 = vld [vmem:[#allocation11 + $0xd0] sm:$0xf]  ;;  %v4387_v17 = vld [vmem:[#allocation11 + $0x54] sm:$0xf] }
  0x69   :  { %659 = vmatmul.bf16.vlgmr.msrb.gmra.mxu3 %v4954_v55  ;;  %962 = vmatpush.bf16.msra.mxu2 %v3318_v22  ;;  %v3302_v55 = vor.u32 %v4355_v38, %v3299_v51  ;;  %v4347_v22 = vld [vmem:[#allocation8 + $0x14] sm:$0xf]  ;;  %v4361_v51 = vld [vmem:[#allocation8 + $0x84] sm:$0xf]  ;;  %v4404_v13 = vld [vmem:[#allocation11 + $0xd4] sm:$0xf0] }
  0x6a   :  { %976 = vmatpush.bf16.msra.mxu3 %v3382_v23  ;;  %v3267_v23 = vld [vmem:[#allocation8 + $0x18] sm:$0xf0]  ;;  %v3326_v41 = vor.u32 %v4361_v51, %v3323_v40  ;;  %v3427_v18 = vld [vmem:[#allocation11 + $0x58] sm:$0xf0] }
  0x6b   :  { %935 = vmatpush.bf16.msra.mxu0 %v3306_v24  ;;  %v3330_v24 = vor.u32 %v4364_v21, %v3329_v19  ;;  %v3270_v25 = vor.u32 %v4347_v22, %v3267_v23  ;;  %v4403_v19 = vld [vmem:[#allocation11 + $0xd4] sm:$0xf]  ;;  %v3430_v21 = vor.u32 %v4387_v17, %v3427_v18  ;;  %v3491_v22 = vld [vmem:[#allocation11 + $0xd8] sm:$0xf0] }
  0x6c   :  { %949 = vmatpush.bf16.msra.mxu1 %v3370_v27  ;;  %v3331_v27 = vld [vmem:[#allocation8 + $0x98] sm:$0xf0] }
  0x6d   :  { %963 = vmatpush.bf16.msra.mxu2 %v3310_v30  ;;  %v3334_v28 = vor.u32 %v4363_v26, %v3331_v27  ;;  %v4346_v30 = vld [vmem:[#allocation8 + $0x4] sm:$0xf0]  ;;  %v4386_v26 = vld [vmem:[#allocation11 + $0x44] sm:$0xf0] }
  0x6e   :  { %977 = vmatpush.bf16.msra.mxu3 %v3374_v31  ;;  %v3321_v31 = vld [vmem:[#allocation8 + $0x80] sm:$0xf]  ;;  %v3258_v32 = vor.u32 %v4346_v30, %v3257_v29  ;;  %v4402_v29 = vld [vmem:[#allocation11 + $0xc4] sm:$0xf0]  ;;  %v4385_v30 = vld [vmem:[#allocation11 + $0x44] sm:$0xf] }
  0x6f   :  { %936 = vmatpush.bf16.msra.mxu0 %v3298_v36  ;;  %v672_v36 = vld [vmem:[#allocation1] sm:$0xff]  ;;  %v3322_v38 = vor.u32 %v4362_v33, %v3321_v31 }
  0x70   :  { %950 = vmatpush.bf16.msra.mxu1 %v3362_v39  ;;  %v3262_v39 = vor.u32 %v4345_v34, %v3259_v35  ;;  %v676_v59 = vpack.i.b16 %v672_v36, %v672_v36 }
  0x71   :  { %964 = vmatpush.bf16.msra.mxu2 %v3302_v55  ;;  %v3441_v55 = vld [vmem:[#allocation11 + $0x70] sm:$0xf] }
  0x72   :  { %978 = vmatpush.bf16.msra.mxu3 %v3366_v42  ;;  %v4392_v42 = vld [vmem:[#allocation11 + $0x74] sm:$0xf0]  ;;  %v4964_v10 = vperm.slane %v676_v59, 0 }
  0x73   :  { %937 = vmatpush.bf16.msra.mxu0 %v3290_v46  ;;  %v3442_v45 = vor.u32 %v4392_v42, %v3441_v55  ;;  %v3506_v46 = vor.u32 %v4408_v44, %v3505_v43  ;;  %v3409_v42 = vld [vmem:[#allocation11 + $0x30] sm:$0xf]  ;;  %v4384_v43 = vld [vmem:[#allocation11 + $0x34] sm:$0xf0] }
  0x74   :  { %951 = vmatpush.bf16.msra.mxu1 %v3354_v50  ;;  %v3446_v50 = vor.u32 %v4391_v47, %v3443_v48  ;;  %v3473_v44 = vld [vmem:[#allocation11 + $0xb0] sm:$0xf]  ;;  %v4400_v47 = vld [vmem:[#allocation11 + $0xb4] sm:$0xf0]  ;;  %v4383_v48 = vld [vmem:[#allocation11 + $0x34] sm:$0xf] }
  0x75   :  { %965 = vmatpush.bf16.msra.mxu2 %v3294_v52  ;;  %v3507_v52 = vld [vmem:[#allocation11 + $0xf8] sm:$0xf0]  ;;  %v4974_v59 = vld [vmem:[#allocation1 + $0x12] sm:$0xff] }
  0x76   :  { %979 = vmatpush.bf16.msra.mxu3 %v3358_v56  ;;  %v3510_v53 = vor.u32 %v4407_v49, %v3507_v52  ;;  %v4390_v56 = vld [vmem:[#allocation11 + $0x64] sm:$0xf0]  ;;  %v3411_v49 = vld [vmem:[#allocation11 + $0x38] sm:$0xf0] }
  0x77   :  { %938 = vmatpush.bf16.msra.mxu0 %v3282_v60  ;;  %v679_v60 = vpack.i.b16 %v673_v37, %v673_v37  ;;  %v3434_v61 = vor.u32 %v4390_v56, %v3433_v54  ;;  %v3419_v37 = vld [vmem:[#allocation11 + $0x48] sm:$0xf0]  ;;  %v3474_v54 = vor.u32 %v4400_v47, %v3473_v44  ;;  %v4399_v56 = vld [vmem:[#allocation11 + $0xb4] sm:$0xf]  ;;  %v4393_v44 = vld [vmem:[#allocation11 + $0x84] sm:$0xf] }
  0x78   :  { %952 = vmatpush.bf16.msra.mxu1 %v3346_v62  ;;  %v4406_v62 = vld [vmem:[#allocation11 + $0xe4] sm:$0xf0]  ;;  %v3422_v51 = vor.u32 %v4385_v30, %v3419_v37 }
  0x79   :  { %966 = vmatpush.bf16.msra.mxu2 %v3286_v2  ;;  %v3498_v2 = vor.u32 %v4406_v62, %v3497_v57  ;;  %v3475_v57 = vld [vmem:[#allocation11 + $0xb8] sm:$0xf0] }
  0x7a   :  { %980 = vmatpush.bf16.msra.mxu3 %v3350_v4  ;;  %v4405_v4 = vld [vmem:[#allocation11 + $0xe4] sm:$0xf]  ;;  %v3478_v62 = vor.u32 %v4399_v56, %v3475_v57  ;;  %v3633_v56 = vld [vmem:[#allocation8 + $0x1f0] sm:$0xf] }
  0x7b   :  { %939 = vmatpush.bf16.msra.mxu0 %v3274_v7  ;;  %v3502_v6 = vor.u32 %v4405_v4, %v3499_v5  ;;  %v3425_v7 = vld [vmem:[#allocation11 + $0x50] sm:$0xf]  ;;  %v4382_v4 = vld [vmem:[#allocation11 + $0x24] sm:$0xf0]  ;;  %v3465_v5 = vld [vmem:[#allocation11 + $0xa0] sm:$0xf] }
  0x7c   :  { %953 = vmatpush.bf16.msra.mxu1 %v3338_v11  ;;  %v4966_v11 = vperm.slane %v679_v60, 0  ;;  %v3426_v12 = vor.u32 %v4388_v8, %v3425_v7  ;;  %v4976_v60 = vld [vmem:[#allocation1 + $0x1b] sm:$0xff]  ;;  %v4398_v8 = vld [vmem:[#allocation11 + $0xa4] sm:$0xf0] }
  0x7d   :  { %967 = vmatpush.bf16.msra.mxu2 %v3278_v15 }
  0x7e   :  { %981 = vmatpush.bf16.msra.mxu3 %v3342_v16  ;;  %v3490_v16 = vor.u32 %v4404_v13, %v3489_v9  ;;  %v697_v33 = vunpack.c.l.bf16 %v4966_v11  ;;  %v4381_v9 = vld [vmem:[#allocation11 + $0x24] sm:$0xf]  ;;  %v3466_v13 = vor.u32 %v4398_v8, %v3465_v5  ;;  %v682_v5 = vpack.i.b16 %v4974_v59, %v4974_v59 }
  0x7f   :  { %940 = vmatpush.bf16.msra.mxu0 %v3266_v20 }
  0x80   :  { %954 = vmatpush.bf16.msra.mxu1 %v3330_v24  ;;  %v3494_v24 = vor.u32 %v4403_v19, %v3491_v22  ;;  %v3393_v19 = vld [vmem:[#allocation11 + $0x10] sm:$0xf] }
  0x81   :  { %968 = vmatpush.bf16.msra.mxu2 %v3270_v25  ;;  %v3417_v25 = vld [vmem:[#allocation11 + $0x40] sm:$0xf] }
  0x82   :  { %982 = vmatpush.bf16.msra.mxu3 %v3334_v28  ;;  %v3418_v27 = vor.u32 %v4386_v26, %v3417_v25  ;;  %v3481_v28 = vld [vmem:[#allocation11 + $0xc0] sm:$0xf]  ;;  %v4396_v25 = vld [vmem:[#allocation11 + $0x94] sm:$0xf0]  ;;  %v4379_v26 = vld [vmem:[#allocation11 + $0x14] sm:$0xf] }
  0x83   :  { %941 = vmatpush.bf16.msra.mxu0 %v3258_v32  ;;  %v696_v32 = vunpack.c.l.bf16 %v4964_v10  ;;  %v3482_v36 = vor.u32 %v4402_v29, %v3481_v28  ;;  %v4394_v10 = vld [vmem:[#allocation11 + $0x84] sm:$0xf0] }
  0x84   :  { %955 = vmatpush.bf16.msra.mxu1 %v3322_v38  ;;  %v4401_v38 = vld [vmem:[#allocation11 + $0xc4] sm:$0xf] }
  0x85   :  { %969 = vmatpush.bf16.msra.mxu2 %v3262_v39  ;;  %v3483_v39 = vld [vmem:[#allocation11 + $0xc8] sm:$0xf0] }
  0x86   :  { %983 = vmatpush.bf16.msra.mxu3 %v3326_v41  ;;  %v3486_v40 = vor.u32 %v4401_v38, %v3483_v39  ;;  %v3385_v39 = vld [vmem:[#allocation11] sm:$0xf] }
  0x87   :  { %1227 = vmatpush.bf16.msrb.mxu0 %v3442_v45 }
  0x88   :  { %1241 = vmatpush.bf16.msrb.mxu1 %v3506_v46  ;;  %v3410_v46 = vor.u32 %v4384_v43, %v3409_v42  ;;  %v3387_v43 = vld [vmem:[#allocation11 + $0x8] sm:$0xf0] }
  0x89   :  { %1255 = vmatpush.bf16.msrb.mxu2 %v3446_v50 }
  0x8a   :  { %1269 = vmatpush.bf16.msrb.mxu3 %v3510_v53 }
  0x8b   :  { %1228 = vmatpush.bf16.msrb.mxu0 %v3434_v61  ;;  %v3414_v61 = vor.u32 %v4383_v48, %v3411_v49 }
  0x8c   :  { %1242 = vmatpush.bf16.msrb.mxu1 %v3498_v2  ;;  %v992_v2 = vld [vmem:[#allocation10] sm:$0x5] }
  0x8d   :  { %1256 = vmatpush.bf16.msrb.mxu2 %v3438_v3  ;;  %v3401_v3 = vld [vmem:[#allocation11 + $0x20] sm:$0xf]  ;;  %994 = vst [vmem:[#allocation1] ss:$4 sm:$0xff] %v992_v2 }
  0x8e   :  { %1270 = vmatpush.bf16.msrb.mxu3 %v3502_v6  ;;  %v3402_v7 = vor.u32 %v4382_v4, %v3401_v3  ;;  %v4439_v3 = vld [vmem:[#allocation8 + $0x1f4] sm:$0xf]  ;;  %v3635_v4 = vld [vmem:[#allocation8 + $0x1f8] sm:$0xf0] }
  0x8f   :  { %1229 = vmatpush.bf16.msrb.mxu0 %v3426_v12  ;;  %v3403_v12 = vld [vmem:[#allocation11 + $0x28] sm:$0xf0] }
  0x90   :  { %1243 = vmatpush.bf16.msrb.mxu1 %v3490_v16  ;;  %v3467_v16 = vld [vmem:[#allocation11 + $0xa8] sm:$0xf0] }
  0x91   :  { %1257 = vmatpush.bf16.msrb.mxu2 %v3430_v21  ;;  %v3457_v21 = vld [vmem:[#allocation11 + $0x90] sm:$0xf] }
  0x92   :  { %1271 = vmatpush.bf16.msrb.mxu3 %v3494_v24  ;;  %v3458_v30 = vor.u32 %v4396_v25, %v3457_v21 }
  0x93   :  { %1230 = vmatpush.bf16.msrb.mxu0 %v3418_v27  ;;  %v3395_v27 = vld [vmem:[#allocation11 + $0x18] sm:$0xf0] }
  0x94   :  { %1244 = vmatpush.bf16.msrb.mxu1 %v3482_v36 }
  0x95   :  { %1258 = vmatpush.bf16.msrb.mxu2 %v3422_v51  ;;  %v4378_v51 = vld [vmem:[#allocation11 + $0x4] sm:$0xf0] }
  0x96   :  { %1272 = vmatpush.bf16.msrb.mxu3 %v3486_v40  ;;  %v3386_v40 = vor.u32 %v4378_v51, %v3385_v39 }
  0x97   :  { %1231 = vmatpush.bf16.msrb.mxu0 %v3410_v46 }
  0x98   :  { %1245 = vmatpush.bf16.msrb.mxu1 %v3474_v54  ;;  %v4424_v54 = vld [vmem:[#allocation8 + $0x174] sm:$0xf0] }
  0x99   :  { %1259 = vmatpush.bf16.msrb.mxu2 %v3414_v61  ;;  %v4423_v61 = vld [vmem:[#allocation8 + $0x174] sm:$0xf] }
  0x9a   :  { %1273 = vmatpush.bf16.msrb.mxu3 %v3478_v62  ;;  %v3571_v62 = vld [vmem:[#allocation8 + $0x178] sm:$0xf0] }
  0x9b   :  { %1232 = vmatpush.bf16.msrb.mxu0 %v3402_v7  ;;  %v3574_v2 = vor.u32 %v4423_v61, %v3571_v62  ;;  %v3638_v7 = vor.u32 %v4439_v3, %v3635_v4  ;;  %v4419_v62 = vld [vmem:[#allocation8 + $0x154] sm:$0xf]  ;;  %v3545_v4 = vld [vmem:[#allocation8 + $0x140] sm:$0xf] }
  0x9c   :  { %1246 = vmatpush.bf16.msrb.mxu1 %v3466_v13 }
  0xa0   :  { %1247 = vmatpush.bf16.msrb.mxu1 %v3458_v30 }
  0xc3   :  { %v562_v58 = vpop.f32.mrf.mxu0 }
  0xc4   :  { %v576_v1 = vpop.f32.mrf.mxu1 }
  0xc5   :  { %v577_v14 = vadd.f32 %v576_v1, %v562_v58 }
  0xcb   :  { %v590_v15 = vpop.f32.mrf.mxu2  ;;  %v564_v34 = vpop.f32.mrf.mxu0 }
  0xcc   :  { %v604_v20 = vpop.f32.mrf.mxu3  ;;  %v578_v35 = vpop.f32.mrf.mxu1 }
  0xcd   :  { %v605_v23 = vadd.f32 %v604_v20, %v590_v15  ;;  %v579_v45 = vadd.f32 %v578_v35, %v564_v34  ;;  %v4397_v15 = vld [vmem:[#allocation11 + $0xa4] sm:$0xf]  ;;  %v4380_v20 = vld [vmem:[#allocation11 + $0x14] sm:$0xf0]  ;;  %v4395_v34 = vld [vmem:[#allocation11 + $0x94] sm:$0xf] }
  0xce   :  { %v3394_v24 = vor.u32 %v4380_v20, %v3393_v19  ;;  %v3459_v35 = vld [vmem:[#allocation11 + $0x98] sm:$0xf0] }
  0xcf   :  { %v665_v31 = vpack.c.bf16 %v605_v23, %v577_v14  ;;  %v3406_v14 = vor.u32 %v4381_v9, %v3403_v12  ;;  %v3470_v23 = vor.u32 %v4397_v15, %v3467_v16  ;;  %v3462_v36 = vor.u32 %v4395_v34, %v3459_v35 }
  0xd0   :  { %1233 = vmatpush.bf16.msrb.mxu0 %v3394_v24 }
  0xd1   :  { %v688_v55 = vunpack.c.l.bf16 %v665_v31  ;;  %v689_v41 = vunpack.c.h.bf16 %v665_v31  ;;  %1260 = vmatpush.bf16.msrb.mxu2 %v3406_v14  ;;  %v3398_v31 = vor.u32 %v4379_v26, %v3395_v27  ;;  %1274 = vmatpush.bf16.msrb.mxu3 %v3470_v23  ;;  %v684_v14 = vperm.slane %v682_v5, 0  ;;  %v4418_v5 = vld [vmem:[#allocation8 + $0x144] sm:$0xf0] }
  0xd3   :  { %v700_v50 = vadd.f32 %v696_v32, %v688_v55  ;;  %v701_v52 = vadd.f32 %v697_v33, %v689_v41  ;;  %v592_v53 = vpop.f32.mrf.mxu2  ;;  %v3449_v55 = vld [vmem:[#allocation11 + $0x80] sm:$0xf]  ;;  %v698_v19 = vunpack.c.l.bf16 %v684_v14 }
  0xd4   :  { %v606_v58 = vpop.f32.mrf.mxu3  ;;  %v3450_v42 = vor.u32 %v4394_v10, %v3449_v55  ;;  %1234 = vmatpush.bf16.msrb.mxu0 %v3386_v40 }
  0xd5   :  { %v720_v63 = vmax.f32 %v700_v50, 0.0  ;;  %v721_v0 = vmax.f32 %v701_v52, 0.0  ;;  %v607_v1 = vadd.f32 %v606_v58, %v592_v53  ;;  %1261 = vmatpush.bf16.msrb.mxu2 %v3398_v31  ;;  %1275 = vmatpush.bf16.msrb.mxu3 %v3462_v36  ;;  %v3569_v53 = vld [vmem:[#allocation8 + $0x170] sm:$0xf]  ;;  %v4440_v58 = vld [vmem:[#allocation8 + $0x1f4] sm:$0xf0] }
  0xd6   :  { %1248 = vmatpush.bf16.msrb.mxu1 %v3450_v42  ;;  %v3570_v57 = vor.u32 %v4424_v54, %v3569_v53  ;;  %v3625_v42 = vld [vmem:[#allocation8 + $0x1e0] sm:$0xf]  ;;  %v4420_v54 = vld [vmem:[#allocation8 + $0x154] sm:$0xf0] }
  0xd7   :  { %v667_v6 = vpack.c.bf16 %v607_v1, %v579_v45  ;;  %v728_v22 = vpack.c.bf16 %v721_v0, %v720_v63  ;;  %v3451_v45 = vld [vmem:[#allocation11 + $0x88] sm:$0xf0]  ;;  %v3634_v1 = vor.u32 %v4440_v58, %v3633_v56 }
  0xd8   :  { %v3454_v47 = vor.u32 %v4393_v44, %v3451_v45  ;;  %v4438_v44 = vld [vmem:[#allocation8 + $0x1e4] sm:$0xf0]  ;;  %v4421_v45 = vld [vmem:[#allocation8 + $0x164] sm:$0xf]  ;;  %v3617_v56 = vld [vmem:[#allocation8 + $0x1d0] sm:$0xf] }
  0xd9   :  { %v692_v17 = vunpack.c.l.bf16 %v667_v6  ;;  %v693_v18 = vunpack.c.h.bf16 %v667_v6  ;;  %v766_v11 = vunpack.c.l.b16 %v728_v22  ;;  %v685_v6 = vpack.i.b16 %v4976_v60, %v4976_v60 }
  0xda   :  { %1276 = vmatpush.bf16.msrb.mxu3 %v3454_v47  ;;  %v3626_v47 = vor.u32 %v4438_v44, %v3625_v42  ;;  %v4411_v44 = vld [vmem:[#allocation8 + $0x114] sm:$0xf] }
  0xdb   :  { %v704_v28 = vadd.f32 %v696_v32, %v692_v17  ;;  %v705_v29 = vadd.f32 %v697_v33, %v693_v18  ;;  %v4377_v32 = vld [vmem:[#allocation11 + $0x4] sm:$0xf]  ;;  %v767_v33 = vunpack.c.h.b16 %v728_v22  ;;  %v687_v15 = vperm.slane %v685_v6, 0  ;;  %v3609_v6 = vld [vmem:[#allocation8 + $0x1c0] sm:$0xf] }
  0xdc   :  { %v3390_v46 = vor.u32 %v4377_v32, %v3387_v43 }
  0xdd   :  { %v724_v37 = vmax.f32 %v704_v28, 0.0  ;;  %v725_v38 = vmax.f32 %v705_v29, 0.0  ;;  %v699_v20 = vunpack.c.l.bf16 %v687_v15  ;;  %v4433_v15 = vld [vmem:[#allocation8 + $0x1c4] sm:$0xf] }
  0xde   :  { %1262 = vmatpush.bf16.msrb.mxu2 %v3390_v46  ;;  %v3563_v46 = vld [vmem:[#allocation8 + $0x168] sm:$0xf0] }
  0xdf   :  { %v730_v41 = vpack.c.bf16 %v725_v38, %v724_v37 }
  0xe1   :  { %v768_v48 = vunpack.c.l.b16 %v730_v41  ;;  %v769_v49 = vunpack.c.h.b16 %v730_v41 }
  0xe3   :  { %v770_v50 = vpack.c.b16 %v768_v48, %v766_v11  ;;  %v771_v52 = vpack.c.b16 %v769_v49, %v767_v33  ;;  %v618_v63 = vpop.f32.mrf.mxu0  ;;  %v3561_v11 = vld [vmem:[#allocation8 + $0x160] sm:$0xf]  ;;  %v4422_v33 = vld [vmem:[#allocation8 + $0x164] sm:$0xf0]  ;;  %v3566_v48 = vor.u32 %v4421_v45, %v3563_v46  ;;  %v4437_v49 = vld [vmem:[#allocation8 + $0x1e4] sm:$0xf] }
  0xe4   :  { %v632_v0 = vpop.f32.mrf.mxu1  ;;  %v3562_v43 = vor.u32 %v4422_v33, %v3561_v11  ;;  %v4412_v11 = vld [vmem:[#allocation8 + $0x114] sm:$0xf0]  ;;  %v3585_v33 = vld [vmem:[#allocation8 + $0x190] sm:$0xf]  ;;  %v3523_v45 = vld [vmem:[#allocation8 + $0x118] sm:$0xf0] }
  0xe5   :  { %942 = vmatmul.bf16.vlgmr.msra.gmra.mxu0 %v770_v50  ;;  %956 = vmatmul.bf16.vlgmr.msra.gmra.mxu1 %v771_v52  ;;  %v633_v8 = vadd.f32 %v632_v0, %v618_v63  ;;  %v3555_v63 = vld [vmem:[#allocation8 + $0x158] sm:$0xf0]  ;;  %v4435_v0 = vld [vmem:[#allocation8 + $0x1d4] sm:$0xf] }
  0xe6   :  { %970 = vmatmul.bf16.vlgmr.msra.gmra.mxu2 %v770_v50  ;;  %984 = vmatmul.bf16.vlgmr.msra.gmra.mxu3 %v771_v52  ;;  %v3627_v50 = vld [vmem:[#allocation8 + $0x1e8] sm:$0xf0]  ;;  %v3553_v52 = vld [vmem:[#allocation8 + $0x150] sm:$0xf] }
  0xe7   :  { %1511 = vmatpush.bf16.msra.mxu0 %v3570_v57  ;;  %1525 = vmatpush.bf16.msra.mxu1 %v3634_v1  ;;  %v3630_v53 = vor.u32 %v4437_v49, %v3627_v50  ;;  %v4436_v57 = vld [vmem:[#allocation8 + $0x1d4] sm:$0xf0]  ;;  %v3554_v58 = vor.u32 %v4420_v54, %v3553_v52  ;;  %v3558_v1 = vor.u32 %v4419_v62, %v3555_v63  ;;  %v3587_v49 = vld [vmem:[#allocation8 + $0x198] sm:$0xf0]  ;;  %v3513_v52 = vld [vmem:[#allocation8 + $0x100] sm:$0xf] }
  0xe8   :  { %1539 = vmatpush.bf16.msra.mxu2 %v3574_v2  ;;  %1553 = vmatpush.bf16.msra.mxu3 %v3638_v7  ;;  %v3618_v61 = vor.u32 %v4436_v57, %v3617_v56  ;;  %v3619_v2 = vld [vmem:[#allocation8 + $0x1d8] sm:$0xf0]  ;;  %v3546_v7 = vor.u32 %v4418_v5, %v3545_v4  ;;  %v3577_v54 = vld [vmem:[#allocation8 + $0x180] sm:$0xf]  ;;  %v4426_v57 = vld [vmem:[#allocation8 + $0x184] sm:$0xf0] }
  0xe9   :  { %v3622_v3 = vor.u32 %v4435_v0, %v3619_v2  ;;  %v3578_v62 = vor.u32 %v4426_v57, %v3577_v54  ;;  %v4425_v0 = vld [vmem:[#allocation8 + $0x184] sm:$0xf]  ;;  %v3697_v2 = vld [vmem:[#allocation11 + $0x170] sm:$0xf]  ;;  %v4456_v4 = vld [vmem:[#allocation11 + $0x174] sm:$0xf0] }
  0xea   :  { %v3761_v5 = vld [vmem:[#allocation11 + $0x1f0] sm:$0xf]  ;;  %v3739_v54 = vld [vmem:[#allocation11 + $0x1c8] sm:$0xf0] }
  0xeb   :  { %v646_v9 = vpop.f32.mrf.mxu2  ;;  %v620_v59 = vpop.f32.mrf.mxu0  ;;  %1512 = vmatpush.bf16.msra.mxu0 %v3562_v43  ;;  %1526 = vmatpush.bf16.msra.mxu1 %v3626_v47  ;;  %v4428_v43 = vld [vmem:[#allocation8 + $0x194] sm:$0xf0]  ;;  %v3526_v47 = vor.u32 %v4411_v44, %v3523_v45  ;;  %v4449_v44 = vld [vmem:[#allocation11 + $0x144] sm:$0xf]  ;;  %v3675_v45 = vld [vmem:[#allocation11 + $0x148] sm:$0xf0] }
  0xec   :  { %v660_v12 = vpop.f32.mrf.mxu3  ;;  %v634_v21 = vpop.f32.mrf.mxu1  ;;  %1540 = vmatpush.bf16.msra.mxu2 %v3566_v48  ;;  %1554 = vmatpush.bf16.msra.mxu3 %v3630_v53  ;;  %v3586_v46 = vor.u32 %v4428_v43, %v3585_v33  ;;  %v4427_v48 = vld [vmem:[#allocation8 + $0x194] sm:$0xf]  ;;  %v4410_v53 = vld [vmem:[#allocation8 + $0x104] sm:$0xf0]  ;;  %v3737_v33 = vld [vmem:[#allocation11 + $0x1c0] sm:$0xf] }
  0xed   :  { %v661_v13 = vadd.f32 %v660_v12, %v646_v9  ;;  %v635_v25 = vadd.f32 %v634_v21, %v620_v59  ;;  %v4417_v9 = vld [vmem:[#allocation8 + $0x144] sm:$0xf]  ;;  %v3547_v12 = vld [vmem:[#allocation8 + $0x148] sm:$0xf0]  ;;  %v3601_v59 = vld [vmem:[#allocation8 + $0x1b0] sm:$0xf]  ;;  %v3590_v50 = vor.u32 %v4427_v48, %v3587_v49  ;;  %v3514_v56 = vor.u32 %v4410_v53, %v3513_v52 }
  0xee   :  { %v3550_v14 = vor.u32 %v4417_v9, %v3547_v12  ;;  %v4432_v21 = vld [vmem:[#allocation8 + $0x1b4] sm:$0xf0]  ;;  %v3699_v12 = vld [vmem:[#allocation11 + $0x178] sm:$0xf0]  ;;  %v4466_v43 = vld [vmem:[#allocation11 + $0x1c4] sm:$0xf0]  ;;  %v3678_v52 = vor.u32 %v4449_v44, %v3675_v45 }
  0xef   :  { %v666_v16 = vpack.c.bf16 %v661_v13, %v633_v8  ;;  %1513 = vmatpush.bf16.msra.mxu0 %v3554_v58  ;;  %1527 = vmatpush.bf16.msra.mxu1 %v3618_v61  ;;  %v4434_v8 = vld [vmem:[#allocation8 + $0x1c4] sm:$0xf0]  ;;  %v4409_v58 = vld [vmem:[#allocation8 + $0x104] sm:$0xf]  ;;  %v3515_v61 = vld [vmem:[#allocation8 + $0x108] sm:$0xf0] }
  0xf0   :  { %1541 = vmatpush.bf16.msra.mxu2 %v3558_v1  ;;  %1555 = vmatpush.bf16.msra.mxu3 %v3622_v3  ;;  %v3610_v13 = vor.u32 %v4434_v8, %v3609_v6  ;;  %v3518_v63 = vor.u32 %v4409_v58, %v3515_v61  ;;  %v3579_v1 = vld [vmem:[#allocation8 + $0x188] sm:$0xf0]  ;;  %v4472_v6 = vld [vmem:[#allocation11 + $0x1f4] sm:$0xf0]  ;;  %v4455_v9 = vld [vmem:[#allocation11 + $0x174] sm:$0xf] }
  0xf1   :  { %v690_v17 = vunpack.c.l.bf16 %v666_v16  ;;  %v691_v18 = vunpack.c.h.bf16 %v666_v16  ;;  %v3611_v16 = vld [vmem:[#allocation8 + $0x1c8] sm:$0xf0]  ;;  %v3582_v3 = vor.u32 %v4425_v0, %v3579_v1  ;;  %v3762_v8 = vor.u32 %v4472_v6, %v3761_v5  ;;  %v4465_v53 = vld [vmem:[#allocation11 + $0x1c4] sm:$0xf]  ;;  %v3665_v61 = vld [vmem:[#allocation11 + $0x130] sm:$0xf] }
  0xf2   :  { %v3742_v58 = vor.u32 %v4465_v53, %v3739_v54  ;;  %v3729_v0 = vld [vmem:[#allocation11 + $0x1b0] sm:$0xf]  ;;  %v4464_v1 = vld [vmem:[#allocation11 + $0x1b4] sm:$0xf0]  ;;  %v4441_v53 = vld [vmem:[#allocation11 + $0x104] sm:$0xf] }
  0xf3   :  { %v648_v22 = vpop.f32.mrf.mxu2  ;;  %v702_v23 = vadd.f32 %v698_v19, %v690_v17  ;;  %v703_v24 = vadd.f32 %v699_v20, %v691_v18  ;;  %1514 = vmatpush.bf16.msra.mxu0 %v3546_v7  ;;  %v3614_v17 = vor.u32 %v4433_v15, %v3611_v16  ;;  %v3537_v18 = vld [vmem:[#allocation8 + $0x130] sm:$0xf]  ;;  %1528 = vmatpush.bf16.msra.mxu1 %v3610_v13  ;;  %v4471_v13 = vld [vmem:[#allocation11 + $0x1f4] sm:$0xf]  ;;  %v3763_v15 = vld [vmem:[#allocation11 + $0x1f8] sm:$0xf0] }
  0xf4   :  { %v662_v60 = vpop.f32.mrf.mxu3  ;;  %1542 = vmatpush.bf16.msra.mxu2 %v3550_v14  ;;  %v3698_v7 = vor.u32 %v4456_v4, %v3697_v2  ;;  %v3702_v14 = vor.u32 %v4455_v9, %v3699_v12  ;;  %v3689_v16 = vld [vmem:[#allocation11 + $0x160] sm:$0xf]  ;;  %v4447_v2 = vld [vmem:[#allocation11 + $0x134] sm:$0xf]  ;;  %v3731_v4 = vld [vmem:[#allocation11 + $0x1b8] sm:$0xf0] }
  0xf5   :  { %v663_v26 = vadd.f32 %v662_v60, %v648_v22  ;;  %v722_v28 = vmax.f32 %v702_v23, 0.0  ;;  %v723_v29 = vmax.f32 %v703_v24, 0.0  ;;  %v4415_v22 = vld [vmem:[#allocation8 + $0x134] sm:$0xf]  ;;  %1556 = vmatpush.bf16.msra.mxu3 %v3614_v17  ;;  %v3602_v60 = vor.u32 %v4432_v21, %v3601_v59  ;;  %v3539_v23 = vld [vmem:[#allocation8 + $0x138] sm:$0xf0] }
  0xf6   :  { %v4431_v24 = vld [vmem:[#allocation8 + $0x1b4] sm:$0xf]  ;;  %v4454_v17 = vld [vmem:[#allocation11 + $0x164] sm:$0xf0]  ;;  %v4453_v21 = vld [vmem:[#allocation11 + $0x164] sm:$0xf] }
  0xf7   :  { %v668_v27 = vpack.c.bf16 %v663_v26, %v635_v25  ;;  %v729_v36 = vpack.c.bf16 %v723_v29, %v722_v28  ;;  %v3603_v25 = vld [vmem:[#allocation8 + $0x1b8] sm:$0xf0]  ;;  %v4986_v26 = vld.sshfl [vmem:[#allocation1] sm:$0xff pattern:$0x73625140]  ;;  %v3542_v28 = vor.u32 %v4415_v22, %v3539_v23  ;;  %1529 = vmatpush.bf16.msra.mxu1 %v3602_v60 }
  0xf8   :  { %v3606_v29 = vor.u32 %v4431_v24, %v3603_v25  ;;  %v4470_v59 = vld [vmem:[#allocation11 + $0x1e4] sm:$0xf0]  ;;  %v3691_v60 = vld [vmem:[#allocation11 + $0x168] sm:$0xf0]  ;;  %v4469_v23 = vld [vmem:[#allocation11 + $0x1e4] sm:$0xf]  ;;  %v997_v48 = vpack.i.b16 %v4986_v26, %v4986_v26  ;;  %v3730_v26 = vor.u32 %v4464_v1, %v3729_v0 }
  0xf9   :  { %v694_v30 = vunpack.c.l.bf16 %v668_v27  ;;  %v695_v31 = vunpack.c.h.bf16 %v668_v27  ;;  %v1059_v51 = vunpack.c.l.b16 %v729_v36  ;;  %v1060_v55 = vunpack.c.h.b16 %v729_v36  ;;  %v4988_v27 = vld.sshfl [vmem:[#allocation1 + $0x8] sm:$0xff pattern:$0x73625140]  ;;  %1543 = vmatpush.bf16.msra.mxu2 %v3542_v28  ;;  %v3657_v12 = vld [vmem:[#allocation11 + $0x120] sm:$0xf] }
  0xfa   :  { %1557 = vmatpush.bf16.msra.mxu3 %v3606_v29  ;;  %v3755_v24 = vld [vmem:[#allocation11 + $0x1e8] sm:$0xf0]  ;;  %v3694_v25 = vor.u32 %v4453_v21, %v3691_v60  ;;  %v3681_v29 = vld [vmem:[#allocation11 + $0x150] sm:$0xf]  ;;  %v1000_v49 = vpack.i.b16 %v4988_v27, %v4988_v27  ;;  %v4463_v27 = vld [vmem:[#allocation11 + $0x1b4] sm:$0xf] }
  0xfb   :  { %v706_v34 = vadd.f32 %v698_v19, %v694_v30  ;;  %v707_v35 = vadd.f32 %v699_v20, %v695_v31  ;;  %v4416_v19 = vld [vmem:[#allocation8 + $0x134] sm:$0xf0]  ;;  %v3529_v30 = vld [vmem:[#allocation8 + $0x120] sm:$0xf]  ;;  %v4414_v31 = vld [vmem:[#allocation8 + $0x124] sm:$0xf0]  ;;  %v3758_v28 = vor.u32 %v4469_v23, %v3755_v24 }
  0xfc   :  { %v3538_v20 = vor.u32 %v4416_v19, %v3537_v18  ;;  %v3530_v36 = vor.u32 %v4414_v31, %v3529_v30  ;;  %v3766_v18 = vor.u32 %v4471_v13, %v3763_v15  ;;  %v3690_v19 = vor.u32 %v4454_v17, %v3689_v16  ;;  %v4452_v30 = vld [vmem:[#allocation11 + $0x154] sm:$0xf0]  ;;  %v3745_v31 = vld [vmem:[#allocation11 + $0x1d0] sm:$0xf]  ;;  %v4446_v13 = vld [vmem:[#allocation11 + $0x124] sm:$0xf0] }
  0xfd   :  { %v726_v37 = vmax.f32 %v706_v34, 0.0  ;;  %v727_v38 = vmax.f32 %v707_v35, 0.0  ;;  %v3593_v34 = vld [vmem:[#allocation8 + $0x1a0] sm:$0xf]  ;;  %v1285_v35 = vld [vmem:[%s5056_s6] sm:$0x5]  ;;  %v3658_v17 = vor.u32 %v4446_v13, %v3657_v12 }
  0xfe   :  { %1515 = vmatpush.bf16.msra.mxu0 %v3538_v20  ;;  %1287 = vst [vmem:[#allocation1] ss:$4 sm:$0xff] %v1285_v35  ;;  %v3753_v20 = vld [vmem:[#allocation11 + $0x1e0] sm:$0xf]  ;;  %v4451_v35 = vld [vmem:[#allocation11 + $0x154] sm:$0xf] }
  0xff   :  { %v731_v39 = vpack.c.bf16 %v727_v38, %v726_v37  ;;  %v4430_v37 = vld [vmem:[#allocation8 + $0x1a4] sm:$0xf0]  ;;  %v4413_v38 = vld [vmem:[#allocation8 + $0x124] sm:$0xf]  ;;  %v3754_v22 = vor.u32 %v4470_v59, %v3753_v20  ;;  %v999_v5 = vperm.slane %v997_v48, 0  ;;  %v1002_v6 = vperm.slane %v1000_v49, 0 }
 0x100   :  { %v3659_v20 = vld [vmem:[#allocation11 + $0x128] sm:$0xf0]  ;;  %v4461_v21 = vld [vmem:[#allocation11 + $0x1a4] sm:$0xf]  ;;  %v4442_v48 = vld [vmem:[#allocation11 + $0x104] sm:$0xf0] }
 0x101   :  { %v1061_v40 = vunpack.c.l.b16 %v731_v39  ;;  %v1062_v10 = vunpack.c.h.b16 %v731_v39  ;;  %v3594_v39 = vor.u32 %v4430_v37, %v3593_v34  ;;  %v4468_v34 = vld [vmem:[#allocation11 + $0x1d4] sm:$0xf0]  ;;  %v3682_v37 = vor.u32 %v4452_v30, %v3681_v29  ;;  %v3705_v49 = vld [vmem:[#allocation11 + $0x180] sm:$0xf]  ;;  %v3643_v54 = vld [vmem:[#allocation11 + $0x108] sm:$0xf0] }
 0x102   :  { %1516 = vmatpush.bf16.msra.mxu0 %v3530_v36  ;;  %v3683_v36 = vld [vmem:[#allocation11 + $0x158] sm:$0xf0]  ;;  %v1007_v60 = vunpack.c.l.bf16 %v999_v5  ;;  %v1008_v23 = vunpack.c.l.bf16 %v1002_v6  ;;  %v3825_v5 = vld [vmem:[#allocation8 + $0x270] sm:$0xf]  ;;  %v4488_v6 = vld [vmem:[#allocation8 + $0x274] sm:$0xf0] }
 0x103   :  { %v1063_v32 = vpack.c.b16 %v1061_v40, %v1059_v51  ;;  %v1064_v41 = vpack.c.b16 %v1062_v10, %v1060_v55  ;;  %v3531_v51 = vld [vmem:[#allocation8 + $0x128] sm:$0xf0]  ;;  %v4429_v40 = vld [vmem:[#allocation8 + $0x1a4] sm:$0xf]  ;;  %1530 = vmatpush.bf16.msra.mxu1 %v3594_v39  ;;  %v3747_v39 = vld [vmem:[#allocation11 + $0x1d8] sm:$0xf0] }
 0x104   :  { %v3534_v55 = vor.u32 %v4413_v38, %v3531_v51  ;;  %v3595_v10 = vld [vmem:[#allocation8 + $0x1a8] sm:$0xf0]  ;;  %v4467_v38 = vld [vmem:[#allocation11 + $0x1d4] sm:$0xf]  ;;  %v3746_v51 = vor.u32 %v4468_v34, %v3745_v31  ;;  %v4487_v12 = vld [vmem:[#allocation8 + $0x274] sm:$0xf] }
 0x105   :  { %1235 = vmatmul.bf16.vlgmr.msrb.gmra.mxu0 %v1063_v32  ;;  %1249 = vmatmul.bf16.vlgmr.msrb.gmra.mxu1 %v1064_v41  ;;  %v3827_v13 = vld [vmem:[#allocation8 + $0x278] sm:$0xf0] }
 0x106   :  { %1263 = vmatmul.bf16.vlgmr.msrb.gmra.mxu2 %v1063_v32  ;;  %1277 = vmatmul.bf16.vlgmr.msrb.gmra.mxu3 %v1064_v41  ;;  %v3598_v32 = vor.u32 %v4429_v40, %v3595_v10  ;;  %v3521_v41 = vld [vmem:[#allocation8 + $0x110] sm:$0xf]  ;;  %v3686_v40 = vor.u32 %v4451_v35, %v3683_v36  ;;  %v3649_v36 = vld [vmem:[#allocation11 + $0x110] sm:$0xf] }
 0x107   :  { %1544 = vmatpush.bf16.msra.mxu2 %v3534_v55  ;;  %v3522_v42 = vor.u32 %v4412_v11, %v3521_v41  ;;  %1531 = vmatpush.bf16.msra.mxu1 %v3586_v46  ;;  %v3673_v41 = vld [vmem:[#allocation11 + $0x140] sm:$0xf]  ;;  %v4450_v11 = vld [vmem:[#allocation11 + $0x144] sm:$0xf0] }
 0x108   :  { %1558 = vmatpush.bf16.msra.mxu3 %v3598_v32  ;;  %v3750_v32 = vor.u32 %v4467_v38, %v3747_v39  ;;  %v3713_v39 = vld [vmem:[#allocation11 + $0x190] sm:$0xf] }
 0x109   :  { %1517 = vmatpush.bf16.msra.mxu0 %v3522_v42  ;;  %v3674_v42 = vor.u32 %v4450_v11, %v3673_v41  ;;  %v4459_v41 = vld [vmem:[#allocation11 + $0x194] sm:$0xf]  ;;  %v3715_v11 = vld [vmem:[#allocation11 + $0x198] sm:$0xf0] }
 0x10b   :  { %1545 = vmatpush.bf16.msra.mxu2 %v3526_v47  ;;  %1532 = vmatpush.bf16.msra.mxu1 %v3578_v62  ;;  %v4448_v62 = vld [vmem:[#allocation11 + $0x134] sm:$0xf0] }
 0x10c   :  { %1559 = vmatpush.bf16.msra.mxu3 %v3590_v50  ;;  %v3738_v50 = vor.u32 %v4466_v43, %v3737_v33 }
 0x10d   :  { %1518 = vmatpush.bf16.msra.mxu0 %v3514_v56 }
 0x10f   :  { %1546 = vmatpush.bf16.msra.mxu2 %v3518_v63  ;;  %1811 = vmatpush.bf16.msrb.mxu1 %v3762_v8  ;;  %v3666_v63 = vor.u32 %v4448_v62, %v3665_v61  ;;  %v3734_v8 = vor.u32 %v4463_v27, %v3731_v4  ;;  %v4457_v61 = vld [vmem:[#allocation11 + $0x184] sm:$0xf]  ;;  %v3707_v62 = vld [vmem:[#allocation11 + $0x188] sm:$0xf0] }
 0x110   :  { %1560 = vmatpush.bf16.msra.mxu3 %v3582_v3  ;;  %v3667_v3 = vld [vmem:[#allocation11 + $0x138] sm:$0xf0]  ;;  %v3710_v0 = vor.u32 %v4457_v61, %v3707_v62  ;;  %v4485_v61 = vld [vmem:[#allocation8 + $0x264] sm:$0xf]  ;;  %v3819_v62 = vld [vmem:[#allocation8 + $0x268] sm:$0xf0] }
 0x111   :  { %1797 = vmatpush.bf16.msrb.mxu0 %v3698_v7  ;;  %v3670_v7 = vor.u32 %v4447_v2, %v3667_v3 }
 0x113   :  { %1825 = vmatpush.bf16.msrb.mxu2 %v3702_v14  ;;  %1812 = vmatpush.bf16.msrb.mxu1 %v3754_v22  ;;  %v3721_v14 = vld [vmem:[#allocation11 + $0x1a0] sm:$0xf]  ;;  %v3723_v22 = vld [vmem:[#allocation11 + $0x1a8] sm:$0xf0] }
 0x114   :  { %1839 = vmatpush.bf16.msrb.mxu3 %v3766_v18  ;;  %v4462_v18 = vld [vmem:[#allocation11 + $0x1a4] sm:$0xf0]  ;;  %v3726_v29 = vor.u32 %v4461_v21, %v3723_v22 }
 0x115   :  { %1798 = vmatpush.bf16.msrb.mxu0 %v3690_v19  ;;  %v4445_v19 = vld [vmem:[#allocation11 + $0x124] sm:$0xf]  ;;  %v3722_v59 = vor.u32 %v4462_v18, %v3721_v14  ;;  %v1289_v21 = vld.sshfl [vmem:[#allocation1 + $0x8] sm:$0xff pattern:$0x73625140] }
 0x117   :  { %1826 = vmatpush.bf16.msrb.mxu2 %v3694_v25  ;;  %1813 = vmatpush.bf16.msrb.mxu1 %v3746_v51  ;;  %v4460_v51 = vld [vmem:[#allocation11 + $0x194] sm:$0xf0] }
 0x118   :  { %1840 = vmatpush.bf16.msrb.mxu3 %v3758_v28  ;;  %v3662_v28 = vor.u32 %v4445_v19, %v3659_v20 }
 0x119   :  { %1799 = vmatpush.bf16.msrb.mxu0 %v3682_v37  ;;  %v4444_v37 = vld [vmem:[#allocation11 + $0x114] sm:$0xf0] }
 0x11a   :  { %v3650_v38 = vor.u32 %v4444_v37, %v3649_v36 }
 0x11b   :  { %1827 = vmatpush.bf16.msrb.mxu2 %v3686_v40  ;;  %1814 = vmatpush.bf16.msrb.mxu1 %v3738_v50  ;;  %v4443_v40 = vld [vmem:[#allocation11 + $0x114] sm:$0xf] }
 0x11c   :  { %1841 = vmatpush.bf16.msrb.mxu3 %v3750_v32  ;;  %v3651_v32 = vld [vmem:[#allocation11 + $0x118] sm:$0xf0] }
 0x11d   :  { %1800 = vmatpush.bf16.msrb.mxu0 %v3674_v42  ;;  %v3654_v33 = vor.u32 %v4443_v40, %v3651_v32  ;;  %v3718_v42 = vor.u32 %v4459_v41, %v3715_v11 }
 0x11f   :  { %1828 = vmatpush.bf16.msrb.mxu2 %v3678_v52  ;;  %1815 = vmatpush.bf16.msrb.mxu1 %v3730_v26  ;;  %v4458_v52 = vld [vmem:[#allocation11 + $0x184] sm:$0xf0] }
 0x120   :  { %1842 = vmatpush.bf16.msrb.mxu3 %v3742_v58  ;;  %v3706_v58 = vor.u32 %v4458_v52, %v3705_v49  ;;  %v3817_v52 = vld [vmem:[#allocation8 + $0x260] sm:$0xf] }
 0x121   :  { %1801 = vmatpush.bf16.msrb.mxu0 %v3666_v63  ;;  %v3646_v63 = vor.u32 %v4441_v53, %v3643_v54  ;;  %v4486_v53 = vld [vmem:[#allocation8 + $0x264] sm:$0xf0]  ;;  %v3881_v54 = vld [vmem:[#allocation8 + $0x2e0] sm:$0xf] }
 0x123   :  { %1829 = vmatpush.bf16.msrb.mxu2 %v3670_v7  ;;  %1816 = vmatpush.bf16.msrb.mxu1 %v3722_v59  ;;  %v3889_v7 = vld [vmem:[#allocation8 + $0x2f0] sm:$0xf]  ;;  %v1288_v59 = vld.sshfl [vmem:[#allocation1] sm:$0xff pattern:$0x73625140] }
 0x124   :  { %1843 = vmatpush.bf16.msrb.mxu3 %v3734_v8  ;;  %v3826_v8 = vor.u32 %v4488_v6, %v3825_v5  ;;  %v4500_v5 = vld [vmem:[#allocation8 + $0x2d4] sm:$0xf0] }
 0x125   :  { %1802 = vmatpush.bf16.msrb.mxu0 %v3658_v17  ;;  %v3891_v17 = vld [vmem:[#allocation8 + $0x2f8] sm:$0xf0] }
 0x127   :  { %1830 = vmatpush.bf16.msrb.mxu2 %v3662_v28 }
 0x128   :  { %1844 = vmatpush.bf16.msrb.mxu3 %v3726_v29 }
 0x129   :  { %1803 = vmatpush.bf16.msrb.mxu0 %v3650_v38 }
 0x12b   :  { %1831 = vmatpush.bf16.msrb.mxu2 %v3654_v33 }
 0x12c   :  { %1845 = vmatpush.bf16.msrb.mxu3 %v3718_v42 }
 0x12f   :  { %1832 = vmatpush.bf16.msrb.mxu2 %v3646_v63 }
 0x130   :  { %1846 = vmatpush.bf16.msrb.mxu3 %v3710_v0  ;;  %v3822_v0 = vor.u32 %v4485_v61, %v3819_v62  ;;  %v4491_v62 = vld [vmem:[#allocation8 + $0x294] sm:$0xf] }
 0x162   :  { %v943_v55 = vpop.f32.mrf.mxu0  ;;  %v957_v10 = vpop.f32.mrf.mxu1 }
 0x163   :  { %v958_v56 = vadd.f32 %v957_v10, %v943_v55  ;;  %v3714_v10 = vor.u32 %v4460_v51, %v3713_v39 }
 0x165   :  { %1817 = vmatpush.bf16.msrb.mxu1 %v3714_v10 }
 0x169   :  { %v971_v46 = vpop.f32.mrf.mxu2  ;;  %v985_v47 = vpop.f32.mrf.mxu3  ;;  %1818 = vmatpush.bf16.msrb.mxu1 %v3706_v58  ;;  %v4502_v58 = vld [vmem:[#allocation8 + $0x2e4] sm:$0xf0] }
 0x16a   :  { %v986_v57 = vadd.f32 %v985_v47, %v971_v46  ;;  %v945_v15 = vpop.f32.mrf.mxu0  ;;  %v959_v16 = vpop.f32.mrf.mxu1  ;;  %v3641_v47 = vld [vmem:[#allocation11 + $0x100] sm:$0xf]  ;;  %v3882_v63 = vor.u32 %v4502_v58, %v3881_v54  ;;  %v4492_v54 = vld [vmem:[#allocation8 + $0x294] sm:$0xf0] }
 0x16b   :  { %v960_v34 = vadd.f32 %v959_v16, %v945_v15  ;;  %v3642_v50 = vor.u32 %v4442_v48, %v3641_v47  ;;  %v3830_v15 = vor.u32 %v4487_v12, %v3827_v13  ;;  %v4503_v16 = vld [vmem:[#allocation8 + $0x2f4] sm:$0xf] }
 0x16c   :  { %v990_v9 = vpack.c.bf16 %v986_v57, %v958_v56  ;;  %v3894_v18 = vor.u32 %v4503_v16, %v3891_v17  ;;  %v4499_v12 = vld [vmem:[#allocation8 + $0x2d4] sm:$0xf]  ;;  %v3801_v16 = vld [vmem:[#allocation8 + $0x240] sm:$0xf]  ;;  %v4482_v17 = vld [vmem:[#allocation8 + $0x244] sm:$0xf0] }
 0x16d   :  { %1804 = vmatpush.bf16.msrb.mxu0 %v3642_v50 }
 0x16e   :  { %v1003_v30 = vunpack.c.l.bf16 %v990_v9  ;;  %v1004_v31 = vunpack.c.h.bf16 %v990_v9  ;;  %v4504_v9 = vld [vmem:[#allocation8 + $0x2f4] sm:$0xf0] }
 0x16f   :  { %v3890_v14 = vor.u32 %v4504_v9, %v3889_v7  ;;  %v3811_v9 = vld [vmem:[#allocation8 + $0x258] sm:$0xf0] }
 0x170   :  { %v1009_v43 = vadd.f32 %v1007_v60, %v1003_v30  ;;  %v1010_v44 = vadd.f32 %v1008_v23, %v1004_v31 }
 0x171   :  { %v973_v24 = vpop.f32.mrf.mxu2  ;;  %v987_v25 = vpop.f32.mrf.mxu3 }
 0x172   :  { %v988_v35 = vadd.f32 %v987_v25, %v973_v24  ;;  %v1019_v1 = vmax.f32 %v1009_v43, 0.0  ;;  %v1020_v2 = vmax.f32 %v1010_v44, 0.0  ;;  %v1293_v24 = vpack.i.b16 %v1289_v21, %v1289_v21  ;;  %v3803_v21 = vld [vmem:[#allocation8 + $0x248] sm:$0xf0] }
 0x174   :  { %v991_v55 = vpack.c.bf16 %v988_v35, %v960_v34  ;;  %v1295_v30 = vperm.slane %v1293_v24, 0  ;;  %v3867_v24 = vld [vmem:[#allocation8 + $0x2c8] sm:$0xf0] }
 0x176   :  { %v1005_v45 = vunpack.c.l.bf16 %v991_v55  ;;  %v1006_v46 = vunpack.c.h.bf16 %v991_v55  ;;  %v1301_v37 = vunpack.c.l.bf16 %v1295_v30 }
 0x178   :  { %v1011_v56 = vadd.f32 %v1007_v60, %v1005_v45  ;;  %v1012_v57 = vadd.f32 %v1008_v23, %v1006_v46  ;;  %v1290_v23 = vpack.i.b16 %v1288_v59, %v1288_v59  ;;  %v4481_v59 = vld [vmem:[#allocation8 + $0x244] sm:$0xf] }
 0x17a   :  { %v1021_v26 = vmax.f32 %v1011_v56, 0.0  ;;  %v1022_v3 = vmax.f32 %v1012_v57, 0.0  ;;  %v1292_v29 = vperm.slane %v1290_v23, 0  ;;  %v1569_v56 = vld [vmem:[#allocation10] sm:$0x5]  ;;  %v3818_v57 = vor.u32 %v4486_v53, %v3817_v52 }
 0x17b   :  { %1571 = vst [vmem:[#allocation1] ss:$4 sm:$0xff] %v1569_v56  ;;  %v4497_v23 = vld [vmem:[#allocation8 + $0x2c4] sm:$0xf]  ;;  %v3841_v52 = vld [vmem:[#allocation8 + $0x290] sm:$0xf] }
 0x17c   :  { %v1023_v27 = vpack.c.bf16 %v1021_v26, %v1019_v1  ;;  %v1024_v4 = vpack.c.bf16 %v1022_v3, %v1020_v2  ;;  %v1300_v36 = vunpack.c.l.bf16 %v1292_v29  ;;  %v4501_v1 = vld [vmem:[#allocation8 + $0x2e4] sm:$0xf]  ;;  %v3883_v2 = vld [vmem:[#allocation8 + $0x2e8] sm:$0xf0]  ;;  %v3809_v26 = vld [vmem:[#allocation8 + $0x250] sm:$0xf]  ;;  %v3842_v58 = vor.u32 %v4492_v54, %v3841_v52 }
 0x17d   :  { %v3886_v3 = vor.u32 %v4501_v1, %v3883_v2  ;;  %v4480_v29 = vld [vmem:[#allocation8 + $0x234] sm:$0xf0]  ;;  %v4475_v56 = vld [vmem:[#allocation8 + $0x214] sm:$0xf]  ;;  %v3769_v2 = vld [vmem:[#allocation8 + $0x200] sm:$0xf] }
 0x17e   :  { %1519 = vmatmul.bf16.vlgmr.msra.gmra.mxu0 %v1023_v27  ;;  %1533 = vmatmul.bf16.vlgmr.msra.gmra.mxu1 %v1024_v4  ;;  %v4514_v54 = vld [vmem:[#allocation11 + $0x244] sm:$0xf0] }
 0x17f   :  { %1547 = vmatmul.bf16.vlgmr.msra.gmra.mxu2 %v1023_v27  ;;  %1561 = vmatmul.bf16.vlgmr.msra.gmra.mxu3 %v1024_v4  ;;  %v4484_v27 = vld [vmem:[#allocation8 + $0x254] sm:$0xf0]  ;;  %v3873_v4 = vld [vmem:[#allocation8 + $0x2d0] sm:$0xf] }
 0x180   :  { %2083 = vmatpush.bf16.msra.mxu0 %v3826_v8  ;;  %2097 = vmatpush.bf16.msra.mxu1 %v3890_v14  ;;  %v3810_v6 = vor.u32 %v4484_v27, %v3809_v26  ;;  %v3874_v7 = vor.u32 %v4500_v5, %v3873_v4  ;;  %v4483_v8 = vld [vmem:[#allocation8 + $0x254] sm:$0xf]  ;;  %v3875_v14 = vld [vmem:[#allocation8 + $0x2d8] sm:$0xf0]  ;;  %v4474_v26 = vld [vmem:[#allocation8 + $0x204] sm:$0xf0] }
 0x181   :  { %2111 = vmatpush.bf16.msra.mxu2 %v3830_v15  ;;  %2125 = vmatpush.bf16.msra.mxu3 %v3894_v18  ;;  %v3814_v13 = vor.u32 %v4483_v8, %v3811_v9  ;;  %v3878_v15 = vor.u32 %v4499_v12, %v3875_v14  ;;  %v3865_v18 = vld [vmem:[#allocation8 + $0x2c0] sm:$0xf]  ;;  %v3770_v27 = vor.u32 %v4474_v26, %v3769_v2  ;;  %v4490_v4 = vld [vmem:[#allocation8 + $0x284] sm:$0xf0]  ;;  %v4473_v5 = vld [vmem:[#allocation8 + $0x204] sm:$0xf] }
 0x182   :  { %v1236_v19 = vpop.f32.mrf.mxu0  ;;  %v1250_v20 = vpop.f32.mrf.mxu1  ;;  %v4489_v9 = vld [vmem:[#allocation8 + $0x284] sm:$0xf]  ;;  %v3835_v12 = vld [vmem:[#allocation8 + $0x288] sm:$0xf0]  ;;  %v4529_v26 = vld [vmem:[#allocation11 + $0x2c4] sm:$0xf] }
 0x183   :  { %v1251_v28 = vadd.f32 %v1250_v20, %v1236_v19  ;;  %v3802_v19 = vor.u32 %v4482_v17, %v3801_v16  ;;  %v4498_v20 = vld [vmem:[#allocation8 + $0x2c4] sm:$0xf0]  ;;  %v3838_v14 = vor.u32 %v4489_v9, %v3835_v12  ;;  %v4017_v16 = vld [vmem:[#allocation11 + $0x2f0] sm:$0xf]  ;;  %v4536_v17 = vld [vmem:[#allocation11 + $0x2f4] sm:$0xf0] }
 0x184   :  { %2084 = vmatpush.bf16.msra.mxu0 %v3818_v57  ;;  %2098 = vmatpush.bf16.msra.mxu1 %v3882_v63  ;;  %v3779_v57 = vld [vmem:[#allocation8 + $0x218] sm:$0xf0] }
 0x185   :  { %2112 = vmatpush.bf16.msra.mxu2 %v3822_v0  ;;  %2126 = vmatpush.bf16.msra.mxu3 %v3886_v3  ;;  %v3782_v61 = vor.u32 %v4475_v56, %v3779_v57  ;;  %v3843_v63 = vld [vmem:[#allocation8 + $0x298] sm:$0xf0]  ;;  %v3833_v3 = vld [vmem:[#allocation8 + $0x280] sm:$0xf]  ;;  %v3993_v56 = vld [vmem:[#allocation11 + $0x2c0] sm:$0xf] }
 0x186   :  { %v3846_v1 = vor.u32 %v4491_v62, %v3843_v63  ;;  %v3931_v62 = vld [vmem:[#allocation11 + $0x248] sm:$0xf0] }
 0x188   :  { %2085 = vmatpush.bf16.msra.mxu0 %v3810_v6  ;;  %2099 = vmatpush.bf16.msra.mxu1 %v3874_v7  ;;  %v3771_v6 = vld [vmem:[#allocation8 + $0x208] sm:$0xf0]  ;;  %v3834_v7 = vor.u32 %v4490_v4, %v3833_v3  ;;  %v3995_v3 = vld [vmem:[#allocation11 + $0x2c8] sm:$0xf0] }
 0x189   :  { %v1264_v22 = vpop.f32.mrf.mxu2  ;;  %v1278_v60 = vpop.f32.mrf.mxu3  ;;  %2113 = vmatpush.bf16.msra.mxu2 %v3814_v13  ;;  %2127 = vmatpush.bf16.msra.mxu3 %v3878_v15  ;;  %v3774_v8 = vor.u32 %v4473_v5, %v3771_v6  ;;  %v3953_v13 = vld [vmem:[#allocation11 + $0x270] sm:$0xf]  ;;  %v4520_v15 = vld [vmem:[#allocation11 + $0x274] sm:$0xf0]  ;;  %v3998_v6 = vor.u32 %v4529_v26, %v3995_v3  ;;  %v3961_v26 = vld [vmem:[#allocation11 + $0x280] sm:$0xf] }
 0x18a   :  { %v1279_v25 = vadd.f32 %v1278_v60, %v1264_v22  ;;  %v1238_v34 = vpop.f32.mrf.mxu0  ;;  %v1252_v35 = vpop.f32.mrf.mxu1  ;;  %v3866_v22 = vor.u32 %v4498_v20, %v3865_v18  ;;  %v3806_v60 = vor.u32 %v4481_v59, %v3803_v21  ;;  %v3954_v18 = vor.u32 %v4520_v15, %v3953_v13  ;;  %v4519_v20 = vld [vmem:[#allocation11 + $0x274] sm:$0xf]  ;;  %v3955_v59 = vld [vmem:[#allocation11 + $0x278] sm:$0xf0]  ;;  %v4528_v15 = vld [vmem:[#allocation11 + $0x2b4] sm:$0xf0] }
 0x18b   :  { %v1253_v55 = vadd.f32 %v1252_v35, %v1238_v34  ;;  %v4496_v34 = vld [vmem:[#allocation8 + $0x2b4] sm:$0xf0]  ;;  %v4479_v35 = vld [vmem:[#allocation8 + $0x234] sm:$0xf] }
 0x18c   :  { %v1283_v31 = vpack.c.bf16 %v1279_v25, %v1251_v28  ;;  %2086 = vmatpush.bf16.msra.mxu0 %v3802_v19  ;;  %v3870_v25 = vor.u32 %v4497_v23, %v3867_v24  ;;  %2100 = vmatpush.bf16.msra.mxu1 %v3866_v22  ;;  %v3793_v28 = vld [vmem:[#allocation8 + $0x230] sm:$0xf]  ;;  %v4018_v19 = vor.u32 %v4536_v17, %v4017_v16  ;;  %v4535_v21 = vld [vmem:[#allocation11 + $0x2f4] sm:$0xf]  ;;  %v3945_v23 = vld [vmem:[#allocation11 + $0x260] sm:$0xf] }
 0x18d   :  { %2114 = vmatpush.bf16.msra.mxu2 %v3806_v60  ;;  %v3794_v30 = vor.u32 %v4480_v29, %v3793_v28  ;;  %v3958_v22 = vor.u32 %v4519_v20, %v3955_v59  ;;  %v4019_v60 = vld [vmem:[#allocation11 + $0x2f8] sm:$0xf0]  ;;  %v4518_v24 = vld [vmem:[#allocation11 + $0x264] sm:$0xf0]  ;;  %v4009_v29 = vld [vmem:[#allocation11 + $0x2e0] sm:$0xf] }
 0x18e   :  { %v1296_v51 = vunpack.c.l.bf16 %v1283_v31  ;;  %v1297_v40 = vunpack.c.h.bf16 %v1283_v31  ;;  %2128 = vmatpush.bf16.msra.mxu3 %v3870_v25  ;;  %v3857_v31 = vld [vmem:[#allocation8 + $0x2b0] sm:$0xf]  ;;  %v4022_v28 = vor.u32 %v4535_v21, %v4019_v60  ;;  %v4511_v16 = vld [vmem:[#allocation11 + $0x234] sm:$0xf]  ;;  %v3987_v20 = vld [vmem:[#allocation11 + $0x2b8] sm:$0xf0] }
 0x18f   :  { %v1573_v25 = vld.sshfl [vmem:[#allocation1 + $0x8] sm:$0xff pattern:$0x73625140]  ;;  %v3913_v21 = vld [vmem:[#allocation11 + $0x220] sm:$0xf] }
 0x190   :  { %v1302_v41 = vadd.f32 %v1300_v36, %v1296_v51  ;;  %v1303_v11 = vadd.f32 %v1301_v37, %v1297_v40  ;;  %2087 = vmatpush.bf16.msra.mxu0 %v3794_v30  ;;  %v4534_v30 = vld [vmem:[#allocation11 + $0x2e4] sm:$0xf0]  ;;  %v3977_v60 = vld [vmem:[#allocation11 + $0x2a0] sm:$0xf] }
 0x191   :  { %v1266_v38 = vpop.f32.mrf.mxu2  ;;  %v1280_v39 = vpop.f32.mrf.mxu3 }
 0x192   :  { %v1281_v10 = vadd.f32 %v1280_v39, %v1266_v38  ;;  %v1312_v45 = vmax.f32 %v1302_v41, 0.0  ;;  %v1313_v46 = vmax.f32 %v1303_v11, 0.0  ;;  %v4495_v38 = vld [vmem:[#allocation8 + $0x2b4] sm:$0xf]  ;;  %v3859_v39 = vld [vmem:[#allocation8 + $0x2b8] sm:$0xf0] }
 0x193   :  { %v3862_v40 = vor.u32 %v4495_v38, %v3859_v39  ;;  %v4494_v11 = vld [vmem:[#allocation8 + $0x2a4] sm:$0xf0]  ;;  %v4011_v38 = vld [vmem:[#allocation11 + $0x2e8] sm:$0xf0] }
 0x194   :  { %v1284_v32 = vpack.c.bf16 %v1281_v10, %v1253_v55  ;;  %v3785_v55 = vld [vmem:[#allocation8 + $0x220] sm:$0xf]  ;;  %v4478_v10 = vld [vmem:[#allocation8 + $0x224] sm:$0xf0] }
 0x195   :  { %v3786_v41 = vor.u32 %v4478_v10, %v3785_v55  ;;  %2129 = vmatpush.bf16.msra.mxu3 %v3862_v40  ;;  %v3937_v40 = vld [vmem:[#allocation11 + $0x250] sm:$0xf]  ;;  %v4516_v55 = vld [vmem:[#allocation11 + $0x254] sm:$0xf0] }
 0x196   :  { %v1298_v33 = vunpack.c.l.bf16 %v1284_v32  ;;  %v1299_v42 = vunpack.c.h.bf16 %v1284_v32  ;;  %v3849_v32 = vld [vmem:[#allocation8 + $0x2a0] sm:$0xf]  ;;  %v4001_v10 = vld [vmem:[#allocation11 + $0x2d0] sm:$0xf] }
 0x197   :  { %2088 = vmatpush.bf16.msra.mxu0 %v3786_v41  ;;  %v4515_v41 = vld [vmem:[#allocation11 + $0x254] sm:$0xf] }
 0x198   :  { %v1304_v43 = vadd.f32 %v1300_v36, %v1298_v33  ;;  %v1305_v44 = vadd.f32 %v1301_v37, %v1299_v42  ;;  %v3858_v36 = vor.u32 %v4496_v34, %v3857_v31  ;;  %v3795_v37 = vld [vmem:[#allocation8 + $0x238] sm:$0xf0]  ;;  %v4477_v33 = vld [vmem:[#allocation8 + $0x224] sm:$0xf]  ;;  %v3850_v42 = vor.u32 %v4494_v11, %v3849_v32  ;;  %v4517_v31 = vld [vmem:[#allocation11 + $0x264] sm:$0xf] }
 0x199   :  { %v3798_v51 = vor.u32 %v4479_v35, %v3795_v37  ;;  %v3946_v34 = vor.u32 %v4518_v24, %v3945_v23  ;;  %v4010_v35 = vor.u32 %v4534_v30, %v4009_v29  ;;  %v4533_v37 = vld [vmem:[#allocation11 + $0x2e4] sm:$0xf]  ;;  %v4532_v32 = vld [vmem:[#allocation11 + $0x2d4] sm:$0xf0]  ;;  %v3939_v11 = vld [vmem:[#allocation11 + $0x258] sm:$0xf0] }
 0x19a   :  { %v1314_v47 = vmax.f32 %v1304_v43, 0.0  ;;  %v1315_v48 = vmax.f32 %v1305_v44, 0.0  ;;  %2101 = vmatpush.bf16.msra.mxu1 %v3858_v36  ;;  %v3787_v43 = vld [vmem:[#allocation8 + $0x228] sm:$0xf0]  ;;  %v4493_v44 = vld [vmem:[#allocation8 + $0x2a4] sm:$0xf] }
 0x19b   :  { %2115 = vmatpush.bf16.msra.mxu2 %v3798_v51  ;;  %v3947_v36 = vld [vmem:[#allocation11 + $0x268] sm:$0xf0]  ;;  %v4014_v51 = vor.u32 %v4533_v37, %v4011_v38  ;;  %v4526_v29 = vld [vmem:[#allocation11 + $0x2a4] sm:$0xf0]  ;;  %v4509_v30 = vld [vmem:[#allocation11 + $0x224] sm:$0xf] }
 0x19c   :  { %v1316_v49 = vpack.c.bf16 %v1314_v47, %v1312_v45  ;;  %v1317_v50 = vpack.c.bf16 %v1315_v48, %v1313_v46  ;;  %v3851_v45 = vld [vmem:[#allocation8 + $0x2a8] sm:$0xf0]  ;;  %v4997_v46 = vld.sshfl [vmem:[#allocation1] sm:$0xff pattern:$0x73625140]  ;;  %v3790_v47 = vor.u32 %v4477_v33, %v3787_v43  ;;  %v3950_v39 = vor.u32 %v4517_v31, %v3947_v36 }
 0x19d   :  { %v3854_v48 = vor.u32 %v4493_v44, %v3851_v45  ;;  %v1574_v0 = vshrl.u32 %v4997_v46, 16  ;;  %v4531_v33 = vld [vmem:[#allocation11 + $0x2d4] sm:$0xf]  ;;  %v1855_v43 = vld [vmem:[%s5056_s6] sm:$0x5]  ;;  %v1578_v44 = vshrl.u32 %v1573_v25, 16  ;;  %v3938_v45 = vor.u32 %v4516_v55, %v3937_v40 }
 0x19e   :  { %1805 = vmatmul.bf16.vlgmr.msrb.gmra.mxu0 %v1316_v49  ;;  %1819 = vmatmul.bf16.vlgmr.msrb.gmra.mxu1 %v1317_v50  ;;  %1857 = vst [vmem:[#allocation1] ss:$4 sm:$0xff] %v1855_v43  ;;  %v3921_v46 = vld [vmem:[#allocation11 + $0x230] sm:$0xf]  ;;  %v3915_v31 = vld [vmem:[#allocation11 + $0x228] sm:$0xf0]  ;;  %v3978_v40 = vor.u32 %v4526_v29, %v3977_v60 }
 0x19f   :  { %1833 = vmatmul.bf16.vlgmr.msrb.gmra.mxu2 %v1316_v49  ;;  %1847 = vmatmul.bf16.vlgmr.msrb.gmra.mxu3 %v1317_v50  ;;  %v3777_v49 = vld [vmem:[#allocation8 + $0x210] sm:$0xf]  ;;  %v4476_v50 = vld [vmem:[#allocation8 + $0x214] sm:$0xf0]  ;;  %v1575_v57 = vpack.i.b16 %v1574_v0, %v1574_v0  ;;  %v1579_v63 = vpack.i.b16 %v1578_v44, %v1578_v44  ;;  %v3985_v0 = vld [vmem:[#allocation11 + $0x2b0] sm:$0xf]  ;;  %v3918_v55 = vor.u32 %v4509_v30, %v3915_v31 }
 0x1a0   :  { %2102 = vmatpush.bf16.msra.mxu1 %v3850_v42  ;;  %v3778_v53 = vor.u32 %v4476_v50, %v3777_v49  ;;  %2116 = vmatpush.bf16.msra.mxu2 %v3790_v47  ;;  %v4003_v42 = vld [vmem:[#allocation11 + $0x2d8] sm:$0xf0]  ;;  %v4002_v47 = vor.u32 %v4532_v32, %v4001_v10  ;;  %v3942_v50 = vor.u32 %v4515_v41, %v3939_v11  ;;  %v4525_v36 = vld [vmem:[#allocation11 + $0x2a4] sm:$0xf]  ;;  %v3979_v37 = vld [vmem:[#allocation11 + $0x2a8] sm:$0xf0] }
 0x1a1   :  { %2130 = vmatpush.bf16.msra.mxu3 %v3854_v48  ;;  %v4006_v52 = vor.u32 %v4531_v33, %v4003_v42  ;;  %v1577_v12 = vperm.slane %v1575_v57, 0  ;;  %v1581_v13 = vperm.slane %v1579_v63, 0  ;;  %v3986_v17 = vor.u32 %v4528_v15, %v3985_v0  ;;  %v3905_v42 = vld [vmem:[#allocation11 + $0x210] sm:$0xf]  ;;  %v4508_v43 = vld [vmem:[#allocation11 + $0x214] sm:$0xf0] }
 0x1a2   :  { %2089 = vmatpush.bf16.msra.mxu0 %v3778_v53  ;;  %v3929_v53 = vld [vmem:[#allocation11 + $0x240] sm:$0xf]  ;;  %v3982_v10 = vor.u32 %v4525_v36, %v3979_v37  ;;  %v3969_v44 = vld [vmem:[#allocation11 + $0x290] sm:$0xf]  ;;  %v3963_v0 = vld [vmem:[#allocation11 + $0x288] sm:$0xf0] }
 0x1a3   :  { %v1587_v38 = vunpack.c.l.bf16 %v1581_v13 }
 0x1a4   :  { %2103 = vmatpush.bf16.msra.mxu1 %v3842_v58  ;;  %2117 = vmatpush.bf16.msra.mxu2 %v3782_v61  ;;  %v4530_v58 = vld [vmem:[#allocation11 + $0x2c4] sm:$0xf0]  ;;  %v4513_v61 = vld [vmem:[#allocation11 + $0x244] sm:$0xf] }
 0x1a5   :  { %2131 = vmatpush.bf16.msra.mxu3 %v3846_v1  ;;  %v3930_v1 = vor.u32 %v4514_v54, %v3929_v53  ;;  %v3994_v2 = vor.u32 %v4530_v58, %v3993_v56  ;;  %v3934_v5 = vor.u32 %v4513_v61, %v3931_v62  ;;  %v4523_v53 = vld [vmem:[#allocation11 + $0x294] sm:$0xf]  ;;  %v3971_v54 = vld [vmem:[#allocation11 + $0x298] sm:$0xf0] }
 0x1a6   :  { %2090 = vmatpush.bf16.msra.mxu0 %v3770_v27  ;;  %v3974_v57 = vor.u32 %v4523_v53, %v3971_v54 }
 0x1a8   :  { %2104 = vmatpush.bf16.msra.mxu1 %v3834_v7  ;;  %2118 = vmatpush.bf16.msra.mxu2 %v3774_v8  ;;  %v4512_v8 = vld [vmem:[#allocation11 + $0x234] sm:$0xf0] }
 0x1a9   :  { %2132 = vmatpush.bf16.msra.mxu3 %v3838_v14  ;;  %v3922_v14 = vor.u32 %v4512_v8, %v3921_v46  ;;  %v4521_v8 = vld [vmem:[#allocation11 + $0x284] sm:$0xf] }
 0x1aa   :  { %2367 = vmatpush.bf16.msrb.mxu0 %v3954_v18  ;;  %v3923_v18 = vld [vmem:[#allocation11 + $0x238] sm:$0xf0] }
 0x1ab   :  { %v3926_v25 = vor.u32 %v4511_v16, %v3923_v18 }
 0x1ac   :  { %2381 = vmatpush.bf16.msrb.mxu1 %v4018_v19  ;;  %2395 = vmatpush.bf16.msrb.mxu2 %v3958_v22  ;;  %v4527_v19 = vld [vmem:[#allocation11 + $0x2b4] sm:$0xf]  ;;  %v4510_v22 = vld [vmem:[#allocation11 + $0x224] sm:$0xf0] }
 0x1ad   :  { %2409 = vmatpush.bf16.msrb.mxu3 %v4022_v28  ;;  %v3990_v28 = vor.u32 %v4527_v19, %v3987_v20  ;;  %v1858_v19 = vld.sshfl [vmem:[#allocation1] sm:$0xff pattern:$0x73625140]  ;;  %v1859_v20 = vld.sshfl [vmem:[#allocation1 + $0x8] sm:$0xff pattern:$0x73625140] }
 0x1ae   :  { %2368 = vmatpush.bf16.msrb.mxu0 %v3946_v34  ;;  %v1586_v34 = vunpack.c.l.bf16 %v1577_v12  ;;  %v3966_v12 = vor.u32 %v4521_v8, %v3963_v0  ;;  %v1864_v60 = vshrl.u32 %v1859_v20, 16  ;;  %v4598_v0 = vld [vmem:[#allocation14 + $0xe4] sm:$0xf0]  ;;  %v4129_v20 = vld [vmem:[#allocation14 + $0xd0] sm:$0xf] }
 0x1b0   :  { %2382 = vmatpush.bf16.msrb.mxu1 %v4010_v35  ;;  %2396 = vmatpush.bf16.msrb.mxu2 %v3950_v39  ;;  %v3914_v35 = vor.u32 %v4510_v22, %v3913_v21  ;;  %v1860_v22 = vshrl.u32 %v1858_v19, 16  ;;  %v4580_v19 = vld [vmem:[#allocation14 + $0x54] sm:$0xf0] }
 0x1b1   :  { %2410 = vmatpush.bf16.msrb.mxu3 %v4014_v51 }
 0x1b2   :  { %2369 = vmatpush.bf16.msrb.mxu0 %v3938_v45  ;;  %v4524_v45 = vld [vmem:[#allocation11 + $0x294] sm:$0xf0] }
 0x1b4   :  { %2383 = vmatpush.bf16.msrb.mxu1 %v4002_v47  ;;  %2397 = vmatpush.bf16.msrb.mxu2 %v3942_v50  ;;  %v4507_v47 = vld [vmem:[#allocation11 + $0x214] sm:$0xf]  ;;  %v3970_v50 = vor.u32 %v4524_v45, %v3969_v44 }
 0x1b5   :  { %2411 = vmatpush.bf16.msrb.mxu3 %v4006_v52  ;;  %v3907_v52 = vld [vmem:[#allocation11 + $0x218] sm:$0xf0] }
 0x1b6   :  { %2370 = vmatpush.bf16.msrb.mxu0 %v3930_v1  ;;  %v3910_v56 = vor.u32 %v4507_v47, %v3907_v52  ;;  %v3897_v1 = vld [vmem:[#allocation11 + $0x200] sm:$0xf] }
 0x1b8   :  { %2384 = vmatpush.bf16.msrb.mxu1 %v3994_v2  ;;  %2398 = vmatpush.bf16.msrb.mxu2 %v3934_v5  ;;  %v4506_v2 = vld [vmem:[#allocation11 + $0x204] sm:$0xf0]  ;;  %v3899_v5 = vld [vmem:[#allocation11 + $0x208] sm:$0xf0] }
 0x1b9   :  { %2412 = vmatpush.bf16.msrb.mxu3 %v3998_v6  ;;  %v3898_v3 = vor.u32 %v4506_v2, %v3897_v1  ;;  %v4583_v1 = vld [vmem:[#allocation14 + $0x74] sm:$0xf] }
 0x1ba   :  { %2371 = vmatpush.bf16.msrb.mxu0 %v3922_v14 }
 0x1bc   :  { %2385 = vmatpush.bf16.msrb.mxu1 %v3986_v17  ;;  %2399 = vmatpush.bf16.msrb.mxu2 %v3926_v25  ;;  %v1861_v25 = vpack.i.b16 %v1860_v22, %v1860_v22  ;;  %v4579_v22 = vld [vmem:[#allocation14 + $0x54] sm:$0xf] }
 0x1bd   :  { %2413 = vmatpush.bf16.msrb.mxu3 %v3990_v28  ;;  %v1865_v28 = vpack.i.b16 %v1864_v60, %v1864_v60  ;;  %v4067_v60 = vld [vmem:[#allocation14 + $0x58] sm:$0xf0] }
 0x1be   :  { %2372 = vmatpush.bf16.msrb.mxu0 %v3914_v35  ;;  %v1863_v31 = vperm.slane %v1861_v25, 0  ;;  %v4595_v25 = vld [vmem:[#allocation14 + $0xd4] sm:$0xf] }
 0x1c0   :  { %2386 = vmatpush.bf16.msrb.mxu1 %v3978_v40  ;;  %2400 = vmatpush.bf16.msrb.mxu2 %v3918_v55 }
 0x1c1   :  { %2414 = vmatpush.bf16.msrb.mxu3 %v3982_v10 }
 0x1c4   :  { %2387 = vmatpush.bf16.msrb.mxu1 %v3970_v50  ;;  %2401 = vmatpush.bf16.msrb.mxu2 %v3910_v56  ;;  %v2141_v56 = vld [vmem:[#allocation10] sm:$0xa] }
 0x1c5   :  { %2415 = vmatpush.bf16.msrb.mxu3 %v3974_v57  ;;  %2143 = vst [vmem:[#allocation1] ss:$4 sm:$0xff] %v2141_v56  ;;  %v4081_v57 = vld [vmem:[#allocation14 + $0x70] sm:$0xf]  ;;  %v4041_v56 = vld [vmem:[#allocation14 + $0x20] sm:$0xf] }
 0x1c9   :  { %2416 = vmatpush.bf16.msrb.mxu3 %v3966_v12  ;;  %v4075_v12 = vld [vmem:[#allocation14 + $0x68] sm:$0xf0] }
 0x1fb   :  { %v1520_v48 = vpop.f32.mrf.mxu0  ;;  %v1534_v49 = vpop.f32.mrf.mxu1 }
 0x1fc   :  { %v1535_v9 = vadd.f32 %v1534_v49, %v1520_v48  ;;  %v3906_v49 = vor.u32 %v4508_v43, %v3905_v42 }
 0x1fe   :  { %2373 = vmatpush.bf16.msrb.mxu0 %v3906_v49 }
 0x202   :  { %v1548_v27 = vpop.f32.mrf.mxu2  ;;  %v1562_v4 = vpop.f32.mrf.mxu3  ;;  %2374 = vmatpush.bf16.msrb.mxu0 %v3898_v3  ;;  %v4599_v3 = vld [vmem:[#allocation14 + $0xf4] sm:$0xf] }
 0x203   :  { %v1563_v7 = vadd.f32 %v1562_v4, %v1548_v27  ;;  %v1522_v23 = vpop.f32.mrf.mxu0  ;;  %v1536_v24 = vpop.f32.mrf.mxu1  ;;  %v4522_v27 = vld [vmem:[#allocation11 + $0x284] sm:$0xf0]  ;;  %v4505_v4 = vld [vmem:[#allocation11 + $0x204] sm:$0xf] }
 0x204   :  { %v1537_v11 = vadd.f32 %v1536_v24, %v1522_v23  ;;  %v3962_v46 = vor.u32 %v4522_v27, %v3961_v26  ;;  %v4083_v26 = vld [vmem:[#allocation14 + $0x78] sm:$0xf0] }
 0x205   :  { %v1567_v59 = vpack.c.bf16 %v1563_v7, %v1535_v9  ;;  %v3902_v9 = vor.u32 %v4505_v4, %v3899_v5  ;;  %v4147_v27 = vld [vmem:[#allocation14 + $0xf8] sm:$0xf0]  ;;  %v4086_v4 = vor.u32 %v4583_v1, %v4083_v26  ;;  %v4043_v1 = vld [vmem:[#allocation14 + $0x28] sm:$0xf0] }
 0x206   :  { %2388 = vmatpush.bf16.msrb.mxu1 %v3962_v46  ;;  %v4150_v5 = vor.u32 %v4599_v3, %v4147_v27  ;;  %v4137_v46 = vld [vmem:[#allocation14 + $0xe0] sm:$0xf]  ;;  %v4589_v3 = vld [vmem:[#allocation14 + $0xa4] sm:$0xf]  ;;  %v4107_v27 = vld [vmem:[#allocation14 + $0xa8] sm:$0xf0] }
 0x207   :  { %v1582_v32 = vunpack.c.l.bf16 %v1567_v59  ;;  %v1583_v41 = vunpack.c.h.bf16 %v1567_v59  ;;  %2402 = vmatpush.bf16.msrb.mxu2 %v3902_v9  ;;  %v4581_v9 = vld [vmem:[#allocation14 + $0x64] sm:$0xf] }
 0x209   :  { %v1588_v58 = vadd.f32 %v1586_v34, %v1582_v32  ;;  %v1589_v61 = vadd.f32 %v1587_v38, %v1583_v41 }
 0x20a   :  { %v1550_v39 = vpop.f32.mrf.mxu2  ;;  %v1564_v51 = vpop.f32.mrf.mxu3 }
 0x20b   :  { %v1565_v33 = vadd.f32 %v1564_v51, %v1550_v39  ;;  %v1598_v13 = vmax.f32 %v1588_v58, 0.0  ;;  %v1599_v14 = vmax.f32 %v1589_v61, 0.0  ;;  %v4584_v58 = vld [vmem:[#allocation14 + $0x74] sm:$0xf0] }
 0x20c   :  { %v4082_v61 = vor.u32 %v4584_v58, %v4081_v57  ;;  %v4574_v57 = vld [vmem:[#allocation14 + $0x24] sm:$0xf0]  ;;  %v4105_v58 = vld [vmem:[#allocation14 + $0xa0] sm:$0xf] }
 0x20d   :  { %v1568_v48 = vpack.c.bf16 %v1565_v33, %v1537_v11 }
 0x20f   :  { %v1584_v62 = vunpack.c.l.bf16 %v1568_v48  ;;  %v1585_v63 = vunpack.c.h.bf16 %v1568_v48 }
 0x211   :  { %v1590_v6 = vadd.f32 %v1586_v34, %v1584_v62  ;;  %v1591_v7 = vadd.f32 %v1587_v38, %v1585_v63  ;;  %v1867_v34 = vperm.slane %v1865_v28, 0  ;;  %v1872_v38 = vunpack.c.l.bf16 %v1863_v31  ;;  %v4145_v62 = vld [vmem:[#allocation14 + $0xf0] sm:$0xf]  ;;  %v4600_v63 = vld [vmem:[#allocation14 + $0xf4] sm:$0xf0] }
 0x212   :  { %v4146_v2 = vor.u32 %v4600_v63, %v4145_v62  ;;  %v4131_v28 = vld [vmem:[#allocation14 + $0xd8] sm:$0xf0]  ;;  %v4578_v31 = vld [vmem:[#allocation14 + $0x44] sm:$0xf0]  ;;  %v4573_v63 = vld [vmem:[#allocation14 + $0x24] sm:$0xf] }
 0x213   :  { %v1600_v15 = vmax.f32 %v1590_v6, 0.0  ;;  %v1601_v16 = vmax.f32 %v1591_v7, 0.0  ;;  %v1873_v39 = vunpack.c.l.bf16 %v1867_v34  ;;  %v4073_v6 = vld [vmem:[#allocation14 + $0x60] sm:$0xf]  ;;  %v4582_v7 = vld [vmem:[#allocation14 + $0x64] sm:$0xf0]  ;;  %v4046_v26 = vor.u32 %v4573_v63, %v4043_v1 }
 0x214   :  { %v4074_v8 = vor.u32 %v4582_v7, %v4073_v6  ;;  %v4121_v34 = vld [vmem:[#allocation14 + $0xc0] sm:$0xf]  ;;  %v4590_v62 = vld [vmem:[#allocation14 + $0xa4] sm:$0xf0]  ;;  %v4572_v6 = vld [vmem:[#allocation14 + $0x14] sm:$0xf0] }
 0x215   :  { %v1602_v17 = vpack.c.bf16 %v1600_v15, %v1598_v13  ;;  %v1603_v18 = vpack.c.bf16 %v1601_v16, %v1599_v14  ;;  %v4138_v13 = vor.u32 %v4598_v0, %v4137_v46  ;;  %v4078_v14 = vor.u32 %v4581_v9, %v4075_v12  ;;  %v4597_v15 = vld [vmem:[#allocation14 + $0xe4] sm:$0xf]  ;;  %v4139_v16 = vld [vmem:[#allocation14 + $0xe8] sm:$0xf0]  ;;  %v4097_v7 = vld [vmem:[#allocation14 + $0x90] sm:$0xf] }
 0x216   :  { %v4571_v0 = vld [vmem:[#allocation14 + $0x14] sm:$0xf]  ;;  %v4035_v9 = vld [vmem:[#allocation14 + $0x18] sm:$0xf0] }
 0x217   :  { %2091 = vmatmul.bf16.vlgmr.msra.gmra.mxu0 %v1602_v17  ;;  %2105 = vmatmul.bf16.vlgmr.msra.gmra.mxu1 %v1603_v18  ;;  %v4547_v63 = vld [vmem:[#allocation13 + $0x54] sm:$0xf] }
 0x218   :  { %2119 = vmatmul.bf16.vlgmr.msra.gmra.mxu2 %v1602_v17  ;;  %2133 = vmatmul.bf16.vlgmr.msra.gmra.mxu3 %v1603_v18  ;;  %v4142_v17 = vor.u32 %v4597_v15, %v4139_v16  ;;  %v4065_v18 = vld [vmem:[#allocation14 + $0x50] sm:$0xf]  ;;  %v4099_v15 = vld [vmem:[#allocation14 + $0x98] sm:$0xf0] }
 0x219   :  { %2682 = vmatpush.bf16.msra.mxu0 %v4082_v61  ;;  %2696 = vmatpush.bf16.msra.mxu1 %v4146_v2  ;;  %v4042_v61 = vor.u32 %v4574_v57, %v4041_v56  ;;  %v4106_v2 = vor.u32 %v4590_v62, %v4105_v58  ;;  %v4193_v56 = vld [vmem:[#allocation13 + $0x50] sm:$0xf]  ;;  %v4548_v57 = vld [vmem:[#allocation13 + $0x54] sm:$0xf0] }
 0x21a   :  { %2710 = vmatpush.bf16.msra.mxu2 %v4086_v4  ;;  %2724 = vmatpush.bf16.msra.mxu3 %v4150_v5  ;;  %v4110_v4 = vor.u32 %v4589_v3, %v4107_v27  ;;  %v4033_v5 = vld [vmem:[#allocation14 + $0x10] sm:$0xf]  ;;  %v4194_v58 = vor.u32 %v4548_v57, %v4193_v56  ;;  %v4564_v62 = vld [vmem:[#allocation13 + $0xd4] sm:$0xf0]  ;;  %v4259_v3 = vld [vmem:[#allocation13 + $0xd8] sm:$0xf0] }
 0x21b   :  { %v1806_v59 = vpop.f32.mrf.mxu0  ;;  %v1820_v21 = vpop.f32.mrf.mxu1  ;;  %v4034_v46 = vor.u32 %v4572_v6, %v4033_v5  ;;  %v4555_v56 = vld [vmem:[#allocation13 + $0x94] sm:$0xf]  ;;  %v4227_v57 = vld [vmem:[#allocation13 + $0x98] sm:$0xf0] }
 0x21c   :  { %v1821_v30 = vadd.f32 %v1820_v21, %v1806_v59  ;;  %v4066_v59 = vor.u32 %v4580_v19, %v4065_v18  ;;  %v4596_v21 = vld [vmem:[#allocation14 + $0xd4] sm:$0xf0]  ;;  %v4570_v18 = vld [vmem:[#allocation14 + $0x4] sm:$0xf0]  ;;  %v4089_v19 = vld [vmem:[#allocation14 + $0x80] sm:$0xf] }
 0x21d   :  { %2683 = vmatpush.bf16.msra.mxu0 %v4074_v8  ;;  %2697 = vmatpush.bf16.msra.mxu1 %v4138_v13  ;;  %v4588_v8 = vld [vmem:[#allocation14 + $0x94] sm:$0xf0]  ;;  %v4038_v13 = vor.u32 %v4571_v0, %v4035_v9  ;;  %v4562_v9 = vld [vmem:[#allocation13 + $0xc4] sm:$0xf0] }
 0x21e   :  { %2711 = vmatpush.bf16.msra.mxu2 %v4078_v14  ;;  %2725 = vmatpush.bf16.msra.mxu3 %v4142_v17  ;;  %v4098_v12 = vor.u32 %v4588_v8, %v4097_v7  ;;  %v4587_v14 = vld [vmem:[#allocation14 + $0x94] sm:$0xf]  ;;  %v4025_v17 = vld [vmem:[#allocation14] sm:$0xf] }
 0x21f   :  { %v4102_v16 = vor.u32 %v4587_v14, %v4099_v15  ;;  %v4185_v7 = vld [vmem:[#allocation13 + $0x40] sm:$0xf]  ;;  %v4561_v15 = vld [vmem:[#allocation13 + $0xc4] sm:$0xf] }
 0x220   :  { %v4249_v8 = vld [vmem:[#allocation13 + $0xc0] sm:$0xf] }
 0x221   :  { %2684 = vmatpush.bf16.msra.mxu0 %v4066_v59  ;;  %v4586_v59 = vld [vmem:[#allocation14 + $0x84] sm:$0xf0]  ;;  %v4250_v14 = vor.u32 %v4562_v9, %v4249_v8  ;;  %v4537_v8 = vld [vmem:[#allocation13 + $0x4] sm:$0xf] }
 0x222   :  { %v1834_v23 = vpop.f32.mrf.mxu2  ;;  %v1848_v24 = vpop.f32.mrf.mxu3  ;;  %v4553_v9 = vld [vmem:[#allocation13 + $0x84] sm:$0xf] }
 0x223   :  { %v1849_v29 = vadd.f32 %v1848_v24, %v1834_v23  ;;  %v1808_v36 = vpop.f32.mrf.mxu0  ;;  %v1822_v37 = vpop.f32.mrf.mxu1  ;;  %v4130_v23 = vor.u32 %v4596_v21, %v4129_v20  ;;  %v4070_v24 = vor.u32 %v4579_v22, %v4067_v60  ;;  %v4026_v20 = vor.u32 %v4570_v18, %v4025_v17  ;;  %v4569_v21 = vld [vmem:[#allocation14 + $0x4] sm:$0xf]  ;;  %v4027_v60 = vld [vmem:[#allocation14 + $0x8] sm:$0xf0] }
 0x224   :  { %v1823_v32 = vadd.f32 %v1822_v37, %v1808_v36  ;;  %v4594_v36 = vld [vmem:[#allocation14 + $0xc4] sm:$0xf0]  ;;  %v4577_v37 = vld [vmem:[#allocation14 + $0x44] sm:$0xf]  ;;  %v4090_v22 = vor.u32 %v4586_v59, %v4089_v19  ;;  %v4177_v59 = vld [vmem:[#allocation13 + $0x30] sm:$0xf] }
 0x225   :  { %v1853_v35 = vpack.c.bf16 %v1849_v29, %v1821_v30  ;;  %v4134_v29 = vor.u32 %v4595_v25, %v4131_v28  ;;  %2698 = vmatpush.bf16.msra.mxu1 %v4130_v23  ;;  %v4057_v30 = vld [vmem:[#allocation14 + $0x40] sm:$0xf]  ;;  %2712 = vmatpush.bf16.msra.mxu2 %v4070_v24  ;;  %v4585_v23 = vld [vmem:[#allocation14 + $0x84] sm:$0xf]  ;;  %v4091_v24 = vld [vmem:[#allocation14 + $0x88] sm:$0xf0]  ;;  %v4030_v25 = vor.u32 %v4569_v21, %v4027_v60 }
 0x226   :  { %v4209_v28 = vld [vmem:[#allocation13 + $0x70] sm:$0xf]  ;;  %v4544_v21 = vld [vmem:[#allocation13 + $0x34] sm:$0xf0] }
 0x227   :  { %v1868_v55 = vunpack.c.l.bf16 %v1853_v35  ;;  %v1869_v10 = vunpack.c.h.bf16 %v1853_v35  ;;  %2726 = vmatpush.bf16.msra.mxu3 %v4134_v29  ;;  %v4058_v35 = vor.u32 %v4578_v31, %v4057_v30  ;;  %v4552_v29 = vld [vmem:[#allocation13 + $0x74] sm:$0xf0]  ;;  %v4273_v30 = vld [vmem:[#allocation13 + $0xf0] sm:$0xf]  ;;  %v4094_v31 = vor.u32 %v4585_v23, %v4091_v24  ;;  %v4543_v24 = vld [vmem:[#allocation13 + $0x34] sm:$0xf] }
 0x228   :  { %v4178_v60 = vor.u32 %v4544_v21, %v4177_v59  ;;  %v4560_v23 = vld [vmem:[#allocation13 + $0xb4] sm:$0xf0] }
 0x229   :  { %v1874_v33 = vadd.f32 %v1872_v38, %v1868_v55  ;;  %v1875_v42 = vadd.f32 %v1873_v39, %v1869_v10  ;;  %v4123_v55 = vld [vmem:[#allocation14 + $0xc8] sm:$0xf0]  ;;  %v4049_v10 = vld [vmem:[#allocation14 + $0x30] sm:$0xf]  ;;  %2685 = vmatpush.bf16.msra.mxu0 %v4058_v35  ;;  %v4568_v35 = vld [vmem:[#allocation13 + $0xf4] sm:$0xf0] }
 0x22a   :  { %v1836_v51 = vpop.f32.mrf.mxu2  ;;  %v1850_v40 = vpop.f32.mrf.mxu3 }
 0x22b   :  { %v1851_v41 = vadd.f32 %v1850_v40, %v1836_v51  ;;  %v1884_v48 = vmax.f32 %v1874_v33, 0.0  ;;  %v1885_v49 = vmax.f32 %v1875_v42, 0.0  ;;  %v4593_v40 = vld [vmem:[#allocation14 + $0xc4] sm:$0xf]  ;;  %v4592_v33 = vld [vmem:[#allocation14 + $0xb4] sm:$0xf0] }
 0x22d   :  { %v1854_v11 = vpack.c.bf16 %v1851_v41, %v1823_v32  ;;  %v4126_v32 = vor.u32 %v4593_v40, %v4123_v55  ;;  %v4576_v41 = vld [vmem:[#allocation14 + $0x34] sm:$0xf0]  ;;  %v4275_v40 = vld [vmem:[#allocation13 + $0xf8] sm:$0xf0]  ;;  %v4201_v55 = vld [vmem:[#allocation13 + $0x60] sm:$0xf] }
 0x22e   :  { %v4050_v42 = vor.u32 %v4576_v41, %v4049_v10  ;;  %v4265_v41 = vld [vmem:[#allocation13 + $0xe0] sm:$0xf] }
 0x22f   :  { %v1870_v43 = vunpack.c.l.bf16 %v1854_v11  ;;  %v1871_v44 = vunpack.c.h.bf16 %v1854_v11  ;;  %v4113_v11 = vld [vmem:[#allocation14 + $0xb0] sm:$0xf]  ;;  %2727 = vmatpush.bf16.msra.mxu3 %v4126_v32  ;;  %v4550_v32 = vld [vmem:[#allocation13 + $0x64] sm:$0xf0] }
 0x230   :  { %2686 = vmatpush.bf16.msra.mxu0 %v4050_v42  ;;  %v4549_v42 = vld [vmem:[#allocation13 + $0x64] sm:$0xf] }
 0x231   :  { %v1876_v45 = vadd.f32 %v1872_v38, %v1870_v43  ;;  %v1877_v47 = vadd.f32 %v1873_v39, %v1871_v44  ;;  %v4059_v38 = vld [vmem:[#allocation14 + $0x48] sm:$0xf0]  ;;  %v4122_v39 = vor.u32 %v4594_v36, %v4121_v34  ;;  %v4114_v43 = vor.u32 %v4592_v33, %v4113_v11  ;;  %v4575_v44 = vld [vmem:[#allocation14 + $0x34] sm:$0xf]  ;;  %v4566_v11 = vld [vmem:[#allocation13 + $0xe4] sm:$0xf0] }
 0x232   :  { %v4062_v51 = vor.u32 %v4577_v37, %v4059_v38  ;;  %v4210_v34 = vor.u32 %v4552_v29, %v4209_v28  ;;  %v4551_v36 = vld [vmem:[#allocation13 + $0x74] sm:$0xf]  ;;  %v4211_v37 = vld [vmem:[#allocation13 + $0x78] sm:$0xf0]  ;;  %v4274_v38 = vor.u32 %v4568_v35, %v4273_v30  ;;  %v4202_v33 = vor.u32 %v4550_v32, %v4201_v55  ;;  %v4541_v55 = vld [vmem:[#allocation13 + $0x24] sm:$0xf] }
 0x233   :  { %v1886_v50 = vmax.f32 %v1876_v45, 0.0  ;;  %v1887_v52 = vmax.f32 %v1877_v47, 0.0  ;;  %2699 = vmatpush.bf16.msra.mxu1 %v4122_v39  ;;  %v4051_v45 = vld [vmem:[#allocation14 + $0x38] sm:$0xf0]  ;;  %v4591_v47 = vld [vmem:[#allocation14 + $0xb4] sm:$0xf]  ;;  %v4214_v39 = vor.u32 %v4551_v36, %v4211_v37 }
 0x234   :  { %2713 = vmatpush.bf16.msra.mxu2 %v4062_v51  ;;  %2687 = vmatpush.bf16.msra.mxu0 %v4042_v61  ;;  %v4567_v51 = vld [vmem:[#allocation13 + $0xf4] sm:$0xf]  ;;  %v4257_v61 = vld [vmem:[#allocation13 + $0xd0] sm:$0xf]  ;;  %v4542_v36 = vld [vmem:[#allocation13 + $0x24] sm:$0xf0] }
 0x235   :  { %v1888_v53 = vpack.c.bf16 %v1886_v50, %v1884_v48  ;;  %v1889_v54 = vpack.c.bf16 %v1887_v52, %v1885_v49  ;;  %v5006_v48 = vld.sshfl [vmem:[#allocation1] sm:$0xff pattern:$0x73625140]  ;;  %v4054_v49 = vor.u32 %v4575_v44, %v4051_v45  ;;  %v4115_v50 = vld [vmem:[#allocation14 + $0xb8] sm:$0xf0]  ;;  %v4278_v10 = vor.u32 %v4567_v51, %v4275_v40 }
 0x236   :  { %v5008_v52 = vld.sshfl [vmem:[#allocation1 + $0x8] sm:$0xff pattern:$0x73625140]  ;;  %v4565_v44 = vld [vmem:[#allocation13 + $0xe4] sm:$0xf]  ;;  %v4258_v1 = vor.u32 %v4564_v62, %v4257_v61 }
 0x237   :  { %2375 = vmatmul.bf16.vlgmr.msrb.gmra.mxu0 %v1888_v53  ;;  %2389 = vmatmul.bf16.vlgmr.msrb.gmra.mxu1 %v1889_v54  ;;  %v4559_v30 = vld [vmem:[#allocation13 + $0xb4] sm:$0xf]  ;;  %v4233_v37 = vld [vmem:[#allocation13 + $0xa0] sm:$0xf]  ;;  %v4557_v32 = vld [vmem:[#allocation13 + $0xa4] sm:$0xf] }
 0x238   :  { %2403 = vmatmul.bf16.vlgmr.msrb.gmra.mxu2 %v1888_v53  ;;  %2417 = vmatmul.bf16.vlgmr.msrb.gmra.mxu3 %v1889_v54  ;;  %v4118_v53 = vor.u32 %v4591_v47, %v4115_v50  ;;  %v2425_v54 = vld [vmem:[%s5056_s6] sm:$0xa] }
 0x239   :  { %2427 = vst [vmem:[#allocation1] ss:$4 sm:$0xff] %v2425_v54  ;;  %2700 = vmatpush.bf16.msra.mxu1 %v4114_v43  ;;  %2714 = vmatpush.bf16.msra.mxu2 %v4054_v49  ;;  %v4203_v43 = vld [vmem:[#allocation13 + $0x68] sm:$0xf0]  ;;  %v4266_v49 = vor.u32 %v4566_v11, %v4265_v41 }
 0x23a   :  { %2728 = vmatpush.bf16.msra.mxu3 %v4118_v53  ;;  %2688 = vmatpush.bf16.msra.mxu0 %v4034_v46  ;;  %v4206_v50 = vor.u32 %v4549_v42, %v4203_v43  ;;  %v4267_v53 = vld [vmem:[#allocation13 + $0xe8] sm:$0xf0]  ;;  %v4546_v46 = vld [vmem:[#allocation13 + $0x44] sm:$0xf0]  ;;  %v4161_v42 = vld [vmem:[#allocation13 + $0x10] sm:$0xf] }
 0x23b   :  { %v4270_v54 = vor.u32 %v4565_v44, %v4267_v53  ;;  %v4186_v0 = vor.u32 %v4546_v46, %v4185_v7  ;;  %v4540_v43 = vld [vmem:[#allocation13 + $0x14] sm:$0xf0]  ;;  %v4539_v53 = vld [vmem:[#allocation13 + $0x14] sm:$0xf]  ;;  %v4230_v7 = vor.u32 %v4555_v56, %v4227_v57  ;;  %v4554_v46 = vld [vmem:[#allocation13 + $0x84] sm:$0xf0] }
 0x23d   :  { %2701 = vmatpush.bf16.msra.mxu1 %v4106_v2  ;;  %2715 = vmatpush.bf16.msra.mxu2 %v4046_v26  ;;  %v4195_v2 = vld [vmem:[#allocation13 + $0x58] sm:$0xf0]  ;;  %v4563_v26 = vld [vmem:[#allocation13 + $0xd4] sm:$0xf] }
 0x23e   :  { %2729 = vmatpush.bf16.msra.mxu3 %v4110_v4  ;;  %2689 = vmatpush.bf16.msra.mxu0 %v4026_v20  ;;  %v4198_v5 = vor.u32 %v4547_v63, %v4195_v2  ;;  %v4262_v6 = vor.u32 %v4563_v26, %v4259_v3  ;;  %v4153_v3 = vld [vmem:[#allocation13] sm:$0xf] }
 0x240   :  { %v2428_v62 = vld.sshfl [vmem:[#allocation1] sm:$0xff pattern:$0x73625140]  ;;  %v2429_v63 = vld.sshfl [vmem:[#allocation1 + $0x8] sm:$0xff pattern:$0x73625140] }
 0x241   :  { %2702 = vmatpush.bf16.msra.mxu1 %v4098_v12  ;;  %2716 = vmatpush.bf16.msra.mxu2 %v4038_v13  ;;  %v4545_v12 = vld [vmem:[#allocation13 + $0x44] sm:$0xf]  ;;  %v4187_v13 = vld [vmem:[#allocation13 + $0x48] sm:$0xf0] }
 0x242   :  { %2730 = vmatpush.bf16.msra.mxu3 %v4102_v16  ;;  %2898 = vmatpush.bf16.msrb.mxu0 %v4210_v34  ;;  %v4251_v16 = vld [vmem:[#allocation13 + $0xc8] sm:$0xf0]  ;;  %v4190_v17 = vor.u32 %v4545_v12, %v4187_v13  ;;  %v4169_v34 = vld [vmem:[#allocation13 + $0x20] sm:$0xf] }
 0x243   :  { %v4254_v18 = vor.u32 %v4561_v15, %v4251_v16  ;;  %v4170_v40 = vor.u32 %v4542_v36, %v4169_v34  ;;  %v4219_v12 = vld [vmem:[#allocation13 + $0x88] sm:$0xf0]  ;;  %v2430_v15 = vpack.i.b16 %v2428_v62, %v2428_v62  ;;  %v2433_v16 = vpack.i.b16 %v2429_v63, %v2429_v63 }
 0x245   :  { %2703 = vmatpush.bf16.msra.mxu1 %v4090_v22  ;;  %2717 = vmatpush.bf16.msra.mxu2 %v4030_v25  ;;  %v4241_v22 = vld [vmem:[#allocation13 + $0xb0] sm:$0xf]  ;;  %v4179_v25 = vld [vmem:[#allocation13 + $0x38] sm:$0xf0] }
 0x246   :  { %2731 = vmatpush.bf16.msra.mxu3 %v4094_v31  ;;  %2899 = vmatpush.bf16.msrb.mxu0 %v4202_v33  ;;  %v4242_v28 = vor.u32 %v4560_v23, %v4241_v22  ;;  %v4182_v29 = vor.u32 %v4543_v24, %v4179_v25  ;;  %v4243_v31 = vld [vmem:[#allocation13 + $0xb8] sm:$0xf0]  ;;  %v4235_v33 = vld [vmem:[#allocation13 + $0xa8] sm:$0xf0]  ;;  %v4222_v22 = vor.u32 %v4553_v9, %v4219_v12  ;;  %v2432_v23 = vperm.slane %v2430_v15, 1 }
 0x247   :  { %v4246_v35 = vor.u32 %v4559_v30, %v4243_v31  ;;  %v4238_v44 = vor.u32 %v4557_v32, %v4235_v33  ;;  %v2435_v24 = vperm.slane %v2433_v16, 1 }
 0x248   :  { %v2440_v30 = vunpack.c.l.bf16 %v2432_v23 }
 0x249   :  { %2912 = vmatpush.bf16.msrb.mxu1 %v4274_v38  ;;  %2926 = vmatpush.bf16.msrb.mxu2 %v4214_v39  ;;  %v4558_v38 = vld [vmem:[#allocation13 + $0xa4] sm:$0xf0]  ;;  %v2441_v31 = vunpack.c.l.bf16 %v2435_v24 }
 0x24a   :  { %2940 = vmatpush.bf16.msrb.mxu3 %v4278_v10  ;;  %2900 = vmatpush.bf16.msrb.mxu0 %v4194_v58  ;;  %v4171_v10 = vld [vmem:[#allocation13 + $0x28] sm:$0xf0]  ;;  %v4234_v41 = vor.u32 %v4558_v38, %v4233_v37 }
 0x24b   :  { %v4174_v11 = vor.u32 %v4541_v55, %v4171_v10 }
 0x24d   :  { %2913 = vmatpush.bf16.msrb.mxu1 %v4266_v49  ;;  %2927 = vmatpush.bf16.msrb.mxu2 %v4206_v50  ;;  %v4225_v49 = vld [vmem:[#allocation13 + $0x90] sm:$0xf]  ;;  %v4556_v50 = vld [vmem:[#allocation13 + $0x94] sm:$0xf0] }
 0x24e   :  { %2941 = vmatpush.bf16.msrb.mxu3 %v4270_v54  ;;  %2901 = vmatpush.bf16.msrb.mxu0 %v4186_v0  ;;  %v4163_v54 = vld [vmem:[#allocation13 + $0x18] sm:$0xf0]  ;;  %v4226_v2 = vor.u32 %v4556_v50, %v4225_v49  ;;  %v4155_v0 = vld [vmem:[#allocation13 + $0x8] sm:$0xf0]  ;;  %v2146_v49 = vpack.i.b16 %v5006_v48, %v5006_v48  ;;  %v2149_v50 = vpack.i.b16 %v5008_v52, %v5008_v52 }
 0x24f   :  { %v4166_v26 = vor.u32 %v4539_v53, %v4163_v54  ;;  %v4158_v21 = vor.u32 %v4537_v8, %v4155_v0 }
 0x250   :  { %v2151_v63 = vperm.slane %v2149_v50, 1 }
 0x251   :  { %2914 = vmatpush.bf16.msrb.mxu1 %v4258_v1  ;;  %2928 = vmatpush.bf16.msrb.mxu2 %v4198_v5  ;;  %v4162_v1 = vor.u32 %v4540_v43, %v4161_v42  ;;  %v4538_v5 = vld [vmem:[#allocation13 + $0x4] sm:$0xf0] }
 0x252   :  { %2942 = vmatpush.bf16.msrb.mxu3 %v4262_v6  ;;  %2902 = vmatpush.bf16.msrb.mxu0 %v4178_v60  ;;  %v4217_v6 = vld [vmem:[#allocation13 + $0x80] sm:$0xf] }
 0x253   :  { %v4218_v59 = vor.u32 %v4554_v46, %v4217_v6 }
 0x255   :  { %2915 = vmatpush.bf16.msrb.mxu1 %v4250_v14  ;;  %2929 = vmatpush.bf16.msrb.mxu2 %v4190_v17  ;;  %v4154_v17 = vor.u32 %v4538_v5, %v4153_v3 }
 0x256   :  { %2943 = vmatpush.bf16.msrb.mxu3 %v4254_v18  ;;  %2903 = vmatpush.bf16.msrb.mxu0 %v4170_v40 }
 0x259   :  { %2916 = vmatpush.bf16.msrb.mxu1 %v4242_v28  ;;  %2930 = vmatpush.bf16.msrb.mxu2 %v4182_v29 }
 0x25a   :  { %2944 = vmatpush.bf16.msrb.mxu3 %v4246_v35  ;;  %2904 = vmatpush.bf16.msrb.mxu0 %v4162_v1 }
 0x25d   :  { %2917 = vmatpush.bf16.msrb.mxu1 %v4234_v41  ;;  %2931 = vmatpush.bf16.msrb.mxu2 %v4174_v11 }
 0x25e   :  { %2945 = vmatpush.bf16.msrb.mxu3 %v4238_v44  ;;  %2905 = vmatpush.bf16.msrb.mxu0 %v4154_v17  ;;  %v2954_v17 = vld [vmem:[%s5059_s9] sm:$0x3]  ;;  %s4854_s9 = smov [#allocation16]  }
 0x25f   :  { %v2956_v24 = vperm.slane %v2954_v17, 0  ;;  %s2972_s15 = sshll.u32 %s4854_s9, 4  ;;  %s2973_s15 = int_to_ptr.vmem [resolvable:$true] %s2972_s15 }
 0x261   :  { %2918 = vmatpush.bf16.msrb.mxu1 %v4226_v2  ;;  %2932 = vmatpush.bf16.msrb.mxu2 %v4166_v26  ;;  %v2157_v2 = vunpack.c.l.bf16 %v2151_v63 }
 0x262   :  { %2946 = vmatpush.bf16.msrb.mxu3 %v4230_v7 }
 0x265   :  { %2919 = vmatpush.bf16.msrb.mxu1 %v4218_v59  ;;  %2933 = vmatpush.bf16.msrb.mxu2 %v4158_v21 }
 0x266   :  { %2947 = vmatpush.bf16.msrb.mxu3 %v4222_v22 }
 0x294   :  { %v5013_v45 = vpop.f32.mrf.mxu0  ;;  %v5015_v47 = vpop.f32.mrf.mxu1 }
 0x29b   :  { %v5017_v27 = vpop.f32.mrf.mxu2  ;;  %v5019_v4 = vpop.f32.mrf.mxu3 }
 0x29c   :  { %v5021_v19 = vpop.f32.mrf.mxu0  ;;  %v5023_v20 = vpop.f32.mrf.mxu1  ;;  %v2135_v44 = vadd.f32 %v5019_v4, %v5017_v27  ;;  %v2148_v4 = vperm.slane %v2146_v49, 1 }
 0x29d   :  { %v2109_v53 = vadd.f32 %v5023_v20, %v5021_v19 }
 0x29e   :  { %v2156_v1 = vunpack.c.l.bf16 %v2148_v4 }
 0x2a3   :  { %v5025_v39 = vpop.f32.mrf.mxu2  ;;  %v5027_v51 = vpop.f32.mrf.mxu3 }
 0x2a4   :  { %v2137_v33 = vadd.f32 %v5027_v51, %v5025_v39  ;;  %v2107_v39 = vadd.f32 %v5015_v47, %v5013_v45 }
 0x2a6   :  { %v2140_v51 = vpack.c.bf16 %v2137_v33, %v2109_v53  ;;  %v2139_v27 = vpack.c.bf16 %v2135_v44, %v2107_v39 }
 0x2a8   :  { %v2154_v48 = vunpack.c.l.bf16 %v2140_v51  ;;  %v2155_v52 = vunpack.c.h.bf16 %v2140_v51  ;;  %v2152_v19 = vunpack.c.l.bf16 %v2139_v27  ;;  %v2153_v20 = vunpack.c.h.bf16 %v2139_v27 }
 0x2aa   :  { %v2160_v26 = vadd.f32 %v2156_v1, %v2154_v48  ;;  %v2161_v3 = vadd.f32 %v2157_v2, %v2155_v52  ;;  %v2158_v5 = vadd.f32 %v2156_v1, %v2152_v19  ;;  %v2159_v45 = vadd.f32 %v2157_v2, %v2153_v20 }
 0x2ac   :  { %v2170_v47 = vmax.f32 %v2160_v26, 0.0  ;;  %v2171_v6 = vmax.f32 %v2161_v3, 0.0  ;;  %v2168_v7 = vmax.f32 %v2158_v5, 0.0  ;;  %v2169_v46 = vmax.f32 %v2159_v45, 0.0 }
 0x2ae   :  { %v2172_v8 = vpack.c.bf16 %v2170_v47, %v2168_v7  ;;  %v2173_v0 = vpack.c.bf16 %v2171_v6, %v2169_v46 }
 0x2b4   :  { %v2376_v58 = vpop.f32.mrf.mxu0  ;;  %v2390_v61 = vpop.f32.mrf.mxu1 }
 0x2b5   :  { %v2391_v60 = vadd.f32 %v2390_v61, %v2376_v58 }
 0x2bb   :  { %v2404_v13 = vpop.f32.mrf.mxu2  ;;  %v2418_v14 = vpop.f32.mrf.mxu3 }
 0x2bc   :  { %v2419_v18 = vadd.f32 %v2418_v14, %v2404_v13  ;;  %v2378_v28 = vpop.f32.mrf.mxu0  ;;  %v2392_v29 = vpop.f32.mrf.mxu1 }
 0x2bd   :  { %v2393_v38 = vadd.f32 %v2392_v29, %v2378_v28 }
 0x2be   :  { %v2423_v25 = vpack.c.bf16 %v2419_v18, %v2391_v60 }
 0x2c0   :  { %v2436_v36 = vunpack.c.l.bf16 %v2423_v25  ;;  %v2437_v37 = vunpack.c.h.bf16 %v2423_v25 }
 0x2c2   :  { %v2442_v10 = vadd.f32 %v2440_v30, %v2436_v36  ;;  %v2443_v32 = vadd.f32 %v2441_v31, %v2437_v37  ;;  %v2957_v36 = vperm.slane %v2954_v17, 1 }
 0x2c3   :  { %v2406_v34 = vpop.f32.mrf.mxu2  ;;  %v2420_v35 = vpop.f32.mrf.mxu3 }
 0x2c4   :  { %v2421_v40 = vadd.f32 %v2420_v35, %v2406_v34  ;;  %v2452_v54 = vmax.f32 %v2442_v10, 0.0  ;;  %v2453_v56 = vmax.f32 %v2443_v32, 0.0 }
 0x2c6   :  { %v2424_v55 = vpack.c.bf16 %v2421_v40, %v2393_v38 }
 0x2c8   :  { %v2438_v41 = vunpack.c.l.bf16 %v2424_v55  ;;  %v2439_v11 = vunpack.c.h.bf16 %v2424_v55 }
 0x2ca   :  { %v2444_v42 = vadd.f32 %v2440_v30, %v2438_v41  ;;  %v2445_v43 = vadd.f32 %v2441_v31, %v2439_v11 }
 0x2cc   :  { %v2454_v57 = vmax.f32 %v2444_v42, 0.0  ;;  %v2455_v58 = vmax.f32 %v2445_v43, 0.0 }
 0x2ce   :  { %v2456_v61 = vpack.c.bf16 %v2454_v57, %v2452_v54  ;;  %v2457_v62 = vpack.c.bf16 %v2455_v58, %v2453_v56 }
 0x2d0   :  { %2690 = vmatmul.bf16.vlgmr.msra.gmra.mxu0 %v2456_v61  ;;  %2704 = vmatmul.bf16.vlgmr.msra.gmra.mxu1 %v2457_v62 }
 0x2d1   :  { %2718 = vmatmul.bf16.vlgmr.msra.gmra.mxu2 %v2456_v61  ;;  %2732 = vmatmul.bf16.vlgmr.msra.gmra.mxu3 %v2457_v62 }
 0x2e0   :  { %2906 = vmatmul.bf16.vlgmr.msrb.gmra.mxu0 %v2172_v8  ;;  %2920 = vmatmul.bf16.vlgmr.msrb.gmra.mxu1 %v2173_v0 }
 0x2e1   :  { %2934 = vmatmul.bf16.vlgmr.msrb.gmra.mxu2 %v2172_v8  ;;  %2948 = vmatmul.bf16.vlgmr.msrb.gmra.mxu3 %v2173_v0 }
 0x34d   :  { %v2691_v9 = vpop.f32.mrf.mxu0  ;;  %v2705_v12 = vpop.f32.mrf.mxu1 }
 0x34e   :  { %v2706_v18 = vadd.f32 %v2705_v12, %v2691_v9 }
 0x354   :  { %v2719_v13 = vpop.f32.mrf.mxu2  ;;  %v2733_v14 = vpop.f32.mrf.mxu3 }
 0x355   :  { %v2693_v15 = vpop.f32.mrf.mxu0  ;;  %v2707_v16 = vpop.f32.mrf.mxu1  ;;  %v2734_v29 = vadd.f32 %v2733_v14, %v2719_v13 }
 0x356   :  { %v2708_v30 = vadd.f32 %v2707_v16, %v2693_v15 }
 0x35c   :  { %v2721_v59 = vpop.f32.mrf.mxu2  ;;  %v2735_v21 = vpop.f32.mrf.mxu3 }
 0x35d   :  { %v2907_v22 = vpop.f32.mrf.mxu0  ;;  %v2921_v60 = vpop.f32.mrf.mxu1  ;;  %v2736_v11 = vadd.f32 %v2735_v21, %v2721_v59 }
 0x35e   :  { %v2908_v23 = vadd.f32 %v2907_v22, %v2706_v18 }
 0x360   :  { %v2922_v25 = vadd.f32 %v2921_v60, %v2908_v23 }
 0x362   :  { %v2960_v28 = vadd.f32 %v2956_v24, %v2922_v25 }
 0x364   :  { %2964 = vst [vmem:[#allocation16] sm:$0xff] %v2960_v28  ;;  %v2935_v31 = vpop.f32.mrf.mxu2  ;;  %v2949_v34 = vpop.f32.mrf.mxu3 }
 0x365   :  { %v2936_v35 = vadd.f32 %v2935_v31, %v2734_v29  ;;  %v2909_v37 = vpop.f32.mrf.mxu0  ;;  %v2923_v55 = vpop.f32.mrf.mxu1 }
 0x366   :  { %v2910_v38 = vadd.f32 %v2909_v37, %v2708_v30 }
 0x367   :  { %v2950_v40 = vadd.f32 %v2949_v34, %v2936_v35 }
 0x368   :  { %v2924_v10 = vadd.f32 %v2923_v55, %v2910_v38 }
 0x369   :  { %v2961_v32 = vadd.f32 %v2957_v36, %v2950_v40 }
 0x36a   :  { %v2962_v41 = vadd.f32 %v2956_v24, %v2924_v10 }
 0x36b   :  { %2965 = vst [vmem:[#allocation16 + $0x8] sm:$0xff] %v2961_v32 }
 0x36c   :  { %2966 = vst [vmem:[#allocation16 + $0x10] sm:$0xff] %v2962_v41  ;;  %v2937_v33 = vpop.f32.mrf.mxu2  ;;  %v2951_v43 = vpop.f32.mrf.mxu3 }
 0x36d   :  { %v2938_v42 = vadd.f32 %v2937_v33, %v2736_v11 }
 0x36f   :  { %v2952_v44 = vadd.f32 %v2951_v43, %v2938_v42 }
 0x371   :  { %v2963_v49 = vadd.f32 %v2957_v36, %v2952_v44 }
 0x373   :  { %2967 = vst [vmem:[#allocation16 + $0x18] sm:$0xff] %v2963_v49 }
 0x374   :  { %2980 = dma.vmem_to_hbm [thread:$0]  %s2973_s15, 512, %s2975_s17, [#allocation4], %s4843_s18, %s4843_s18, %s4844_s19  }
 0x375   :  { %4840 = dma.done.wait [#allocation4], 512  }
 0x376   :  { %4841 = vsyncadd [#allocation4], 4294966784 }
 0x377   :  { %2985 = vsyncpa [#allocation3], 1 }
 0x378   :  { %2986 = vsyncpa [#allocation6], 1 }
 0x379   :  { %2987 = vsyncpa [#allocation9], 1 }
 0x37a   :  { %2988 = vsyncpa [#allocation12], 1 }
 0x37b   :  { %2989 = vsyncpa [#allocation15], 1 }
 0x37c   :  { %2990 = vsyncpa [#allocation4], 1 }

</bundles_post_ra>
